<compile_context>
chip_gen: v6e
topology: v6e:2x2x1
jax: 0.10.0
libtpu: 0.0.40
codegen_flags: <defaults>
</compile_context>

<pallas_src>
import jax
import jax.numpy as jnp
from jax.experimental import pallas as pl
from jax.experimental.pallas import tpu as pltpu


def res_layer_kernel(x_ref, halo_ref, w1_ref, b1_ref, w2_ref, b2_ref,
                     out_ref, pad_ref):
    # x_ref:    (1, TH, W, C)    bf16 row tile of the image
    # halo_ref: (1, 1, 2, W, C)  bf16 image rows just above / below the tile
    # w1_ref:   (C, C2)          bf16 folded 1x1 conv weight
    # b1_ref:   (1, C2)          f32  folded bias
    # w2_ref:   (9*C2, C)        bf16 folded 3x3 conv weight, rows = (dy, dx, c2)
    # b2_ref:   (1, C)           f32  folded bias
    # out_ref:  (1, TH, W, C)    input dtype (f32)
    # pad_ref:  VMEM (TH+2, W+2, C2) bf16  W-padded h1 with 1-row halos
    t = pl.program_id(1)
    num_t = pl.num_programs(1)
    _, TH, W, C = x_ref.shape
    C2 = w1_ref.shape[1]

    x_tile = x_ref[0]                                   # (TH, W, C) bf16
    x_halo = halo_ref[0, 0]                             # (2,  W, C) bf16
    w1 = w1_ref[...]

    # ---- layer1: 1x1 conv (+folded BN) + LeakyReLU(0.1), f32 accumulation.
    h1 = jnp.dot(x_tile.reshape(TH * W, C), w1,
                 preferred_element_type=jnp.float32) + b1_ref[...]
    h1 = jnp.maximum(h1, 0.1 * h1)
    h1h = jnp.dot(x_halo.reshape(2 * W, C), w1,
                  preferred_element_type=jnp.float32) + b1_ref[...]
    h1h = jnp.maximum(h1h, 0.1 * h1h)

    # ---- W-padded h1 (+ row halos) in VMEM, bf16.  Every interior row is
    #      rewritten each step; only the two zero columns need explicit resets.
    zero_col = jnp.zeros((TH + 2, 1, C2), jnp.bfloat16)
    pad_ref[:, 0:1, :] = zero_col
    pad_ref[:, W + 1:W + 2, :] = zero_col
    pad_ref[1:TH + 1, 1:W + 1, :] = h1.astype(jnp.bfloat16).reshape(TH, W, C2)
    h1h_b = h1h.astype(jnp.bfloat16).reshape(2, W, C2)
    pad_ref[0:1, 1:W + 1, :] = h1h_b[0:1]
    pad_ref[TH + 1:TH + 2, 1:W + 1, :] = h1h_b[1:2]

    # The 3x3 conv zero-pads the *post-conv1* activations, so at the image
    # top/bottom the halo rows must be zero (conv1 of a zero row is not zero).
    zero_row = jnp.zeros((1, W, C2), jnp.bfloat16)

    @pl.when(t == 0)
    def _():
        pad_ref[0:1, 1:W + 1, :] = zero_row

    @pl.when(t == num_t - 1)
    def _():
        pad_ref[TH + 1:TH + 2, 1:W + 1, :] = zero_row

    # ---- layer2: 3x3 conv (+folded BN) as 9 accumulating MXU matmuls.
    acc = jnp.zeros((TH * W, C), jnp.float32)
    for k in range(9):
        dy, dx = divmod(k, 3)
        win = pad_ref[dy:dy + TH, dx:dx + W, :].reshape(TH * W, C2)
        acc = acc + jnp.dot(win, w2_ref[k * C2:(k + 1) * C2, :],
                            preferred_element_type=jnp.float32)
    acc = acc + b2_ref[...]
    acc = jnp.maximum(acc, 0.1 * acc)

    # ---- residual add (reuse the already-loaded tile) in f32.
    out_ref[0] = (x_tile.astype(jnp.float32)
                  + acc.reshape(TH, W, C)).astype(out_ref.dtype)


def _round_up(v, m):
    return -(-v // m) * m


def _vmem_capacity_bytes():
    try:
        info = pltpu.get_tpu_info()
        cap = getattr(info, "vmem_capacity_bytes", None)
        if cap:
            return int(cap)
    except Exception:
        pass
    return 64 * 1024 * 1024          # conservative default (v7x per-TensorCore)


def _choose_tile_h(N, H, W, C, C2, vmem_cap):
    """Largest divisor of H whose per-step working set fits ~40% of VMEM.

    Accounts for lane padding (last dim rounded up to 128) and for the
    double-buffering of the pipelined input / halo / output blocks.
    """
    budget = int(vmem_cap * 0.40)
    Cp, C2p = _round_up(C, 128), _round_up(C2, 128)
    best = 1
    for d in range(1, H + 1):
        if H % d:
            continue
        x_blk = 2 * d * W * Cp * 2                     # bf16 input tile, x2 bufs
        halo_blk = 2 * 2 * W * Cp * 2                  # bf16 halo rows, x2 bufs
        out_blk = 2 * d * W * Cp * 4                   # f32 output tile, x2 bufs
        pad_scr = (d + 2) * (W + 2) * C2p * 2          # bf16 padded-h1 scratch
        live = d * W * (C2p + Cp) * 4                  # f32 h1 / acc live values
        wts = (_round_up(9 * C2, 16) * Cp + _round_up(C, 16) * C2p) * 2
        if x_blk + halo_blk + out_blk + pad_scr + live + wts <= budget:
            best = d
    # batch-1 inference on v7x: make sure both TensorCores get a row tile.
    if N * (H // best) < 2 and best > 1:
        best = max(d for d in range(1, best) if H % d == 0)
    return best


def res_layer_nhwc(x_nhwc, w1, b1, w2, b2, *, tile_h=None):
    N, H, W, C = x_nhwc.shape
    C2 = w1.shape[1]
    vmem_cap = _vmem_capacity_bytes()
    if tile_h is None:
        tile_h = _choose_tile_h(N, H, W, C, C2, vmem_cap)
    assert H % tile_h == 0, "tile_h must divide H"
    num_t = H // tile_h

    # Host-side prep: bf16 image, per-tile 2-row halo slabs (zero rows at the
    # image top/bottom), bf16 weights, conv2 reshaped to (dy, dx, c2) rows.
    x_b = x_nhwc.astype(jnp.bfloat16)
    x_zp = jnp.pad(x_b, ((0, 0), (1, 1), (0, 0), (0, 0)))
    top = jnp.arange(num_t) * tile_h                   # padded row above tile
    halo = jnp.stack([x_zp[:, top], x_zp[:, top + tile_h + 1]], axis=2)
    # halo: (N, num_t, 2, W, C)

    w1b = w1.astype(jnp.bfloat16)                      # (C, C2)
    w2b = w2.reshape(9 * C2, C).astype(jnp.bfloat16)   # (9*C2, C)
    b1f = b1.astype(jnp.float32)
    b2f = b2.astype(jnp.float32)

    vmem_limit = min(100 * 1024 * 1024, int(vmem_cap * 0.85))

    return pl.pallas_call(
        res_layer_kernel,
        out_shape=jax.ShapeDtypeStruct((N, H, W, C), x_nhwc.dtype),
        grid_spec=pltpu.PrefetchScalarGridSpec(
            num_scalar_prefetch=0,
            grid=(N, num_t),
            in_specs=[
                pl.BlockSpec((1, tile_h, W, C), lambda b, t: (b, t, 0, 0)),
                pl.BlockSpec((1, 1, 2, W, C), lambda b, t: (b, t, 0, 0, 0)),
                pl.BlockSpec((C, C2), lambda b, t: (0, 0)),
                pl.BlockSpec((1, C2), lambda b, t: (0, 0)),
                pl.BlockSpec((9 * C2, C), lambda b, t: (0, 0)),
                pl.BlockSpec((1, C), lambda b, t: (0, 0)),
            ],
            out_specs=pl.BlockSpec((1, tile_h, W, C),
                                   lambda b, t: (b, t, 0, 0)),
            scratch_shapes=[
                pltpu.VMEM((tile_h + 2, W + 2, C2), jnp.bfloat16),
            ],
        ),
        compiler_params=pltpu.CompilerParams(
            dimension_semantics=("parallel", "parallel"),
            vmem_limit_bytes=vmem_limit,
        ),
    )(x_b, halo, w1b, b1f, w2b, b2f)


def res_layer_nchw(x_nchw, w1, b1, w2, b2, *, tile_h=None):
    """PyTorch-facing wrapper: NCHW in / NCHW out."""
    x_nhwc = jnp.transpose(x_nchw, (0, 2, 3, 1))
    out = res_layer_nhwc(x_nhwc, w1, b1, w2, b2, tile_h=tile_h)
    return jnp.transpose(out, (0, 3, 1, 2))


def make_params(ni, key):
    """Deterministic synthetic params; BN (eval mode) folded into conv."""
    C, C2 = ni, ni // 2
    eps = 1e-5
    ks = jax.random.split(key, 10)
    # layer1: Conv2d(C, C2, 1, bias=False) + BN(C2)
    conv1_w = jax.random.normal(ks[0], (C2, C, 1, 1), jnp.float32) * 0.2
    g1 = 1.0 + 0.1 * jax.random.normal(ks[1], (C2,), jnp.float32)
    beta1 = 0.1 * jax.random.normal(ks[2], (C2,), jnp.float32)
    mean1 = 0.1 * jax.random.normal(ks[3], (C2,), jnp.float32)
    var1 = jax.random.uniform(ks[4], (C2,), jnp.float32, 0.5, 1.5)
    # layer2: Conv2d(C2, C, 3, bias=False, padding=1) + BN(C)
    conv2_w = jax.random.normal(ks[5], (C, C2, 3, 3), jnp.float32) * 0.2
    g2 = 1.0 + 0.1 * jax.random.normal(ks[6], (C,), jnp.float32)
    beta2 = 0.1 * jax.random.normal(ks[7], (C,), jnp.float32)
    mean2 = 0.1 * jax.random.normal(ks[8], (C,), jnp.float32)
    var2 = jax.random.uniform(ks[9], (C,), jnp.float32, 0.5, 1.5)

    s1 = g1 / jnp.sqrt(var1 + eps)
    w1 = (conv1_w[:, :, 0, 0] * s1[:, None]).T                           # (C, C2)
    b1 = (beta1 - mean1 * s1)[None, :]                                   # (1, C2)

    s2 = g2 / jnp.sqrt(var2 + eps)
    w2 = jnp.transpose(conv2_w * s2[:, None, None, None], (2, 3, 1, 0))  # HWIO
    b2 = (beta2 - mean2 * s2)[None, :]                                   # (1, C)
    return w1, b1, w2, b2


def ref_forward_nhwc(x_nhwc, w1, b1, w2, b2):
    """Pure-JAX f32 reference using lax convs (for correctness check)."""
    C, C2 = w1.shape
    dn = ("NHWC", "HWIO", "NHWC")
    h = jax.lax.conv_general_dilated(
        x_nhwc, w1.reshape(1, 1, C, C2), (1, 1), "SAME",
        dimension_numbers=dn) + b1.reshape(1, 1, 1, C2)
    h = jnp.where(h > 0, h, 0.1 * h)
    o = jax.lax.conv_general_dilated(
        h, w2, (1, 1), "SAME", dimension_numbers=dn) + b2.reshape(1, 1, 1, C)
    o = jnp.where(o > 0, o, 0.1 * o)
    return x_nhwc + o


if __name__ == "__main__":
    key = jax.random.PRNGKey(0)
    k_x, k_p = jax.random.split(key)

    N, ni, H, W = 2, 16, 16, 16                   # small shapes, ni even
    x_nchw = jax.random.normal(k_x, (N, ni, H, W), jnp.float32)
    w1, b1, w2, b2 = make_params(ni, k_p)

    ref = ref_forward_nhwc(jnp.transpose(x_nchw, (0, 2, 3, 1)), w1, b1, w2, b2)
    ref = jnp.transpose(ref, (0, 3, 1, 2))

    # auto tile (single row-tile) plus an explicit 2-tile run that exercises
    # the halo blocks and the image-boundary zeroing across tiles.
    for th in (None, 8):
        out = res_layer_nchw(x_nchw, w1, b1, w2, b2, tile_h=th)
        out = jax.block_until_ready(out)
        assert out.shape == x_nchw.shape
        assert jnp.allclose(out, ref, atol=5e-2, rtol=5e-2), \
            "mismatch vs reference"

    print("KERNEL_OK")
</pallas_src>

<mosaic_0001>
module attributes {stable_mosaic.version = 11 : i64} {
  func.func @res_layer_kernel(%arg0: i32, %arg1: i32, %arg2: memref<1x16x16x16xbf16, #tpu.memory_space<vmem>>, %arg3: memref<1x1x2x16x16xbf16, #tpu.memory_space<vmem>>, %arg4: memref<16x8xbf16, #tpu.memory_space<vmem>>, %arg5: memref<1x8xf32, #tpu.memory_space<vmem>>, %arg6: memref<72x16xbf16, #tpu.memory_space<vmem>>, %arg7: memref<1x16xf32, #tpu.memory_space<vmem>>, %arg8: memref<1x16x16x16xf32, #tpu.memory_space<vmem>>, %arg9: memref<18x18x8xbf16, #tpu.memory_space<vmem>>) attributes {dimension_semantics = [#tpu.dimension_semantics<parallel>, #tpu.dimension_semantics<parallel>], iteration_bounds = array<i64: 2, 1>, scalar_prefetch = 0 : i64, scratch_operands = 1 : i64, tpu.core_type = #tpu.core_type<tc>, window_params = [{transform_indices = @transform_0, window_bounds = array<i64: 1, 16, 16, 16>}, {transform_indices = @transform_1, window_bounds = array<i64: 1, 1, 2, 16, 16>}, {pipeline_mode = #tpu.pipeline_mode<synchronous>, transform_indices = @transform_2, window_bounds = array<i64: 16, 8>}, {pipeline_mode = #tpu.pipeline_mode<synchronous>, transform_indices = @transform_3, window_bounds = array<i64: 1, 8>}, {pipeline_mode = #tpu.pipeline_mode<synchronous>, transform_indices = @transform_4, window_bounds = array<i64: 72, 16>}, {pipeline_mode = #tpu.pipeline_mode<synchronous>, transform_indices = @transform_5, window_bounds = array<i64: 1, 16>}, {transform_indices = @transform_6, window_bounds = array<i64: 1, 16, 16, 16>}]} {
    %c0 = arith.constant 0 : index
    %c0_0 = arith.constant 0 : index
    %c0_1 = arith.constant 0 : index
    %c0_2 = arith.constant 0 : index
    %0 = vector.load %arg2[%c0, %c0_0, %c0_1, %c0_2] : memref<1x16x16x16xbf16, #tpu.memory_space<vmem>>, vector<1x16x16x16xbf16>
    %1 = vector.shape_cast %0 : vector<1x16x16x16xbf16> to vector<16x16x16xbf16>
    %c0_3 = arith.constant 0 : index
    %c0_4 = arith.constant 0 : index
    %c0_5 = arith.constant 0 : index
    %c0_6 = arith.constant 0 : index
    %c0_7 = arith.constant 0 : index
    %2 = vector.load %arg3[%c0_3, %c0_4, %c0_5, %c0_6, %c0_7] : memref<1x1x2x16x16xbf16, #tpu.memory_space<vmem>>, vector<1x1x2x16x16xbf16>
    %3 = vector.shape_cast %2 : vector<1x1x2x16x16xbf16> to vector<2x16x16xbf16>
    %c0_8 = arith.constant 0 : index
    %c0_9 = arith.constant 0 : index
    %4 = vector.load %arg4[%c0_8, %c0_9] : memref<16x8xbf16, #tpu.memory_space<vmem>>, vector<16x8xbf16>
    %5 = vector.shape_cast %1 : vector<16x16x16xbf16> to vector<256x16xbf16>
    %cst = arith.constant dense<0.000000e+00> : vector<256x8xf32>
    %6 = tpu.matmul %5, %4, %cst {dimension_numbers = #tpu.dot_dimension_numbers<[1], [0], [0], [1], [0, 0, 1, 1], [], []>} : vector<256x16xbf16>, vector<16x8xbf16>, vector<256x8xf32> -> vector<256x8xf32>
    %c0_10 = arith.constant 0 : index
    %c0_11 = arith.constant 0 : index
    %7 = vector.load %arg5[%c0_10, %c0_11] : memref<1x8xf32, #tpu.memory_space<vmem>>, vector<1x8xf32>
    %8 = vector.broadcast %7 : vector<1x8xf32> to vector<256x8xf32>
    %9 = arith.addf %6, %8 : vector<256x8xf32>
    %cst_12 = arith.constant 1.000000e-01 : f32
    %10 = vector.broadcast %cst_12 : f32 to vector<256x8xf32>
    %11 = arith.mulf %10, %9 : vector<256x8xf32>
    %12 = arith.maximumf %9, %11 : vector<256x8xf32>
    %13 = vector.shape_cast %3 : vector<2x16x16xbf16> to vector<32x16xbf16>
    %cst_13 = arith.constant dense<0.000000e+00> : vector<32x8xf32>
    %14 = tpu.matmul %13, %4, %cst_13 {dimension_numbers = #tpu.dot_dimension_numbers<[1], [0], [0], [1], [0, 0, 1, 1], [], []>} : vector<32x16xbf16>, vector<16x8xbf16>, vector<32x8xf32> -> vector<32x8xf32>
    %c0_14 = arith.constant 0 : index
    %c0_15 = arith.constant 0 : index
    %15 = vector.load %arg5[%c0_14, %c0_15] : memref<1x8xf32, #tpu.memory_space<vmem>>, vector<1x8xf32>
    %16 = vector.broadcast %15 : vector<1x8xf32> to vector<32x8xf32>
    %17 = arith.addf %14, %16 : vector<32x8xf32>
    %cst_16 = arith.constant 1.000000e-01 : f32
    %18 = vector.broadcast %cst_16 : f32 to vector<32x8xf32>
    %19 = arith.mulf %18, %17 : vector<32x8xf32>
    %20 = arith.maximumf %17, %19 : vector<32x8xf32>
    %cst_17 = arith.constant 0.000000e+00 : bf16
    %21 = vector.broadcast %cst_17 : bf16 to vector<18x1x8xbf16>
    %c0_18 = arith.constant 0 : index
    %c0_19 = arith.constant 0 : index
    %c0_20 = arith.constant 0 : index
    %22 = vector.load %arg9[%c0_18, %c0_19, %c0_20] : memref<18x18x8xbf16, #tpu.memory_space<vmem>>, vector<18x1x8xbf16>
    tpu.vector_store %arg9[%c0_18, %c0_19, %c0_20], %21 {strides = array<i32>} : memref<18x18x8xbf16, #tpu.memory_space<vmem>>, vector<18x1x8xbf16>,
    %c0_21 = arith.constant 0 : index
    %c17 = arith.constant 17 : index
    %c0_22 = arith.constant 0 : index
    %23 = vector.load %arg9[%c0_21, %c17, %c0_22] : memref<18x18x8xbf16, #tpu.memory_space<vmem>>, vector<18x1x8xbf16>
    tpu.vector_store %arg9[%c0_21, %c17, %c0_22], %21 {strides = array<i32>} : memref<18x18x8xbf16, #tpu.memory_space<vmem>>, vector<18x1x8xbf16>,
    %24 = arith.truncf %12 : vector<256x8xf32> to vector<256x8xbf16>
    %25 = vector.shape_cast %24 : vector<256x8xbf16> to vector<16x16x8xbf16>
    %c1 = arith.constant 1 : index
    %c1_23 = arith.constant 1 : index
    %c0_24 = arith.constant 0 : index
    %26 = vector.load %arg9[%c1, %c1_23, %c0_24] : memref<18x18x8xbf16, #tpu.memory_space<vmem>>, vector<16x16x8xbf16>
    tpu.vector_store %arg9[%c1, %c1_23, %c0_24], %25 {strides = array<i32>} : memref<18x18x8xbf16, #tpu.memory_space<vmem>>, vector<16x16x8xbf16>,
    %27 = arith.truncf %20 : vector<32x8xf32> to vector<32x8xbf16>
    %28 = vector.shape_cast %27 : vector<32x8xbf16> to vector<2x16x8xbf16>
    %29 = vector.extract_strided_slice %28 {offsets = [0, 0, 0], sizes = [1, 16, 8], strides = [1, 1, 1]} : vector<2x16x8xbf16> to vector<1x16x8xbf16>
    %c0_25 = arith.constant 0 : index
    %c1_26 = arith.constant 1 : index
    %c0_27 = arith.constant 0 : index
    %30 = vector.load %arg9[%c0_25, %c1_26, %c0_27] : memref<18x18x8xbf16, #tpu.memory_space<vmem>>, vector<1x16x8xbf16>
    tpu.vector_store %arg9[%c0_25, %c1_26, %c0_27], %29 {strides = array<i32>} : memref<18x18x8xbf16, #tpu.memory_space<vmem>>, vector<1x16x8xbf16>,
    %31 = vector.extract_strided_slice %28 {offsets = [1, 0, 0], sizes = [1, 16, 8], strides = [1, 1, 1]} : vector<2x16x8xbf16> to vector<1x16x8xbf16>
    %c17_28 = arith.constant 17 : index
    %c1_29 = arith.constant 1 : index
    %c0_30 = arith.constant 0 : index
    %32 = vector.load %arg9[%c17_28, %c1_29, %c0_30] : memref<18x18x8xbf16, #tpu.memory_space<vmem>>, vector<1x16x8xbf16>
    tpu.vector_store %arg9[%c17_28, %c1_29, %c0_30], %31 {strides = array<i32>} : memref<18x18x8xbf16, #tpu.memory_space<vmem>>, vector<1x16x8xbf16>,
    %cst_31 = arith.constant 0.000000e+00 : bf16
    %33 = vector.broadcast %cst_31 : bf16 to vector<1x16x8xbf16>
    %c0_i32 = arith.constant 0 : i32
    %34 = arith.cmpi eq, %arg1, %c0_i32 : i32
    %35 = arith.extui %34 : i1 to i32
    %c0_i32_32 = arith.constant 0 : i32
    %36 = arith.cmpi ne, %35, %c0_i32_32 : i32
    scf.if %36 {
      %c0_88 = arith.constant 0 : index
      %c1_89 = arith.constant 1 : index
      %c0_90 = arith.constant 0 : index
      %98 = vector.load %arg9[%c0_88, %c1_89, %c0_90] : memref<18x18x8xbf16, #tpu.memory_space<vmem>>, vector<1x16x8xbf16>
      tpu.vector_store %arg9[%c0_88, %c1_89, %c0_90], %33 {strides = array<i32>} : memref<18x18x8xbf16, #tpu.memory_space<vmem>>, vector<1x16x8xbf16>,
    } else {
    }
    %c0_i32_33 = arith.constant 0 : i32
    %37 = arith.cmpi eq, %arg1, %c0_i32_33 : i32
    %38 = arith.extui %37 : i1 to i32
    %c0_i32_34 = arith.constant 0 : i32
    %39 = arith.cmpi ne, %38, %c0_i32_34 : i32
    scf.if %39 {
      %c17_88 = arith.constant 17 : index
      %c1_89 = arith.constant 1 : index
      %c0_90 = arith.constant 0 : index
      %98 = vector.load %arg9[%c17_88, %c1_89, %c0_90] : memref<18x18x8xbf16, #tpu.memory_space<vmem>>, vector<1x16x8xbf16>
      tpu.vector_store %arg9[%c17_88, %c1_89, %c0_90], %33 {strides = array<i32>} : memref<18x18x8xbf16, #tpu.memory_space<vmem>>, vector<1x16x8xbf16>,
    } else {
    }
    %cst_35 = arith.constant 0.000000e+00 : f32
    %40 = vector.broadcast %cst_35 : f32 to vector<256x16xf32>
    %c0_36 = arith.constant 0 : index
    %c0_37 = arith.constant 0 : index
    %c0_38 = arith.constant 0 : index
    %41 = vector.load %arg9[%c0_36, %c0_37, %c0_38] : memref<18x18x8xbf16, #tpu.memory_space<vmem>>, vector<16x16x8xbf16>
    %42 = vector.shape_cast %41 : vector<16x16x8xbf16> to vector<256x8xbf16>
    %c0_39 = arith.constant 0 : index
    %c0_40 = arith.constant 0 : index
    %43 = vector.load %arg6[%c0_39, %c0_40] : memref<72x16xbf16, #tpu.memory_space<vmem>>, vector<8x16xbf16>
    %cst_41 = arith.constant dense<0.000000e+00> : vector<256x16xf32>
    %44 = tpu.matmul %42, %43, %cst_41 {dimension_numbers = #tpu.dot_dimension_numbers<[1], [0], [0], [1], [0, 0, 1, 1], [], []>} : vector<256x8xbf16>, vector<8x16xbf16>, vector<256x16xf32> -> vector<256x16xf32>
    %45 = arith.addf %40, %44 : vector<256x16xf32>
    %c0_42 = arith.constant 0 : index
    %c1_43 = arith.constant 1 : index
    %c0_44 = arith.constant 0 : index
    %46 = vector.load %arg9[%c0_42, %c1_43, %c0_44] : memref<18x18x8xbf16, #tpu.memory_space<vmem>>, vector<16x16x8xbf16>
    %47 = vector.shape_cast %46 : vector<16x16x8xbf16> to vector<256x8xbf16>
    %c8 = arith.constant 8 : index
    %c0_45 = arith.constant 0 : index
    %48 = vector.load %arg6[%c8, %c0_45] : memref<72x16xbf16, #tpu.memory_space<vmem>>, vector<8x16xbf16>
    %cst_46 = arith.constant dense<0.000000e+00> : vector<256x16xf32>
    %49 = tpu.matmul %47, %48, %cst_46 {dimension_numbers = #tpu.dot_dimension_numbers<[1], [0], [0], [1], [0, 0, 1, 1], [], []>} : vector<256x8xbf16>, vector<8x16xbf16>, vector<256x16xf32> -> vector<256x16xf32>
    %50 = arith.addf %45, %49 : vector<256x16xf32>
    %c0_47 = arith.constant 0 : index
    %c2 = arith.constant 2 : index
    %c0_48 = arith.constant 0 : index
    %51 = vector.load %arg9[%c0_47, %c2, %c0_48] : memref<18x18x8xbf16, #tpu.memory_space<vmem>>, vector<16x16x8xbf16>
    %52 = vector.shape_cast %51 : vector<16x16x8xbf16> to vector<256x8xbf16>
    %c16 = arith.constant 16 : index
    %c0_49 = arith.constant 0 : index
    %53 = vector.load %arg6[%c16, %c0_49] : memref<72x16xbf16, #tpu.memory_space<vmem>>, vector<8x16xbf16>
    %cst_50 = arith.constant dense<0.000000e+00> : vector<256x16xf32>
    %54 = tpu.matmul %52, %53, %cst_50 {dimension_numbers = #tpu.dot_dimension_numbers<[1], [0], [0], [1], [0, 0, 1, 1], [], []>} : vector<256x8xbf16>, vector<8x16xbf16>, vector<256x16xf32> -> vector<256x16xf32>
    %55 = arith.addf %50, %54 : vector<256x16xf32>
    %c1_51 = arith.constant 1 : index
    %c0_52 = arith.constant 0 : index
    %c0_53 = arith.constant 0 : index
    %56 = vector.load %arg9[%c1_51, %c0_52, %c0_53] : memref<18x18x8xbf16, #tpu.memory_space<vmem>>, vector<16x16x8xbf16>
    %57 = vector.shape_cast %56 : vector<16x16x8xbf16> to vector<256x8xbf16>
    %c24 = arith.constant 24 : index
    %c0_54 = arith.constant 0 : index
    %58 = vector.load %arg6[%c24, %c0_54] : memref<72x16xbf16, #tpu.memory_space<vmem>>, vector<8x16xbf16>
    %cst_55 = arith.constant dense<0.000000e+00> : vector<256x16xf32>
    %59 = tpu.matmul %57, %58, %cst_55 {dimension_numbers = #tpu.dot_dimension_numbers<[1], [0], [0], [1], [0, 0, 1, 1], [], []>} : vector<256x8xbf16>, vector<8x16xbf16>, vector<256x16xf32> -> vector<256x16xf32>
    %60 = arith.addf %55, %59 : vector<256x16xf32>
    %c1_56 = arith.constant 1 : index
    %c1_57 = arith.constant 1 : index
    %c0_58 = arith.constant 0 : index
    %61 = vector.load %arg9[%c1_56, %c1_57, %c0_58] : memref<18x18x8xbf16, #tpu.memory_space<vmem>>, vector<16x16x8xbf16>
    %62 = vector.shape_cast %61 : vector<16x16x8xbf16> to vector<256x8xbf16>
    %c32 = arith.constant 32 : index
    %c0_59 = arith.constant 0 : index
    %63 = vector.load %arg6[%c32, %c0_59] : memref<72x16xbf16, #tpu.memory_space<vmem>>, vector<8x16xbf16>
    %cst_60 = arith.constant dense<0.000000e+00> : vector<256x16xf32>
    %64 = tpu.matmul %62, %63, %cst_60 {dimension_numbers = #tpu.dot_dimension_numbers<[1], [0], [0], [1], [0, 0, 1, 1], [], []>} : vector<256x8xbf16>, vector<8x16xbf16>, vector<256x16xf32> -> vector<256x16xf32>
    %65 = arith.addf %60, %64 : vector<256x16xf32>
    %c1_61 = arith.constant 1 : index
    %c2_62 = arith.constant 2 : index
    %c0_63 = arith.constant 0 : index
    %66 = vector.load %arg9[%c1_61, %c2_62, %c0_63] : memref<18x18x8xbf16, #tpu.memory_space<vmem>>, vector<16x16x8xbf16>
    %67 = vector.shape_cast %66 : vector<16x16x8xbf16> to vector<256x8xbf16>
    %c40 = arith.constant 40 : index
    %c0_64 = arith.constant 0 : index
    %68 = vector.load %arg6[%c40, %c0_64] : memref<72x16xbf16, #tpu.memory_space<vmem>>, vector<8x16xbf16>
    %cst_65 = arith.constant dense<0.000000e+00> : vector<256x16xf32>
    %69 = tpu.matmul %67, %68, %cst_65 {dimension_numbers = #tpu.dot_dimension_numbers<[1], [0], [0], [1], [0, 0, 1, 1], [], []>} : vector<256x8xbf16>, vector<8x16xbf16>, vector<256x16xf32> -> vector<256x16xf32>
    %70 = arith.addf %65, %69 : vector<256x16xf32>
    %c2_66 = arith.constant 2 : index
    %c0_67 = arith.constant 0 : index
    %c0_68 = arith.constant 0 : index
    %71 = vector.load %arg9[%c2_66, %c0_67, %c0_68] : memref<18x18x8xbf16, #tpu.memory_space<vmem>>, vector<16x16x8xbf16>
    %72 = vector.shape_cast %71 : vector<16x16x8xbf16> to vector<256x8xbf16>
    %c48 = arith.constant 48 : index
    %c0_69 = arith.constant 0 : index
    %73 = vector.load %arg6[%c48, %c0_69] : memref<72x16xbf16, #tpu.memory_space<vmem>>, vector<8x16xbf16>
    %cst_70 = arith.constant dense<0.000000e+00> : vector<256x16xf32>
    %74 = tpu.matmul %72, %73, %cst_70 {dimension_numbers = #tpu.dot_dimension_numbers<[1], [0], [0], [1], [0, 0, 1, 1], [], []>} : vector<256x8xbf16>, vector<8x16xbf16>, vector<256x16xf32> -> vector<256x16xf32>
    %75 = arith.addf %70, %74 : vector<256x16xf32>
    %c2_71 = arith.constant 2 : index
    %c1_72 = arith.constant 1 : index
    %c0_73 = arith.constant 0 : index
    %76 = vector.load %arg9[%c2_71, %c1_72, %c0_73] : memref<18x18x8xbf16, #tpu.memory_space<vmem>>, vector<16x16x8xbf16>
    %77 = vector.shape_cast %76 : vector<16x16x8xbf16> to vector<256x8xbf16>
    %c56 = arith.constant 56 : index
    %c0_74 = arith.constant 0 : index
    %78 = vector.load %arg6[%c56, %c0_74] : memref<72x16xbf16, #tpu.memory_space<vmem>>, vector<8x16xbf16>
    %cst_75 = arith.constant dense<0.000000e+00> : vector<256x16xf32>
    %79 = tpu.matmul %77, %78, %cst_75 {dimension_numbers = #tpu.dot_dimension_numbers<[1], [0], [0], [1], [0, 0, 1, 1], [], []>} : vector<256x8xbf16>, vector<8x16xbf16>, vector<256x16xf32> -> vector<256x16xf32>
    %80 = arith.addf %75, %79 : vector<256x16xf32>
    %c2_76 = arith.constant 2 : index
    %c2_77 = arith.constant 2 : index
    %c0_78 = arith.constant 0 : index
    %81 = vector.load %arg9[%c2_76, %c2_77, %c0_78] : memref<18x18x8xbf16, #tpu.memory_space<vmem>>, vector<16x16x8xbf16>
    %82 = vector.shape_cast %81 : vector<16x16x8xbf16> to vector<256x8xbf16>
    %c64 = arith.constant 64 : index
    %c0_79 = arith.constant 0 : index
    %83 = vector.load %arg6[%c64, %c0_79] : memref<72x16xbf16, #tpu.memory_space<vmem>>, vector<8x16xbf16>
    %cst_80 = arith.constant dense<0.000000e+00> : vector<256x16xf32>
    %84 = tpu.matmul %82, %83, %cst_80 {dimension_numbers = #tpu.dot_dimension_numbers<[1], [0], [0], [1], [0, 0, 1, 1], [], []>} : vector<256x8xbf16>, vector<8x16xbf16>, vector<256x16xf32> -> vector<256x16xf32>
    %85 = arith.addf %80, %84 : vector<256x16xf32>
    %c0_81 = arith.constant 0 : index
    %c0_82 = arith.constant 0 : index
    %86 = vector.load %arg7[%c0_81, %c0_82] : memref<1x16xf32, #tpu.memory_space<vmem>>, vector<1x16xf32>
    %87 = vector.broadcast %86 : vector<1x16xf32> to vector<256x16xf32>
    %88 = arith.addf %85, %87 : vector<256x16xf32>
    %cst_83 = arith.constant 1.000000e-01 : f32
    %89 = vector.broadcast %cst_83 : f32 to vector<256x16xf32>
    %90 = arith.mulf %89, %88 : vector<256x16xf32>
    %91 = arith.maximumf %88, %90 : vector<256x16xf32>
    %92 = arith.extf %1 : vector<16x16x16xbf16> to vector<16x16x16xf32>
    %93 = vector.shape_cast %91 : vector<256x16xf32> to vector<16x16x16xf32>
    %94 = arith.addf %92, %93 : vector<16x16x16xf32>
    %c0_84 = arith.constant 0 : index
    %c0_85 = arith.constant 0 : index
    %c0_86 = arith.constant 0 : index
    %c0_87 = arith.constant 0 : index
    %95 = vector.load %arg8[%c0_84, %c0_85, %c0_86, %c0_87] : memref<1x16x16x16xf32, #tpu.memory_space<vmem>>, vector<1x16x16x16xf32>
    %96 = vector.shape_cast %95 : vector<1x16x16x16xf32> to vector<16x16x16xf32>
    %97 = vector.shape_cast %94 : vector<16x16x16xf32> to vector<1x16x16x16xf32>
    tpu.vector_store %arg8[%c0_84, %c0_85, %c0_86, %c0_87], %97 {strides = array<i32>} : memref<1x16x16x16xf32, #tpu.memory_space<vmem>>, vector<1x16x16x16xf32>,
    return
  }
  func.func @transform_0(%arg0: i32, %arg1: i32) -> (i32, i32, i32, i32) {
    %c0_i32 = arith.constant 0 : i32
    %c0_i32_0 = arith.constant 0 : i32
    %c0_i32_1 = arith.constant 0 : i32
    return %arg0, %arg1, %c0_i32, %c0_i32_0 : i32, i32, i32, i32
  }
  func.func @transform_1(%arg0: i32, %arg1: i32) -> (i32, i32, i32, i32, i32) {
    %c0_i32 = arith.constant 0 : i32
    %c0_i32_0 = arith.constant 0 : i32
    %c0_i32_1 = arith.constant 0 : i32
    %c0_i32_2 = arith.constant 0 : i32
    return %arg0, %arg1, %c0_i32, %c0_i32_0, %c0_i32_1 : i32, i32, i32, i32, i32
  }
  func.func @transform_2(%arg0: i32, %arg1: i32) -> (i32, i32) {
    %c0_i32 = arith.constant 0 : i32
    %c0_i32_0 = arith.constant 0 : i32
    %c0_i32_1 = arith.constant 0 : i32
    return %c0_i32, %c0_i32_0 : i32, i32
  }
  func.func @transform_3(%arg0: i32, %arg1: i32) -> (i32, i32) {
    %c0_i32 = arith.constant 0 : i32
    %c0_i32_0 = arith.constant 0 : i32
    %c0_i32_1 = arith.constant 0 : i32
    return %c0_i32, %c0_i32_0 : i32, i32
  }
  func.func @transform_4(%arg0: i32, %arg1: i32) -> (i32, i32) {
    %c0_i32 = arith.constant 0 : i32
    %c0_i32_0 = arith.constant 0 : i32
    %c0_i32_1 = arith.constant 0 : i32
    return %c0_i32, %c0_i32_0 : i32, i32
  }
  func.func @transform_5(%arg0: i32, %arg1: i32) -> (i32, i32) {
    %c0_i32 = arith.constant 0 : i32
    %c0_i32_0 = arith.constant 0 : i32
    %c0_i32_1 = arith.constant 0 : i32
    return %c0_i32, %c0_i32_0 : i32, i32
  }
  func.func @transform_6(%arg0: i32, %arg1: i32) -> (i32, i32, i32, i32) {
    %c0_i32 = arith.constant 0 : i32
    %c0_i32_0 = arith.constant 0 : i32
    %c0_i32_1 = arith.constant 0 : i32
    return %arg0, %arg1, %c0_i32, %c0_i32_0 : i32, i32, i32, i32
  }
}

</mosaic_0001>

<bundles_post_ra>
// kernel: tpu_custom_call.1
= control target key start
LH: loop header
LB: loop body
LE: loop exit
PB: predicated region body
PF: predicated region fallthrough
CT: control target
= control target key end

     0   :  { %11 = vsyncpa [#allocation4], 0  ;;  %s10782_s0 = inlined_call_operand.hbm [shape: bf16[2,16,16,16], index: 0, kind: input, shape index: {}]   ;;  %s10783_s1 = inlined_call_operand.vmem [shape: bf16[2,1,2,16,16], index: 1, kind: input, shape index: {}]   ;;  %s10784_s2 = inlined_call_operand.vmem [shape: bf16[16,8], index: 2, kind: input, shape index: {}]   ;;  %s10785_s3 = inlined_call_operand.vmem [shape: f32[1,8], index: 3, kind: input, shape index: {}]   ;;  %s10786_s4 = inlined_call_operand.vmem [shape: bf16[72,16], index: 4, kind: input, shape index: {}]   ;;  %s10787_s5 = inlined_call_operand.vmem [shape: f32[1,16], index: 5, kind: input, shape index: {}]   ;;  %s10788_s6 = inlined_call_operand.hbm [shape: f32[2,16,16,16], index: 6, kind: output, shape index: {}]  }
   0x1   :  { %13 = vsyncpa [#allocation4 + $0x1], 0 }
   0x2   :  { %14 = vsyncpa [#allocation5], 0 }
   0x3   :  { %16 = vsyncpa [#allocation5 + $0x1], 0  ;;  %s7731_s21 = smov 0   ;;  %s7733_s22 = smov 0  }
   0x4   :  { %s7735_s23 = smov 0   ;;  %s7737_s24 = smov 0  }
   0x5   :  { %s7739_s25 = smov 0   ;;  %s7741_s26 = smov 0  }
   0x6 LB: > { %s6410_s27 = sadd.s32 4294967295, %s7687_s26   ;;  %s6411_s28 = sadd.s32 4294967294, %s7687_s26   ;;  %s7687_s26 = sphi %s7741_s26, %s22_s26   ;;  %s7683_s25 = sphi %s7739_s25, %s11016_s25   ;;  %s7679_s24 = sphi %s7737_s24, %s11015_s24   ;;  %s7675_s23 = sphi %s7735_s23, %s11014_s23   ;;  %s7671_s22 = sphi %s7733_s22, %s11013_s22   ;;  %s7667_s21 = sphi %s7731_s21, %s11012_s21  }
   0x7   : > { %s34_s29 = sadd.s32 1, %s7683_s25  ;;  %s43_s30 = sadd.s32 1, %s7675_s23 }
   0x8   : > { %p36_p0 = scmp.ge.s32.totalorder %s34_s29, 2  ;;  %p50_p1 = scmp.ne.s32.totalorder %s7675_s23, %s7671_s22 }
   0x9   : > { %p51_p2 = scmp.eq.s32.totalorder %s7687_s26, 0  ;;  %p56_p3 = scmp.ne.s32.totalorder %s7671_s22, %s7667_s21 }
   0xa   : > { %s11018_s29 = smov (%p36_p0, %s34_s29), 0  ;;  %p57_p5 = scmp.eq.s32.totalorder %s6410_s27, 0 }
   0xb   : > { %p7772_p4 = por %p51_p2, %p50_p1  ;;  %s38_s8 = ssub.s32 %s7683_s25, %s11018_s29 }
   0xc   : > { %p194_p6 = scmp.eq.s32.totalorder %s6410_s27, 1  ;;  %p41_p7 = scmp.eq.s32.totalorder %s38_s8, 0 }
   0xd   : > { %p7778_p8 = por %p57_p5, %p56_p3  ;;  %p200_p10 = scmp.eq.s32.totalorder %s6411_s28, 1 }
   0xe   : > { %p7782_p9 = por %p194_p6, %p50_p1  ;;  %p7417_p13 = scmp.lt.s32.totalorder %s7687_s26, 2 }
   0xf   : > { %s7787_s11 = scalar_select %p41_p7, %s7675_s23, %s43_s30  }
  0x10   : > { %p7789_p11 = por %p200_p10, %p56_p3  ;;  %s232_s13 = sand.u32 1, %s7675_s23  }
  0x11   : > { %s6414_s14 = sshll.u32 %s232_s13, 7  ;;  %s6838_s15 = sshll.u32 %s7683_s25, 11 }
  0x12   : > { %s245_s18 = scalar_lea.hbm %s10782_s0, %s6838_s15  ;;  %s236_s19 = scalar_lea.vmem [#allocation3], %s6414_s14 }
  0x13   : > { %s246_s20 = sshll.u32 %s236_s19, 4  ;;  %p7802_p0 = pnand %p7417_p13, %p7772_p4  ;;  %s247_s20 = int_to_ptr.vmem [resolvable:$true] %s246_s20 }
  0x14   : > { %p6417_p1 = scmp.ge.s32.totalorder %s7687_s26, 1  ;;  %s233_s28 = scalar_lea.sflag [#allocation4], %s232_s13 }
  0x15   : > { %p7581_p2 = pneg %p7802_p0  ;;  %s7592_s30 = scalar_lea.vmem %s247_s20, 2048 }
  0x16   : > { %p7593_p3 = scmp.ne.s32.totalorder %s247_s20, %s7592_s30  ;;  %s7689_s8 = smov [#allocation3]  }
  0x17   : > { %s7597_s16 = sshll.u32 %s7689_s8, 4  ;;  %s7598_s16 = int_to_ptr.vmem [resolvable:$false] %s7597_s16 }
  0x18   : > { %p7595_p5 = pnand %p7593_p3, %p7581_p2  ;;  %s7599_s14 = scalar_lea.vmem %s7598_s16, 4096 }
  0x19   : > { %p7600_p7 = scmp.lt.s32.totalorder %s247_s20, %s7598_s16  ;;  %p7601_p10 = scmp.lt.s32.totalorder %s7599_s14, %s7592_s30 }
  0x1a   : > { %p7596_p6 = pneg %p7595_p5 }
  0x1b   : > { %p7602_p12 = por %p7601_p10, %p7600_p7 }
  0x1d   : > { %p7603_p4 = pnand %p7602_p12, %p7596_p6 }
  0x1f   : > { %7606 = shalt.err (!%p7603_p4)
}
  0x20   : > { %s7690_s7 = smov 64   ;;  %s7691_s13 = smov 4  }
  0x21   : > { %7412 = dma.hbm_to_vmem [thread:$0]  (!%p7802_p0), %s245_s18, 2048, %s247_s20, %s233_s28, %s7690_s7, %s7690_s7, %s7691_s13  }
  0x22   : > { %p266_p13 = scmp.lt.s32.totalorder %s7687_s26, 3 }
  0x24   : > { %p267_p2 = pnand %p6417_p1, %p266_p13 }
  0x26   : > { %270 = sbr.rel (%p267_p2) target bundleno = 911 (0x38f), region = 44 }
  0x2b   : > { %s7815_s15 = sand.u32 1, %s7671_s22  }
  0x2c   : > { %s6418_s17 = sshll.u32 %s7815_s15, 7  ;;  %s273_s19 = scalar_lea.sflag [#allocation4], %s7815_s15 }
  0x2d   : > { %s7819_s30 = scalar_lea.vmem [#allocation3], %s6418_s17 }
  0x2e   : > { %7658 = dma.done.wait (%p7778_p8), %s273_s19, 2048  }
  0x2f   : > { %7660 = vsyncadd (%p7778_p8), %s273_s19, 4294965248  ;;  %p315_p12 = scmp.lt.s32.totalorder %s7679_s24, 1  ;;  %v7472_v0 = vld [vmem:[%s10784_s2] sm:$0xff]   ;;  %v326_v1 = vld [vmem:[%s7819_s30] sm:$0xff]   ;;  %vm457_vm0 = vcmask 130048   ;;  %vm804_vm1 = vcmask 57344  }
  0x30   : > { %7050 = vmatprep.subr.bf16.mxu0 %v7472_v0  ;;  %7084 = vmatprep.subr.bf16.mxu1 %v7472_v0  ;;  %v328_v3 = vld [vmem:[%s7819_s30 + $0x8] sm:$0xff]   ;;  %v330_v5 = vld [vmem:[%s7819_s30 + $0x10] sm:$0xff]   ;;  %v332_v6 = vld [vmem:[%s7819_s30 + $0x18] sm:$0xff]   ;;  %vm805_vm2 = vsmask.f32 256  ;;  %vm2070_vm6 = vcmask 1043456  }
  0x31   : > { %s316_s18 = scalar_select %p315_p12, %s7679_s24, 1  ;;  %7051 = vmatpush3.bf16.msra.mxu0 %v7472_v0  ;;  %7085 = vmatpush3.bf16.msra.mxu1 %v7472_v0  ;;  %v334_v7 = vld [vmem:[%s7819_s30 + $0x20] sm:$0xff]   ;;  %v336_v8 = vld [vmem:[%s7819_s30 + $0x28] sm:$0xff]   ;;  %v338_v9 = vld [vmem:[%s7819_s30 + $0x30] sm:$0xff]   ;;  %vm861_vm4 = vsmask.f32 7938 }
  0x32   : > { %7052 = vmatprep.mubr.msk.bf16.mxu0 %vm457_vm0, %v326_v1  ;;  %v340_v10 = vld [vmem:[%s7819_s30 + $0x38] sm:$0xff]   ;;  %v342_v11 = vld [vmem:[%s7819_s30 + $0x40] sm:$0xff]   ;;  %v344_v12 = vld [vmem:[%s7819_s30 + $0x48] sm:$0xff]   ;;  %vm1336_vm7 = vcmask 60416   ;;  %vm1013_vm8 = vsmask.f32 4368 }
  0x33   : > { %s6839_s20 = sshll.u32 %s316_s18, 4  ;;  %v346_v13 = vld [vmem:[%s7819_s30 + $0x50] sm:$0xff]   ;;  %v348_v14 = vld [vmem:[%s7819_s30 + $0x58] sm:$0xff]   ;;  %v350_v15 = vld [vmem:[%s7819_s30 + $0x60] sm:$0xff]   ;;  %vm2021_vm11 = vcmask 64512   ;;  %vm2575_vm15 = vcmask 1042432  }
  0x34   : > { %s323_s8 = scalar_lea.vmem %s10783_s1, %s6839_s20  ;;  %7053 = vmatmul.mubr.msk.bf16.vlgmr.msra.gmra.mxu0 %vm457_vm0, %v328_v3  ;;  %v352_v16 = vld [vmem:[%s7819_s30 + $0x68] sm:$0xff]   ;;  %v354_v17 = vld [vmem:[%s7819_s30 + $0x70] sm:$0xff]   ;;  %v356_v18 = vld [vmem:[%s7819_s30 + $0x78] sm:$0xff]   ;;  %vm1585_vm12 = vsmask.f32 3328  ;;  %s6419_s13 = sshll.u32 %s7815_s15, 8 }
  0x35   : > { %v7474_v2 = vld [vmem:[%s323_s8] sm:$0xff]   ;;  %v7476_v4 = vld [vmem:[%s323_s8 + $0x8] sm:$0xff]   ;;  %7056 = vmatprep.mubr.msk.bf16.mxu0 %vm457_vm0, %v330_v5  ;;  %vm7869_vm3 = vmand %vm804_vm1, %vm805_vm2  ;;  %vm1586_vm13 = vsmask.f32 7440  ;;  %s10444_s17 = scalar_lea.vmem [#allocation6], %s6419_s13  ;;  %s7693_s8 = smov [#allocation6]  }
  0x36   : > { %7086 = vmatprep.mubr.msk.bf16.mxu1 %vm457_vm0, %v7474_v2  ;;  %v813_v20 = vld [vmem:[#allocation2 + $0x18] sm:$0x1]  ;;  %v858_v21 = vld [vmem:[#allocation2 + $0xcc] sm:$0x1]  ;;  %v807_v26 = vld [vmem:[#allocation2] sm:$0x1] }
  0x37   : > { %7087 = vmatmul.mubr.msk.bf16.vlgmr.msra.gmra.mxu1 %vm457_vm0, %v7476_v4  ;;  %v814_v22 = vsel %vm7869_vm3, 0, %v813_v20  ;;  %v859_v23 = vsel %vm7869_vm3, 0, %v858_v21  ;;  %v810_v24 = vld [vmem:[#allocation2 + $0xc] sm:$0x1]  ;;  %v808_v27 = vsel %vm7869_vm3, 0, %v807_v26  ;;  %vm7883_vm5 = vmand %vm804_vm1, %vm861_vm4  ;;  %vm2576_vm1 = vcmask 1046532  }
  0x38   : > { %815 = vst [vmem:[#allocation2 + $0x18] sm:$0x1] %v814_v22  ;;  %860 = vst [vmem:[#allocation2 + $0xcc] sm:$0x1] %v859_v23  ;;  %v811_v25 = vsel %vm7869_vm3, 0, %v810_v24  ;;  %s6302_s19 = sshll.u32 %s10444_s17, 4  ;;  %s10730_s19 = int_to_ptr.vmem [resolvable:$true] %s6302_s19 }
  0x39   : > { %812 = vst [vmem:[#allocation2 + $0xc] sm:$0x1] %v811_v25  ;;  %809 = vst [vmem:[#allocation2] sm:$0x1] %v808_v27  ;;  %v869_v29 = vld [vmem:[#allocation2 + $0x20] sm:$0x1] }
  0x3a   : > { %v870_v30 = vsel %vm7883_vm5, 0, %v869_v29  ;;  %v914_v31 = vld [vmem:[#allocation2 + $0xd4] sm:$0x1]  ;;  %v863_v35 = vld [vmem:[#allocation2 + $0x8] sm:$0x1]  ;;  %vm7987_vm9 = vmand %vm1336_vm7, %vm861_vm4  ;;  %s7607_s28 = scalar_lea.vmem %s10730_s19, 4096 }
  0x3b   : > { %871 = vst [vmem:[#allocation2 + $0x20] sm:$0x1] %v870_v30  ;;  %v915_v32 = vsel %vm7883_vm5, 0, %v914_v31  ;;  %v866_v33 = vld [vmem:[#allocation2 + $0x14] sm:$0x1]  ;;  %v864_v36 = vsel %vm7883_vm5, 0, %v863_v35  ;;  %vm8023_vm10 = vmor %vm805_vm2, %vm1013_vm8  ;;  %p7608_p8 = scmp.ne.s32.totalorder %s10730_s19, %s7607_s28 }
  0x3c   : > { %7057 = vmatmul.mubr.msk.bf16.gmra.mxu0 %vm457_vm0, %v332_v6  ;;  %916 = vst [vmem:[#allocation2 + $0xd4] sm:$0x1] %v915_v32  ;;  %v867_v34 = vsel %vm7883_vm5, 0, %v866_v33  ;;  %865 = vst [vmem:[#allocation2 + $0x8] sm:$0x1] %v864_v36  ;;  %s7611_s16 = sshll.u32 %s7693_s8, 4  ;;  %s7612_s16 = int_to_ptr.vmem [resolvable:$false] %s7611_s16 }
  0x3d   : > { %7060 = vmatprep.mubr.msk.bf16.mxu0 %vm457_vm0, %v334_v7  ;;  %868 = vst [vmem:[#allocation2 + $0x14] sm:$0x1] %v867_v34  ;;  %v819_v37 = vld [vmem:[#allocation2 + $0x30] sm:$0x1]  ;;  %v816_v39 = vld [vmem:[#allocation2 + $0x24] sm:$0x1]  ;;  %vm8191_vm14 = vmor %vm1585_vm12, %vm1586_vm13  ;;  %p7609_p0 = pnand %p7608_p8, %p7782_p9  ;;  %p7614_p3 = scmp.lt.s32.totalorder %s10730_s19, %s7612_s16 }
  0x3e   : > { %v820_v38 = vsel %vm7869_vm3, 0, %v819_v37  ;;  %v817_v40 = vsel %vm7869_vm3, 0, %v816_v39  ;;  %v875_v41 = vld [vmem:[#allocation2 + $0x38] sm:$0x1]  ;;  %v872_v43 = vld [vmem:[#allocation2 + $0x2c] sm:$0x1]  ;;  %vm8525_vm2 = vmor %vm2575_vm15, %vm2576_vm1 }
  0x3f   : > { %821 = vst [vmem:[#allocation2 + $0x30] sm:$0x1] %v820_v38  ;;  %818 = vst [vmem:[#allocation2 + $0x24] sm:$0x1] %v817_v40  ;;  %v876_v42 = vsel %vm7883_vm5, 0, %v875_v41  ;;  %v873_v44 = vsel %vm7883_vm5, 0, %v872_v43  ;;  %p7610_p1 = pneg %p7609_p0 }
  0x40   : > { %877 = vst [vmem:[#allocation2 + $0x38] sm:$0x1] %v876_v42  ;;  %874 = vst [vmem:[#allocation2 + $0x2c] sm:$0x1] %v873_v44  ;;  %v825_v45 = vld [vmem:[#allocation2 + $0x48] sm:$0x1] }
  0x41   : > { %v826_v46 = vsel %vm7869_vm3, 0, %v825_v45  ;;  %v822_v47 = vld [vmem:[#allocation2 + $0x3c] sm:$0x1]  ;;  %v881_v49 = vld [vmem:[#allocation2 + $0x50] sm:$0x1]  ;;  %s7613_s14 = scalar_lea.vmem %s7612_s16, 8192 }
  0x42   : > { %827 = vst [vmem:[#allocation2 + $0x48] sm:$0x1] %v826_v46  ;;  %v823_v48 = vsel %vm7869_vm3, 0, %v822_v47  ;;  %v882_v50 = vsel %vm7883_vm5, 0, %v881_v49  ;;  %v878_v51 = vld [vmem:[#allocation2 + $0x44] sm:$0x1]  ;;  %p7615_p5 = scmp.lt.s32.totalorder %s7613_s14, %s7607_s28 }
  0x43   : > { %824 = vst [vmem:[#allocation2 + $0x3c] sm:$0x1] %v823_v48  ;;  %883 = vst [vmem:[#allocation2 + $0x50] sm:$0x1] %v882_v50  ;;  %v879_v52 = vsel %vm7883_vm5, 0, %v878_v51 }
  0x44   : > { %7061 = vmatmul.mubr.msk.bf16.gmra.mxu0 %vm457_vm0, %v336_v8  ;;  %880 = vst [vmem:[#allocation2 + $0x44] sm:$0x1] %v879_v52  ;;  %v831_v53 = vld [vmem:[#allocation2 + $0x60] sm:$0x1]  ;;  %v828_v55 = vld [vmem:[#allocation2 + $0x54] sm:$0x1]  ;;  %p7616_p6 = por %p7615_p5, %p7614_p3 }
  0x45   : > { %7064 = vmatprep.mubr.msk.bf16.mxu0 %vm457_vm0, %v338_v9  ;;  %v832_v54 = vsel %vm7869_vm3, 0, %v831_v53  ;;  %v829_v56 = vsel %vm7869_vm3, 0, %v828_v55  ;;  %v887_v57 = vld [vmem:[#allocation2 + $0x68] sm:$0x1]  ;;  %v884_v59 = vld [vmem:[#allocation2 + $0x5c] sm:$0x1] }
  0x46   : > { %833 = vst [vmem:[#allocation2 + $0x60] sm:$0x1] %v832_v54  ;;  %830 = vst [vmem:[#allocation2 + $0x54] sm:$0x1] %v829_v56  ;;  %v888_v58 = vsel %vm7883_vm5, 0, %v887_v57  ;;  %v885_v60 = vsel %vm7883_vm5, 0, %v884_v59  ;;  %p7617_p7 = pnand %p7616_p6, %p7610_p1 }
  0x47   : > { %889 = vst [vmem:[#allocation2 + $0x68] sm:$0x1] %v888_v58  ;;  %v1568_v61 = vld [vmem:[%s10786_s4] sm:$0xf]  ;;  %886 = vst [vmem:[#allocation2 + $0x5c] sm:$0x1] %v885_v60 }
  0x48   : > { %7397 = vmatprep.subr.msk.bf16.mxu0 %vm2070_vm6, %v1568_v61  ;;  %v2364_v62 = vsel %vm2070_vm6, %v1568_v61, 0  ;;  %v837_v63 = vld [vmem:[#allocation2 + $0x78] sm:$0x1]  ;;  %v834_v1 = vld [vmem:[#allocation2 + $0x6c] sm:$0x1] }
  0x49   : > { %7125 = vmatpush3.bf16.msra.mxu0 %v2364_v62  ;;  %v838_v0 = vsel %vm7869_vm3, 0, %v837_v63  ;;  %v835_v2 = vsel %vm7869_vm3, 0, %v834_v1  ;;  %v893_v3 = vld [vmem:[#allocation2 + $0x80] sm:$0x1]  ;;  %v1972_v5 = vld [vmem:[%s10786_s4 + $0x4] sm:$0xf] }
  0x4a   : > { %839 = vst [vmem:[#allocation2 + $0x78] sm:$0x1] %v838_v0  ;;  %836 = vst [vmem:[#allocation2 + $0x6c] sm:$0x1] %v835_v2  ;;  %v894_v4 = vsel %vm7883_vm5, 0, %v893_v3  ;;  %7396 = vmatprep.subr.msk.bf16.mxu1 %vm2070_vm6, %v1972_v5  ;;  %v2072_v8 = vsel %vm2070_vm6, %v1972_v5, 0 }
  0x4b   : > { %895 = vst [vmem:[#allocation2 + $0x80] sm:$0x1] %v894_v4  ;;  %v890_v6 = vld [vmem:[#allocation2 + $0x74] sm:$0x1]  ;;  %7091 = vmatpush3.bf16.msra.mxu1 %v2072_v8  ;;  %v843_v9 = vld [vmem:[#allocation2 + $0x90] sm:$0x1] }
  0x4c   : > { %7065 = vmatmul.mubr.msk.bf16.gmra.mxu0 %vm457_vm0, %v340_v10  ;;  %v891_v7 = vsel %vm7883_vm5, 0, %v890_v6  ;;  %v844_v10 = vsel %vm7869_vm3, 0, %v843_v9  ;;  %v846_v21 = vld [vmem:[#allocation2 + $0x9c] sm:$0x1]  ;;  %v905_v23 = vld [vmem:[#allocation2 + $0xb0] sm:$0x1] }
  0x4d   : > { %7068 = vmatprep.mubr.msk.bf16.mxu0 %vm457_vm0, %v342_v11  ;;  %892 = vst [vmem:[#allocation2 + $0x74] sm:$0x1] %v891_v7  ;;  %845 = vst [vmem:[#allocation2 + $0x90] sm:$0x1] %v844_v10  ;;  %v840_v11 = vld [vmem:[#allocation2 + $0x84] sm:$0x1] }
  0x4e   : > { %v847_v22 = vsel %vm7869_vm3, 0, %v846_v21  ;;  %v906_v24 = vsel %vm7883_vm5, 0, %v905_v23  ;;  %v902_v25 = vld [vmem:[#allocation2 + $0xa4] sm:$0x1]  ;;  %v855_v27 = vld [vmem:[#allocation2 + $0xc0] sm:$0x1] }
  0x4f   : > { %848 = vst [vmem:[#allocation2 + $0x9c] sm:$0x1] %v847_v22  ;;  %907 = vst [vmem:[#allocation2 + $0xb0] sm:$0x1] %v906_v24  ;;  %v903_v26 = vsel %vm7883_vm5, 0, %v902_v25  ;;  %v856_v29 = vsel %vm7869_vm3, 0, %v855_v27 }
  0x50   : > { %904 = vst [vmem:[#allocation2 + $0xa4] sm:$0x1] %v903_v26  ;;  %857 = vst [vmem:[#allocation2 + $0xc0] sm:$0x1] %v856_v29  ;;  %v852_v30 = vld [vmem:[#allocation2 + $0xb4] sm:$0x1] }
  0x51   : > { %v7962_v31 = vld [vmem:[%s10785_s3] ss:$0 sm:$0xff]  ;;  %v853_v32 = vsel %vm7869_vm3, 0, %v852_v30  ;;  %v911_v35 = vld [vmem:[#allocation2 + $0xc8] sm:$0x1] }
  0x52   : > { %854 = vst [vmem:[#allocation2 + $0xb4] sm:$0x1] %v853_v32  ;;  %v912_v38 = vsel %vm7883_vm5, 0, %v911_v35  ;;  %v908_v39 = vld [vmem:[#allocation2 + $0xbc] sm:$0x1] }
  0x53   : > { %913 = vst [vmem:[#allocation2 + $0xc8] sm:$0x1] %v912_v38  ;;  %v909_v42 = vsel %vm7883_vm5, 0, %v908_v39  ;;  %v1346_v6 = vld [vmem:[#allocation2 + $0x18] sm:$0xf] }
  0x54   : > { %7069 = vmatmul.mubr.msk.bf16.gmra.mxu0 %vm457_vm0, %v344_v12  ;;  %v841_v12 = vsel %vm7869_vm3, 0, %v840_v11  ;;  %910 = vst [vmem:[#allocation2 + $0xbc] sm:$0x1] %v909_v42  ;;  %v1478_v38 = vld [vmem:[#allocation2] sm:$0xf] }
  0x55   : > { %7072 = vmatprep.mubr.msk.bf16.mxu0 %vm457_vm0, %v346_v13  ;;  %v899_v13 = vld [vmem:[#allocation2 + $0x98] sm:$0x1]  ;;  %842 = vst [vmem:[#allocation2 + $0x84] sm:$0x1] %v841_v12 }
  0x5c   : > { %7073 = vmatmul.mubr.msk.bf16.gmra.mxu0 %vm457_vm0, %v348_v14  ;;  %v896_v14 = vld [vmem:[#allocation2 + $0x8c] sm:$0x1] }
  0x5d   : > { %7076 = vmatprep.mubr.msk.bf16.mxu0 %vm457_vm0, %v350_v15  ;;  %v900_v15 = vsel %vm7883_vm5, 0, %v899_v13 }
  0x5e   : > { %901 = vst [vmem:[#allocation2 + $0x98] sm:$0x1] %v900_v15 }
  0x64   : > { %7077 = vmatmul.mubr.msk.bf16.gmra.mxu0 %vm457_vm0, %v352_v16  ;;  %v897_v16 = vsel %vm7883_vm5, 0, %v896_v14 }
  0x65   : > { %7080 = vmatprep.mubr.msk.bf16.mxu0 %vm457_vm0, %v354_v17  ;;  %898 = vst [vmem:[#allocation2 + $0x8c] sm:$0x1] %v897_v16  ;;  %v2690_v17 = vld [vmem:[%s10786_s4 + $0x8] sm:$0xf] }
  0x66   : > { %7398 = vmatprep.subr.msk.bf16.mxu1 %vm2070_vm6, %v2690_v17  ;;  %v7977_v56 = vsel %vm2070_vm6, %v2690_v17, 0  ;;  %v1511_v17 = vld [vmem:[#allocation2 + $0xcc] sm:$0xf] }
  0x6c   : > { %7081 = vmatmul.mubr.msk.bf16.gmra.mxu0 %vm457_vm0, %v356_v18  ;;  %v849_v18 = vld [vmem:[#allocation2 + $0xa8] sm:$0x1] }
  0x6d   : > { %v850_v20 = vsel %vm7869_vm3, 0, %v849_v18 }
  0x6e   : > { %851 = vst [vmem:[#allocation2 + $0xa8] sm:$0x1] %v850_v20 }
  0xf4   : > { %v7054_v33 = vpop.f32.mrf.mxu0 }
  0xf5   : > { %v549_v36 = vadd.f32 %v7054_v33, %v7962_v31 }
  0xf6   : > { %v540_v40 = vpop.f32.mrf.mxu0 }
  0xf7   : > { %v7088_v34 = vpop.f32.mrf.mxu1  ;;  %v669_v43 = vmul.f32 0.1, %v549_v36  ;;  %v541_v45 = vadd.f32 %v7962_v31, %v540_v40 }
  0xf8   : > { %v790_v37 = vadd.f32 %v7088_v34, %v7962_v31  ;;  %v7055_v47 = vpop.f32.mrf.mxu0 }
  0xf9   : > { %v781_v41 = vpop.f32.mrf.mxu1  ;;  %v701_v49 = vmax.f32 %v549_v36, %v669_v43  ;;  %v667_v51 = vmul.f32 0.1, %v541_v45  ;;  %v552_v53 = vadd.f32 %v7055_v47, %v7962_v31 }
  0xfa   : > { %v798_v44 = vmul.f32 0.1, %v790_v37  ;;  %v782_v46 = vadd.f32 %v7962_v31, %v781_v41  ;;  %v543_v28 = vpop.f32.mrf.mxu0 }
  0xfb   : > { %v7089_v48 = vpop.f32.mrf.mxu1  ;;  %v6842_v57 = vpack.c.bf16 %v701_v49, %v701_v49  ;;  %v699_v59 = vmax.f32 %v541_v45, %v667_v51  ;;  %v670_v61 = vmul.f32 0.1, %v552_v53  ;;  %v544_v63 = vadd.f32 %v7962_v31, %v543_v28 }
  0xfc   : > { %v802_v50 = vmax.f32 %v790_v37, %v798_v44  ;;  %v796_v52 = vmul.f32 0.1, %v782_v46  ;;  %v793_v54 = vadd.f32 %v7089_v48, %v7962_v31  ;;  %v7058_v1 = vpop.f32.mrf.mxu0  ;;  %v1338_v37 = vld [vmem:[#allocation2 + $0xc] sm:$0xf] }
  0xfd   : > { %v784_v55 = vpop.f32.mrf.mxu1  ;;  %v1033_v2 = vshrl.u32 %v6842_v57, 16  ;;  %v1036_v3 = vshll.u32 %v6842_v57, 16  ;;  %v6840_v7 = vpack.c.bf16 %v699_v59, %v699_v59  ;;  %v702_v9 = vmax.f32 %v552_v53, %v670_v61  ;;  %v1515_v61 = vld [vmem:[#allocation2 + $0xd4] sm:$0x1] }
  0xfe   : > { %v6874_v58 = vpack.c.bf16 %v802_v50, %v802_v50  ;;  %v800_v60 = vmax.f32 %v782_v46, %v796_v52  ;;  %v799_v62 = vmul.f32 0.1, %v793_v54  ;;  %v785_v0 = vadd.f32 %v7962_v31, %v784_v55  ;;  %v556_v11 = vpop.f32.mrf.mxu0  ;;  %v1350_v55 = vld [vmem:[#allocation2 + $0x20] sm:$0x1] }
  0xff   : > { %v7981_v12 = vrot.slane %v1033_v2, 7  ;;  %v668_v14 = vmul.f32 0.1, %v544_v63  ;;  %v1016_v18 = vshrl.u32 %v6840_v7, 16  ;;  %v1019_v20 = vshll.u32 %v6840_v7, 16 }
 0x100   : > { %v1491_v4 = vshrl.u32 %v6874_v58, 16  ;;  %v1494_v5 = vshll.u32 %v6874_v58, 16  ;;  %v6872_v8 = vpack.c.bf16 %v800_v60, %v800_v60  ;;  %v803_v10 = vmax.f32 %v793_v54, %v799_v62  ;;  %v7991_v23 = vpop.f32.mrf.mxu0 }
 0x101   : > { %v797_v15 = vmul.f32 0.1, %v785_v0  ;;  %v1038_v24 = vor.u32 %v1036_v3, %v7981_v12  ;;  %v1039_v25 = vrot.slane %v7981_v12, 4  ;;  %v7997_v29 = vrot.slane %v1016_v18, 7  ;;  %v1343_v18 = vld [vmem:[#allocation2 + $0x14] sm:$0x1] }
 0x102   : > { %v7983_v13 = vrot.slane %v1491_v4, 7  ;;  %v1459_v21 = vshrl.u32 %v6872_v8, 16  ;;  %v1462_v22 = vshll.u32 %v6872_v8, 16  ;;  %v6843_v32 = vpack.c.bf16 %v702_v9, %v702_v9  ;;  %v8001_v34 = vpop.f32.mrf.mxu0 }
 0x103   : > { %v6875_v33 = vpack.c.bf16 %v803_v10, %v803_v10  ;;  %v1347_v35 = vsel %vm7987_vm9, %v1038_v24, %v1346_v6  ;;  %v700_v39 = vmax.f32 %v544_v63, %v668_v14  ;;  %v801_v40 = vmax.f32 %v785_v0, %v797_v15 }
 0x104   : > { %v1496_v26 = vor.u32 %v1494_v5, %v7983_v13  ;;  %v1497_v27 = vrot.slane %v7983_v13, 4  ;;  %v7999_v30 = vrot.slane %v1459_v21, 7  ;;  %1348 = vst [vmem:[#allocation2 + $0x18] sm:$0xf] %v1347_v35  ;;  %v1021_v41 = vor.u32 %v1019_v20, %v7997_v29  ;;  %v8011_v45 = vpop.f32.mrf.mxu0 }
 0x105   : > { %v1022_v42 = vrot.slane %v7997_v29, 4  ;;  %v1041_v46 = vshrl.u32 %v6843_v32, 16  ;;  %v1044_v47 = vshll.u32 %v6843_v32, 16  ;;  %v1499_v48 = vshrl.u32 %v6875_v33, 16 }
 0x106   : > { %v1512_v36 = vsel %vm7987_vm9, %v1496_v26, %v1511_v17  ;;  %v1464_v43 = vor.u32 %v1462_v22, %v7999_v30  ;;  %v1465_v44 = vrot.slane %v7999_v30, 4  ;;  %v1502_v49 = vshll.u32 %v6875_v33, 16  ;;  %v8017_v54 = vpop.f32.mrf.mxu0 }
 0x107   : > { %1513 = vst [vmem:[#allocation2 + $0xcc] sm:$0xf] %v1512_v36  ;;  %v1339_v50 = vsel %vm7987_vm9, %v1021_v41, %v1338_v37  ;;  %v6841_v52 = vpack.c.bf16 %v700_v39, %v700_v39  ;;  %v6873_v53 = vpack.c.bf16 %v801_v40, %v801_v40  ;;  %v1043_v28 = vrot.slane %v1041_v46, 7 }
 0x108   : > { %v1479_v51 = vsel %vm7987_vm9, %v1464_v43, %v1478_v38  ;;  %1340 = vst [vmem:[#allocation2 + $0xc] sm:$0xf] %v1339_v50  ;;  %v1501_v57 = vrot.slane %v1499_v48, 7  ;;  %v565_v58 = vadd.f32 %v7058_v1, %v7962_v31  ;;  %v557_v59 = vadd.f32 %v7962_v31, %v556_v11  ;;  %v8027_v3 = vpop.f32.mrf.mxu0 }
 0x109   : > { %1480 = vst [vmem:[#allocation2] sm:$0xf] %v1479_v51  ;;  %v1024_v62 = vshrl.u32 %v6841_v52, 16  ;;  %v1027_v63 = vshll.u32 %v6841_v52, 16  ;;  %v1467_v0 = vshrl.u32 %v6873_v53, 16  ;;  %v1470_v2 = vshll.u32 %v6873_v53, 16 }
 0x10a   : > { %v1046_v4 = vor.u32 %v1044_v47, %v1043_v28  ;;  %v1048_v5 = vrot.slane %v1043_v28, 4  ;;  %v1504_v6 = vor.u32 %v1502_v49, %v1501_v57  ;;  %v1506_v7 = vrot.slane %v1501_v57, 4  ;;  %v575_v11 = vpop.f32.mrf.mxu0 }
 0x10b   : > { %v1026_v1 = vrot.slane %v1024_v62, 7  ;;  %v1469_v8 = vrot.slane %v1467_v0, 7  ;;  %v673_v9 = vmul.f32 0.1, %v565_v58  ;;  %v671_v10 = vmul.f32 0.1, %v557_v59 }
 0x10c   : > { %v1047_v13 = vsel %vm8023_vm10, %v1039_v25, %v1046_v4  ;;  %v1351_v14 = vsel %vm7869_vm3, %v1048_v5, %v1350_v55  ;;  %v1505_v15 = vsel %vm8023_vm10, %v1497_v27, %v1504_v6  ;;  %v1516_v17 = vsel %vm7869_vm3, %v1506_v7, %v1515_v61  ;;  %v1482_v25 = vld [vmem:[#allocation2 + $0x8] sm:$0x1]  ;;  %v8041_v26 = vpop.f32.mrf.mxu0  ;;  %v1360_v61 = vld [vmem:[#allocation2 + $0x30] sm:$0xf]  ;;  %v1353_v0 = vld [vmem:[#allocation2 + $0x24] sm:$0xf] }
 0x10d   : > { %1349 = vst.msk [vmem:[#allocation2 + $0x1c] sm:$0xf] %vm1336_vm7, %v1047_v13  ;;  %1352 = vst [vmem:[#allocation2 + $0x20] sm:$0x1] %v1351_v14  ;;  %v1029_v21 = vor.u32 %v1027_v63, %v1026_v1  ;;  %v1031_v22 = vrot.slane %v1026_v1, 4  ;;  %v1472_v24 = vor.u32 %v1470_v2, %v1469_v8  ;;  %v7692_v27 = vmov 0  }
 0x10e   : > { %v1529_v12 = vld [vmem:[#allocation2 + $0xcc] sm:$0xf]  ;;  %1514 = vst.msk [vmem:[#allocation2 + $0xd0] sm:$0xf] %vm1336_vm7, %v1505_v15  ;;  %1517 = vst [vmem:[#allocation2 + $0xd4] sm:$0x1] %v1516_v17  ;;  %v705_v30 = vmax.f32 %v565_v58, %v673_v9  ;;  %v703_v32 = vmax.f32 %v557_v59, %v671_v10  ;;  %v568_v33 = vadd.f32 %v7991_v23, %v7962_v31  ;;  %v8054_v40 = vpop.f32.mrf.mxu0 }
 0x10f   : > { %v1530_v20 = vsel %vm7987_vm9, 0, %v1529_v12  ;;  %1532 = vst.msk [vmem:[#allocation2 + $0xd0] sm:$0xf] %vm1336_vm7, %v7692_v27  ;;  %v1474_v29 = vrot.slane %v1469_v8, 4  ;;  %v1030_v36 = vsel %vm8023_vm10, %v1022_v42, %v1029_v21  ;;  %v1344_v37 = vsel %vm7869_vm3, %v1031_v22, %v1343_v18  ;;  %v1364_v17 = vld [vmem:[#allocation2 + $0x38] sm:$0x1] }
 0x110   : > { %1531 = vst [vmem:[#allocation2 + $0xcc] sm:$0xf] %v1530_v20  ;;  %v1522_v35 = vld [vmem:[#allocation2] sm:$0xf]  ;;  %v1473_v38 = vsel %vm8023_vm10, %v1465_v44, %v1472_v24  ;;  %v560_v39 = vadd.f32 %v7962_v31, %v8001_v34  ;;  %1342 = vst.msk [vmem:[#allocation2 + $0x10] sm:$0xf] %vm1336_vm7, %v1030_v36  ;;  %v6846_v42 = vpack.c.bf16 %v705_v30, %v705_v30  ;;  %v8067_v57 = vpop.f32.mrf.mxu0 }
 0x111   : > { %v1523_v41 = vsel %vm7987_vm9, 0, %v1522_v35  ;;  %1345 = vst [vmem:[#allocation2 + $0x14] sm:$0x1] %v1344_v37  ;;  %1481 = vst.msk [vmem:[#allocation2 + $0x4] sm:$0xf] %vm1336_vm7, %v1473_v38  ;;  %v1483_v23 = vsel %vm7869_vm3, %v1474_v29, %v1482_v25  ;;  %v6844_v43 = vpack.c.bf16 %v703_v32, %v703_v32  ;;  %v581_v46 = vadd.f32 %v8011_v45, %v7962_v31 }
 0x112   : > { %1524 = vst [vmem:[#allocation2] sm:$0xf] %v1523_v41  ;;  %1484 = vst [vmem:[#allocation2 + $0x8] sm:$0x1] %v1483_v23  ;;  %v674_v34 = vmul.f32 0.1, %v568_v33  ;;  %v573_v47 = vadd.f32 %v7962_v31, %v8017_v54  ;;  %v584_v45 = vadd.f32 %v8027_v3, %v7962_v31  ;;  %v576_v63 = vadd.f32 %v7962_v31, %v575_v11  ;;  %v591_v14 = vpop.f32.mrf.mxu0 }
 0x113   : > { %1525 = vst.msk [vmem:[#allocation2 + $0x4] sm:$0xf] %vm1336_vm7, %v7692_v27  ;;  %v672_v44 = vmul.f32 0.1, %v560_v39  ;;  %v1067_v48 = vshrl.u32 %v6846_v42, 16  ;;  %v1070_v49 = vshll.u32 %v6846_v42, 16 }
 0x114   : > { %v1050_v50 = vshrl.u32 %v6844_v43, 16  ;;  %v1053_v51 = vshll.u32 %v6844_v43, 16  ;;  %v706_v52 = vmax.f32 %v568_v33, %v674_v34  ;;  %v677_v28 = vmul.f32 0.1, %v581_v46  ;;  %v1357_v27 = vld [vmem:[#allocation2 + $0x2c] sm:$0x1] }
 0x115   : > { %v704_v53 = vmax.f32 %v560_v39, %v672_v44  ;;  %v675_v55 = vmul.f32 0.1, %v573_v47  ;;  %v1533_v58 = vld [vmem:[#allocation2 + $0xd4] sm:$0x1]  ;;  %v1069_v59 = vrot.slane %v1067_v48, 7  ;;  %v7070_v39 = vpop.f32.mrf.mxu0 }
 0x116   : > { %v1052_v62 = vrot.slane %v1050_v50, 7  ;;  %v1534_v54 = vsel %vm7869_vm3, 0, %v1533_v58  ;;  %v6847_v2 = vpack.c.bf16 %v706_v52, %v706_v52  ;;  %v709_v5 = vmax.f32 %v581_v46, %v677_v28  ;;  %v1374_v48 = vld [vmem:[#allocation2 + $0x48] sm:$0xf] }
 0x117   : > { %v6845_v4 = vpack.c.bf16 %v704_v53, %v704_v53  ;;  %1535 = vst [vmem:[#allocation2 + $0xd4] sm:$0x1] %v1534_v54  ;;  %v1072_v6 = vor.u32 %v1070_v49, %v1069_v59  ;;  %v1073_v7 = vrot.slane %v1069_v59, 4  ;;  %v707_v20 = vmax.f32 %v573_v47, %v675_v55  ;;  %v1367_v53 = vld [vmem:[#allocation2 + $0x3c] sm:$0xf] }
 0x118   : > { %v1055_v1 = vor.u32 %v1053_v51, %v1052_v62  ;;  %v1056_v8 = vrot.slane %v1052_v62, 4  ;;  %v1075_v9 = vshrl.u32 %v6847_v2, 16  ;;  %v1078_v10 = vshll.u32 %v6847_v2, 16 }
 0x119   : > { %v1058_v12 = vshrl.u32 %v6845_v4, 16  ;;  %v1061_v13 = vshll.u32 %v6845_v4, 16  ;;  %v1526_v3 = vld [vmem:[#allocation2 + $0x8] sm:$0x1]  ;;  %v1361_v11 = vsel %vm7987_vm9, %v1072_v6, %v1360_v61  ;;  %v6850_v18 = vpack.c.bf16 %v709_v5, %v709_v5  ;;  %v604_v61 = vpop.f32.mrf.mxu0 }
 0x11a   : > { %v1354_v15 = vsel %vm7987_vm9, %v1055_v1, %v1353_v0  ;;  %v1527_v21 = vsel %vm7869_vm3, 0, %v1526_v3  ;;  %1362 = vst [vmem:[#allocation2 + $0x30] sm:$0xf] %v1361_v11  ;;  %v1077_v22 = vrot.slane %v1075_v9, 7  ;;  %v678_v25 = vmul.f32 0.1, %v584_v45 }
 0x11b   : > { %1355 = vst [vmem:[#allocation2 + $0x24] sm:$0xf] %v1354_v15  ;;  %v1060_v24 = vrot.slane %v1058_v12, 7  ;;  %1528 = vst [vmem:[#allocation2 + $0x8] sm:$0x1] %v1527_v21  ;;  %v1101_v29 = vshrl.u32 %v6850_v18, 16  ;;  %v6848_v32 = vpack.c.bf16 %v707_v20, %v707_v20  ;;  %v597_v55 = vadd.f32 %v8041_v26, %v7962_v31  ;;  %v7071_v12 = vpop.f32.mrf.mxu0 }
 0x11c   : > { %v1104_v30 = vshll.u32 %v6850_v18, 16  ;;  %v676_v33 = vmul.f32 0.1, %v576_v63  ;;  %v1080_v35 = vor.u32 %v1078_v10, %v1077_v22  ;;  %v1082_v36 = vrot.slane %v1077_v22, 4 }
 0x11d   : > { %v1063_v37 = vor.u32 %v1061_v13, %v1060_v24  ;;  %v1065_v38 = vrot.slane %v1060_v24, 4  ;;  %v1103_v41 = vrot.slane %v1101_v29, 7  ;;  %v1084_v23 = vshrl.u32 %v6848_v32, 16  ;;  %v3015_v13 = vld [vmem:[%s10786_s4 + $0xc] sm:$0xf] }
 0x11e   : > { %v1087_v42 = vshll.u32 %v6848_v32, 16  ;;  %v710_v43 = vmax.f32 %v584_v45, %v678_v25  ;;  %v1081_v34 = vsel %vm8023_vm10, %v1073_v7, %v1080_v35  ;;  %v1365_v44 = vsel %vm7869_vm3, %v1082_v36, %v1364_v17  ;;  %7399 = vmatprep.subr.msk.bf16.mxu0 %vm2070_vm6, %v3015_v13  ;;  %v1371_v25 = vld [vmem:[#allocation2 + $0x44] sm:$0x1]  ;;  %v8111_v36 = vpop.f32.mrf.mxu0  ;;  %v8133_v13 = vld [vmem:[#allocation2 + $0x10] sm:$0xf] }
 0x11f   : > { %v1064_v46 = vsel %vm8023_vm10, %v1056_v8, %v1063_v37  ;;  %v1358_v47 = vsel %vm7869_vm3, %v1065_v38, %v1357_v27  ;;  %1363 = vst.msk [vmem:[#allocation2 + $0x34] sm:$0xf] %vm1336_vm7, %v1081_v34  ;;  %1366 = vst [vmem:[#allocation2 + $0x38] sm:$0x1] %v1365_v44  ;;  %v1106_v49 = vor.u32 %v1104_v30, %v1103_v41  ;;  %v1107_v50 = vrot.slane %v1103_v41, 4 }
 0x120   : > { %1356 = vst.msk [vmem:[#allocation2 + $0x28] sm:$0xf] %vm1336_vm7, %v1064_v46  ;;  %1359 = vst [vmem:[#allocation2 + $0x2c] sm:$0x1] %v1358_v47  ;;  %v1086_v51 = vrot.slane %v1084_v23, 7  ;;  %v6851_v52 = vpack.c.bf16 %v710_v43, %v710_v43  ;;  %v708_v28 = vmax.f32 %v576_v63, %v676_v33  ;;  %v589_v58 = vadd.f32 %v7962_v31, %v8054_v40 }
 0x121   : > { %v600_v59 = vadd.f32 %v8067_v57, %v7962_v31  ;;  %v1375_v62 = vsel %vm7987_vm9, %v1106_v49, %v1374_v48  ;;  %v681_v63 = vmul.f32 0.1, %v597_v55  ;;  %v1378_v40 = vld [vmem:[#allocation2 + $0x50] sm:$0x1]  ;;  %v592_v57 = vadd.f32 %v7962_v31, %v591_v14  ;;  %v1388_v34 = vld [vmem:[#allocation2 + $0x60] sm:$0xf] }
 0x122   : > { %v1089_v45 = vor.u32 %v1087_v42, %v1086_v51  ;;  %v1090_v54 = vrot.slane %v1086_v51, 4  ;;  %v1109_v0 = vshrl.u32 %v6851_v52, 16  ;;  %1376 = vst [vmem:[#allocation2 + $0x48] sm:$0xf] %v1375_v62  ;;  %v1112_v2 = vshll.u32 %v6851_v52, 16 }
 0x123   : > { %v6849_v4 = vpack.c.bf16 %v708_v28, %v708_v28  ;;  %v679_v5 = vmul.f32 0.1, %v589_v58  ;;  %v682_v7 = vmul.f32 0.1, %v600_v59  ;;  %v713_v9 = vmax.f32 %v597_v55, %v681_v63  ;;  %v1381_v47 = vld [vmem:[#allocation2 + $0x54] sm:$0xf] }
 0x124   : > { %v1368_v26 = vsel %vm7987_vm9, %v1089_v45, %v1367_v53  ;;  %v1111_v6 = vrot.slane %v1109_v0, 7  ;;  %v680_v17 = vmul.f32 0.1, %v592_v57  ;;  %v613_v14 = vadd.f32 %v7070_v39, %v7962_v31  ;;  %v1392_v53 = vld [vmem:[#allocation2 + $0x68] sm:$0x1] }
 0x125   : > { %1369 = vst [vmem:[#allocation2 + $0x3c] sm:$0xf] %v1368_v26  ;;  %v1092_v1 = vshrl.u32 %v6849_v4, 16  ;;  %v1095_v8 = vshll.u32 %v6849_v4, 16  ;;  %v711_v10 = vmax.f32 %v589_v58, %v679_v5  ;;  %v714_v15 = vmax.f32 %v600_v59, %v682_v7  ;;  %v8119_v58 = vpop.f32.mrf.mxu0  ;;  %v1536_v0 = vld [vmem:[#allocation2] sm:$0xf] }
 0x126   : > { %v1114_v3 = vor.u32 %v1112_v2, %v1111_v6  ;;  %v1116_v11 = vrot.slane %v1111_v6, 4  ;;  %v6854_v20 = vpack.c.bf16 %v713_v9, %v713_v9  ;;  %v712_v29 = vmax.f32 %v592_v57, %v680_v17  ;;  %v1385_v7 = vld [vmem:[#allocation2 + $0x5c] sm:$0x1] }
 0x127   : > { %v1094_v18 = vrot.slane %v1092_v1, 7  ;;  %v6852_v21 = vpack.c.bf16 %v711_v10, %v711_v10  ;;  %v6855_v27 = vpack.c.bf16 %v714_v15, %v714_v15  ;;  %v685_v49 = vmul.f32 0.1, %v613_v14 }
 0x128   : > { %v1115_v22 = vsel %vm8023_vm10, %v1107_v50, %v1114_v3  ;;  %v1379_v24 = vsel %vm7869_vm3, %v1116_v11, %v1378_v40  ;;  %v1135_v33 = vshrl.u32 %v6854_v20, 16  ;;  %v1138_v35 = vshll.u32 %v6854_v20, 16  ;;  %v620_v3 = vpop.f32.mrf.mxu0 }
 0x129   : > { %1377 = vst.msk [vmem:[#allocation2 + $0x4c] sm:$0xf] %vm1336_vm7, %v1115_v22  ;;  %1380 = vst [vmem:[#allocation2 + $0x50] sm:$0x1] %v1379_v24  ;;  %v1097_v30 = vor.u32 %v1095_v8, %v1094_v18  ;;  %v1099_v32 = vrot.slane %v1094_v18, 4  ;;  %v1118_v37 = vshrl.u32 %v6852_v21, 16  ;;  %v6853_v44 = vpack.c.bf16 %v712_v29, %v712_v29 }
 0x12a   : > { %v1121_v38 = vshll.u32 %v6852_v21, 16  ;;  %v1143_v39 = vshrl.u32 %v6855_v27, 16  ;;  %v1146_v41 = vshll.u32 %v6855_v27, 16  ;;  %v1137_v43 = vrot.slane %v1135_v33, 7  ;;  %v1540_v22 = vld [vmem:[#allocation2 + $0x18] sm:$0xf] }
 0x12b   : > { %v1098_v23 = vsel %vm8023_vm10, %v1090_v54, %v1097_v30  ;;  %v1372_v42 = vsel %vm7869_vm3, %v1099_v32, %v1371_v25  ;;  %v1120_v46 = vrot.slane %v1118_v37, 7  ;;  %v605_v50 = vadd.f32 %v7962_v31, %v604_v61  ;;  %v8123_v61 = vld [vmem:[#allocation2 + $0x4] sm:$0xf]  ;;  %v8145_v30 = vld [vmem:[#allocation2 + $0xc] sm:$0xf] }
 0x12c   : > { %1370 = vst.msk [vmem:[#allocation2 + $0x40] sm:$0xf] %vm1336_vm7, %v1098_v23  ;;  %1373 = vst [vmem:[#allocation2 + $0x44] sm:$0x1] %v1372_v42  ;;  %v1145_v48 = vrot.slane %v1143_v39, 7  ;;  %v1140_v51 = vor.u32 %v1138_v35, %v1137_v43  ;;  %v1141_v52 = vrot.slane %v1137_v43, 4  ;;  %v717_v63 = vmax.f32 %v613_v14, %v685_v49 }
 0x12d   : > { %v1126_v28 = vshrl.u32 %v6853_v44, 16  ;;  %v1129_v55 = vshll.u32 %v6853_v44, 16  ;;  %v1123_v59 = vor.u32 %v1121_v38, %v1120_v46  ;;  %v1124_v62 = vrot.slane %v1120_v46, 4  ;;  %v1402_v33 = vld [vmem:[#allocation2 + $0x78] sm:$0xf] }
 0x12e   : > { %v1148_v45 = vor.u32 %v1146_v41, %v1145_v48  ;;  %v1150_v54 = vrot.slane %v1145_v48, 4  ;;  %v1389_v2 = vsel %vm7987_vm9, %v1140_v51, %v1388_v34  ;;  %v683_v5 = vmul.f32 0.1, %v605_v50  ;;  %v8152_v39 = vld [vmem:[#allocation2 + $0x1c] sm:$0xf]  ;;  %v7075_v41 = vpop.f32.mrf.mxu0 }
 0x12f   : > { %v1128_v4 = vrot.slane %v1126_v28, 7  ;;  %1390 = vst [vmem:[#allocation2 + $0x60] sm:$0xf] %v1389_v2  ;;  %v1382_v26 = vsel %vm7987_vm9, %v1123_v59, %v1381_v47  ;;  %v616_v57 = vadd.f32 %v7071_v12, %v7962_v31  ;;  %v6858_v9 = vpack.c.bf16 %v717_v63, %v717_v63 }
 0x130   : > { %v1149_v6 = vsel %vm8023_vm10, %v1141_v52, %v1148_v45  ;;  %v1393_v40 = vsel %vm7869_vm3, %v1150_v54, %v1392_v53  ;;  %1383 = vst [vmem:[#allocation2 + $0x54] sm:$0xf] %v1382_v26  ;;  %v715_v10 = vmax.f32 %v605_v50, %v683_v5  ;;  %v1589_v15 = vshrl.u32 %v1536_v0, 16  ;;  %v1395_v53 = vld [vmem:[#allocation2 + $0x6c] sm:$0xf] }
 0x131   : > { %1391 = vst.msk [vmem:[#allocation2 + $0x64] sm:$0xf] %vm1336_vm7, %v1149_v6  ;;  %1394 = vst [vmem:[#allocation2 + $0x68] sm:$0x1] %v1393_v40  ;;  %v1131_v1 = vor.u32 %v1129_v55, %v1128_v4  ;;  %v1133_v8 = vrot.slane %v1128_v4, 4  ;;  %v1592_v17 = vshll.u32 %v1536_v0, 16  ;;  %v6528_v35 = vcombine.low %v1536_v0, %v8123_v61 }
 0x132   : > { %v686_v11 = vmul.f32 0.1, %v616_v57  ;;  %v1602_v18 = vshrl.u32 %v8123_v61, 16  ;;  %v1169_v21 = vshrl.u32 %v6858_v9, 16  ;;  %v1172_v14 = vshll.u32 %v6858_v9, 16 }
 0x133   : > { %v1132_v20 = vsel %vm8023_vm10, %v1124_v62, %v1131_v1  ;;  %v1386_v12 = vsel %vm7869_vm3, %v1133_v8, %v1385_v7  ;;  %v6856_v24 = vpack.c.bf16 %v715_v10, %v715_v10  ;;  %v8141_v27 = vrot.slane %v1589_v15, 4  ;;  %7126 = vmatprep.mubr.msk.bf16.mxu0 %vm2021_vm11, %v6528_v35  ;;  %v623_v62 = vpop.f32.mrf.mxu0  ;;  %v1406_v4 = vld [vmem:[#allocation2 + $0x80] sm:$0x1] }
 0x134   : > { %1384 = vst.msk [vmem:[#allocation2 + $0x58] sm:$0xf] %vm1336_vm7, %v1132_v20  ;;  %1387 = vst [vmem:[#allocation2 + $0x5c] sm:$0x1] %v1386_v12  ;;  %v718_v25 = vmax.f32 %v616_v57, %v686_v11  ;;  %v8143_v29 = vrot.slane %v1592_v17, 5  ;;  %v1171_v32 = vrot.slane %v1169_v21, 7  ;;  %v608_v37 = vadd.f32 %v7962_v31, %v8111_v36 }
 0x135   : > { %v6529_v38 = vcombine.low %v8145_v30, %v8133_v13  ;;  %v1152_v23 = vshrl.u32 %v6856_v24, 16  ;;  %v1155_v42 = vshll.u32 %v6856_v24, 16  ;;  %v1637_v34 = vshrl.u32 %v1540_v22, 16 }
 0x136   : > { %v6859_v43 = vpack.c.bf16 %v718_v25, %v718_v25  ;;  %v1174_v44 = vor.u32 %v1172_v14, %v1171_v32  ;;  %v1175_v46 = vrot.slane %v1171_v32, 4  ;;  %v684_v47 = vmul.f32 0.1, %v608_v37  ;;  %v1399_v14 = vld [vmem:[#allocation2 + $0x74] sm:$0x1] }
 0x137   : > { %v1640_v48 = vshll.u32 %v1540_v22, 16  ;;  %v1154_v49 = vrot.slane %v1152_v23, 7  ;;  %7127 = vmatmul.mubr.msk.bf16.vlgmr.msra.gmra.mxu0 %vm2021_vm11, %v6529_v38  ;;  %v8156_v36 = vrot.slane %v1637_v34, 4  ;;  %v1650_v59 = vshrl.u32 %v8152_v39, 16 }
 0x138   : > { %v1177_v50 = vshrl.u32 %v6859_v43, 16  ;;  %v1180_v51 = vshll.u32 %v6859_v43, 16  ;;  %v1403_v52 = vsel %vm7987_vm9, %v1174_v44, %v1402_v33  ;;  %v716_v28 = vmax.f32 %v608_v37, %v684_v47 }
 0x139   : > { %v8160_v55 = vrot.slane %v1640_v48, 5  ;;  %1404 = vst [vmem:[#allocation2 + $0x78] sm:$0xf] %v1403_v52  ;;  %v1157_v45 = vor.u32 %v1155_v42, %v1154_v49  ;;  %v1158_v54 = vrot.slane %v1154_v49, 4  ;;  %v6530_v2 = vcombine.low %v1540_v22, %v8152_v39 }
 0x13a   : > { %v1179_v0 = vrot.slane %v1177_v50, 7  ;;  %v6857_v63 = vpack.c.bf16 %v716_v28, %v716_v28  ;;  %v629_v5 = vadd.f32 %v8119_v58, %v7962_v31  ;;  %v621_v26 = vadd.f32 %v7962_v31, %v620_v3 }
 0x13b   : > { %v632_v6 = vadd.f32 %v7075_v41, %v7962_v31  ;;  %v1396_v40 = vsel %vm7987_vm9, %v1157_v45, %v1395_v53  ;;  %7130 = vmatprep.mubr.msk.bf16.mxu0 %vm2021_vm11, %v6530_v2  ;;  %v624_v1 = vadd.f32 %v7962_v31, %v623_v62  ;;  %v1595_v31 = vor.u32 %v8143_v29, %v8141_v27 }
 0x13c   : > { %v1182_v7 = vor.u32 %v1180_v51, %v1179_v0  ;;  %v1184_v57 = vrot.slane %v1179_v0, 4  ;;  %1397 = vst [vmem:[#allocation2 + $0x6c] sm:$0xf] %v1396_v40  ;;  %v1160_v8 = vshrl.u32 %v6857_v63, 16  ;;  %v1163_v9 = vshll.u32 %v6857_v63, 16 }
 0x13d   : > { %v689_v10 = vmul.f32 0.1, %v629_v5  ;;  %v687_v11 = vmul.f32 0.1, %v621_v26  ;;  %v690_v15 = vmul.f32 0.1, %v632_v6 }
 0x13e   : > { %v1183_v58 = vsel %vm8023_vm10, %v1175_v46, %v1182_v7  ;;  %v1407_v3 = vsel %vm7869_vm3, %v1184_v57, %v1406_v4  ;;  %v688_v17 = vmul.f32 0.1, %v624_v1  ;;  %v1162_v20 = vrot.slane %v1160_v8, 7  ;;  %v1569_v46 = vld [vmem:[#allocation2 + $0x8] sm:$0x1] }
 0x13f   : > { %1405 = vst.msk [vmem:[#allocation2 + $0x7c] sm:$0xf] %vm1336_vm7, %v1183_v58  ;;  %1408 = vst [vmem:[#allocation2 + $0x80] sm:$0x1] %v1407_v3  ;;  %v721_v12 = vmax.f32 %v629_v5, %v689_v10  ;;  %v719_v21 = vmax.f32 %v621_v26, %v687_v11  ;;  %v722_v22 = vmax.f32 %v632_v6, %v690_v15  ;;  %v1598_v25 = vshll.u32 %v8123_v61, 16  ;;  %v7078_v10 = vpop.f32.mrf.mxu0 }
 0x140   : > { %v720_v24 = vmax.f32 %v624_v1, %v688_v17  ;;  %v1604_v32 = vrot.slane %v1602_v18, 4  ;;  %v1165_v33 = vor.u32 %v1163_v9, %v1162_v20  ;;  %v1167_v35 = vrot.slane %v1162_v20, 4  ;;  %v1416_v61 = vld [vmem:[#allocation2 + $0x90] sm:$0xf]  ;;  %v1542_v51 = vld [vmem:[#allocation2 + $0x24] sm:$0xf] }
 0x141   : > { %v6862_v37 = vpack.c.bf16 %v721_v12, %v721_v12  ;;  %v6860_v38 = vpack.c.bf16 %v719_v21, %v719_v21  ;;  %v6863_v41 = vpack.c.bf16 %v722_v22, %v722_v22  ;;  %v8182_v42 = vrot.slane %v1595_v31, 4  ;;  %v1420_v26 = vld [vmem:[#allocation2 + $0x98] sm:$0x1]  ;;  %v1413_v9 = vld [vmem:[#allocation2 + $0x8c] sm:$0x1] }
 0x142   : > { %v6861_v23 = vpack.c.bf16 %v720_v24, %v720_v24  ;;  %v1600_v43 = vrot.slane %v1598_v25, 5  ;;  %v1166_v27 = vsel %vm8023_vm10, %v1158_v54, %v1165_v33  ;;  %v1400_v29 = vsel %vm7869_vm3, %v1167_v35, %v1399_v14  ;;  %v1409_v54 = vld [vmem:[#allocation2 + $0x84] sm:$0xf]  ;;  %v8200_v17 = vld [vmem:[#allocation2 + $0x28] sm:$0xf] }
 0x143   : > { %v1203_v34 = vshrl.u32 %v6862_v37, 16  ;;  %v1206_v44 = vshll.u32 %v6862_v37, 16  ;;  %1398 = vst.msk [vmem:[#allocation2 + $0x70] sm:$0xf] %vm1336_vm7, %v1166_v27  ;;  %1401 = vst [vmem:[#allocation2 + $0x74] sm:$0x1] %v1400_v29  ;;  %v6531_v37 = vcombine.low %v1542_v51, %v8200_v17 }
 0x144   : > { %v1186_v18 = vshrl.u32 %v6860_v38, 16  ;;  %v1189_v47 = vshll.u32 %v6860_v38, 16  ;;  %v1211_v48 = vshrl.u32 %v6863_v41, 16  ;;  %v1214_v49 = vshll.u32 %v6863_v41, 16  ;;  %v1544_v41 = vld [vmem:[#allocation2 + $0x30] sm:$0xf] }
 0x145   : > { %v1205_v52 = vrot.slane %v1203_v34, 7  ;;  %v1194_v53 = vshrl.u32 %v6861_v23, 16  ;;  %v1197_v28 = vshll.u32 %v6861_v23, 16  ;;  %v1601_v62 = vsel %vm8191_vm14, %v8182_v42, %v1600_v43  ;;  %v636_v23 = vpop.f32.mrf.mxu0  ;;  %v8227_v34 = vld [vmem:[#allocation2 + $0x34] sm:$0xf]  ;;  %7131 = vmatmul.mubr.msk.bf16.gmra.mxu0 %vm2021_vm11, %v6531_v37 }
 0x146   : > { %v1188_v45 = vrot.slane %v1186_v18, 7  ;;  %v1213_v0 = vrot.slane %v1211_v48, 7  ;;  %v1605_v2 = vor.u32 %v1604_v32, %v1600_v43  ;;  %v1608_v4 = vshll.u32 %v1569_v46, 16  ;;  %v8215_v32 = vld [vmem:[#allocation2 + $0x14] sm:$0x1] }
 0x147   : > { %v1208_v63 = vor.u32 %v1206_v44, %v1205_v52  ;;  %v1209_v5 = vrot.slane %v1205_v52, 4  ;;  %v1196_v6 = vrot.slane %v1194_v53, 7  ;;  %v1661_v40 = vshrl.u32 %v1542_v51, 16 }
 0x148   : > { %v1191_v7 = vor.u32 %v1189_v47, %v1188_v45  ;;  %v1192_v57 = vrot.slane %v1188_v45, 4  ;;  %v1216_v1 = vor.u32 %v1214_v49, %v1213_v0  ;;  %v1218_v8 = vrot.slane %v1213_v0, 4  ;;  %v7079_v45 = vpop.f32.mrf.mxu0 }
 0x149   : > { %v1417_v11 = vsel %vm7987_vm9, %v1208_v63, %v1416_v61  ;;  %v1199_v58 = vor.u32 %v1197_v28, %v1196_v6  ;;  %v1201_v3 = vrot.slane %v1196_v6, 4  ;;  %v1606_v15 = vrot.slane %v1605_v2, 4  ;;  %v8245_v2 = vld [vmem:[%s10785_s3] ss:$0 sm:$0xff] }
 0x14a   : > { %1418 = vst [vmem:[#allocation2 + $0x90] sm:$0xf] %v1417_v11  ;;  %v1410_v20 = vsel %vm7987_vm9, %v1191_v7, %v1409_v54  ;;  %v1217_v12 = vsel %vm8023_vm10, %v1209_v5, %v1216_v1  ;;  %v1421_v21 = vsel %vm7869_vm3, %v1218_v8, %v1420_v26  ;;  %v1610_v31 = vrot.slane %v1608_v4, 5  ;;  %v8381_v19 = vld [vmem:[#allocation2 + $0x70] sm:$0xf] }
 0x14b   : > { %1411 = vst [vmem:[#allocation2 + $0x84] sm:$0xf] %v1410_v20  ;;  %1419 = vst.msk [vmem:[#allocation2 + $0x94] sm:$0xf] %vm1336_vm7, %v1217_v12  ;;  %v1200_v14 = vsel %vm8023_vm10, %v1192_v57, %v1199_v58  ;;  %v1414_v22 = vsel %vm7869_vm3, %v1201_v3, %v1413_v9  ;;  %v8213_v24 = vrot.slane %v1661_v40, 4  ;;  %v1664_v25 = vshll.u32 %v1542_v51, 16  ;;  %v639_v58 = vpop.f32.mrf.mxu0 }
 0x14c   : > { %1422 = vst [vmem:[#allocation2 + $0x98] sm:$0x1] %v1421_v21  ;;  %1412 = vst.msk [vmem:[#allocation2 + $0x88] sm:$0xf] %vm1336_vm7, %v1200_v14  ;;  %v1611_v33 = vsel %vm8191_vm14, %v1606_v15, %v1610_v31  ;;  %v1674_v35 = vshrl.u32 %v8200_v17, 16  ;;  %v1613_v38 = vshrl.u32 %v8145_v30, 16  ;;  %v645_v4 = vadd.f32 %v8245_v2, %v7078_v10 }
 0x14d   : > { %1415 = vst [vmem:[#allocation2 + $0x8c] sm:$0x1] %v1414_v22  ;;  %v6496_v42 = vcombine.low %v1601_v62, %v1611_v33  ;;  %v8223_v43 = vrot.slane %v1664_v25, 5  ;;  %v1616_v27 = vshll.u32 %v8145_v30, 16  ;;  %v1622_v29 = vshll.u32 %v8133_v13, 16 }
 0x14e   : > { %v1615_v44 = vrot.slane %v1613_v38, 4  ;;  %v1626_v46 = vshrl.u32 %v8133_v13, 16  ;;  %v1632_v61 = vshll.u32 %v8215_v32, 16  ;;  %v2590_v18 = vrot.slane %v8215_v32, 5  ;;  %v8234_v30 = vld [vmem:[#allocation2 + $0x20] sm:$0x1] }
 0x14f   : > { %7092 = vmatprep.mubr.msk.bf16.mxu1 %vm2021_vm11, %v6496_v42  ;;  %v1618_v47 = vrot.slane %v1616_v27, 5  ;;  %v1624_v48 = vrot.slane %v1622_v29, 5  ;;  %v1685_v49 = vshrl.u32 %v1544_v41, 16  ;;  %v1688_v51 = vshll.u32 %v1544_v41, 16  ;;  %v2533_v32 = vld [vmem:[#allocation2 + $0x48] sm:$0xe] }
 0x150   : > { %v1628_v52 = vrot.slane %v1626_v46, 4  ;;  %v1634_v53 = vrot.slane %v1632_v61, 5  ;;  %v1698_v28 = vshrl.u32 %v8227_v34, 16  ;;  %v6532_v62 = vcombine.low %v1544_v41, %v8227_v34  ;;  %v8270_v46 = vld [vmem:[#allocation2 + $0x40] sm:$0xf] }
 0x151   : > { %v1619_v13 = vor.u32 %v1618_v47, %v1615_v44  ;;  %v8238_v54 = vrot.slane %v1685_v49, 4  ;;  %v8240_v0 = vrot.slane %v1688_v51, 5  ;;  %v1643_v5 = vor.u32 %v8160_v55, %v8156_v36  ;;  %v7082_v51 = vpop.f32.mrf.mxu0 }
 0x152   : > { %v1629_v63 = vor.u32 %v1628_v52, %v1624_v48  ;;  %7134 = vmatprep.mubr.msk.bf16.mxu0 %vm2021_vm11, %v6532_v62  ;;  %v1646_v26 = vshll.u32 %v8152_v39, 16  ;;  %v1652_v6 = vrot.slane %v1650_v59, 4  ;;  %v693_v7 = vmul.f32 0.1, %v645_v4  ;;  %v1546_v39 = vld [vmem:[#allocation2 + $0x3c] sm:$0xf] }
 0x153   : > { %v1620_v40 = vrot.slane %v1619_v13, 4  ;;  %v1656_v57 = vshll.u32 %v8234_v30, 16  ;;  %v637_v1 = vadd.f32 %v8245_v2, %v636_v23  ;;  %v1644_v9 = vrot.slane %v1643_v5, 4  ;;  %v8267_v23 = vld [vmem:[%s10786_s4 + $0x10] sm:$0xf] }
 0x154   : > { %v1630_v8 = vrot.slane %v1629_v63, 4  ;;  %v1648_v10 = vrot.slane %v1646_v26, 5  ;;  %v648_v11 = vadd.f32 %v8245_v2, %v7079_v45  ;;  %v725_v55 = vmax.f32 %v645_v4, %v693_v7  ;;  %v1430_v13 = vld [vmem:[#allocation2 + $0xa8] sm:$0xf]  ;;  %v1423_v7 = vld [vmem:[#allocation2 + $0x9c] sm:$0xf] }
 0x155   : > { %v1625_v36 = vsel %vm8191_vm14, %v1620_v40, %v1624_v48  ;;  %v1658_v3 = vrot.slane %v1656_v57, 5  ;;  %v691_v15 = vmul.f32 0.1, %v637_v1  ;;  %v640_v25 = vadd.f32 %v8245_v2, %v639_v58  ;;  %v1434_v57 = vld [vmem:[#allocation2 + $0xb0] sm:$0x1] }
 0x156   : > { %v1635_v59 = vsel %vm8191_vm14, %v1630_v8, %v1634_v53  ;;  %v1649_v20 = vsel %vm8191_vm14, %v1644_v9, %v1648_v10  ;;  %v1653_v12 = vor.u32 %v1652_v6, %v1648_v10  ;;  %v694_v21 = vmul.f32 0.1, %v648_v11  ;;  %v8284_v10 = vld [vmem:[#allocation2 + $0x2c] sm:$0x1] }
 0x157   : > { %v6497_v31 = vcombine.low %v1625_v36, %v1635_v59  ;;  %v6866_v14 = vpack.c.bf16 %v725_v55, %v725_v55  ;;  %v723_v22 = vmax.f32 %v637_v1, %v691_v15  ;;  %v1709_v38 = vshrl.u32 %v1546_v39, 16  ;;  %v1548_v36 = vld [vmem:[#allocation2 + $0x48] sm:$0xf]  ;;  %v652_v55 = vpop.f32.mrf.mxu0 }
 0x158   : > { %v1654_v33 = vrot.slane %v1653_v12, 4  ;;  %v726_v37 = vmax.f32 %v648_v11, %v694_v21  ;;  %v1712_v41 = vshll.u32 %v1546_v39, 16  ;;  %v692_v44 = vmul.f32 0.1, %v640_v25 }
 0x159   : > { %7093 = vmatmul.mubr.msk.bf16.vlgmr.msra.gmra.mxu1 %vm2021_vm11, %v6497_v31  ;;  %v1237_v42 = vshrl.u32 %v6866_v14, 16  ;;  %v1240_v27 = vshll.u32 %v6866_v14, 16  ;;  %v6864_v29 = vpack.c.bf16 %v723_v22, %v723_v22  ;;  %v8275_v48 = vrot.slane %v1709_v38, 4  ;;  %v7083_v38 = vpop.f32.mrf.mxu0 }
 0x15a   : > { %7159 = vmatpush3.bf16.msra.mxu1 %v7977_v56  ;;  %v1659_v61 = vsel %vm8191_vm14, %v1654_v33, %v1658_v3  ;;  %v6867_v47 = vpack.c.bf16 %v726_v37, %v726_v37  ;;  %v8277_v49 = vrot.slane %v1712_v41, 5  ;;  %v724_v56 = vmax.f32 %v640_v25, %v692_v44  ;;  %v1427_v41 = vld [vmem:[#allocation2 + $0xa4] sm:$0x1] }
 0x15b   : > { %v1239_v52 = vrot.slane %v1237_v42, 7  ;;  %v6498_v53 = vcombine.low %v1649_v20, %v1659_v61  ;;  %v1220_v62 = vshrl.u32 %v6864_v29, 16  ;;  %v1223_v45 = vshll.u32 %v6864_v29, 16  ;;  %7400 = vmatprep.subr.msk.bf16.mxu1 %vm2070_vm6, %v8267_v23  ;;  %v8294_v20 = vld [vmem:[#allocation2 + $0x4c] sm:$0xf] }
 0x15c   : > { %v1245_v4 = vshrl.u32 %v6867_v47, 16  ;;  %v1248_v63 = vshll.u32 %v6867_v47, 16  ;;  %v1722_v5 = vshrl.u32 %v8270_v46, 16  ;;  %v6533_v1 = vcombine.low %v1546_v39, %v8270_v46  ;;  %v8306_v61 = vld [vmem:[#allocation2 + $0x38] sm:$0x1] }
 0x15d   : > { %v1242_v26 = vor.u32 %v1240_v27, %v1239_v52  ;;  %v1243_v6 = vrot.slane %v1239_v52, 4  ;;  %7096 = vmatprep.mubr.msk.bf16.mxu1 %vm2021_vm11, %v6498_v53  ;;  %v1222_v40 = vrot.slane %v1220_v62, 7  ;;  %v6865_v9 = vpack.c.bf16 %v724_v56, %v724_v56 }
 0x15e   : > { %v1247_v8 = vrot.slane %v1245_v4, 7  ;;  %v1667_v11 = vor.u32 %v8223_v43, %v8213_v24  ;;  %v1670_v58 = vshll.u32 %v8200_v17, 16  ;;  %7135 = vmatmul.mubr.msk.bf16.gmra.mxu0 %vm2021_vm11, %v6533_v1  ;;  %v1676_v39 = vrot.slane %v1674_v35, 4 }
 0x15f   : > { %v1431_v3 = vsel %vm7987_vm9, %v1242_v26, %v1430_v13  ;;  %v1225_v15 = vor.u32 %v1223_v45, %v1222_v40  ;;  %v1226_v59 = vrot.slane %v1222_v40, 4  ;;  %v1228_v24 = vshrl.u32 %v6865_v9, 16 }
 0x160   : > { %1432 = vst [vmem:[#allocation2 + $0xa8] sm:$0xf] %v1431_v3  ;;  %v1250_v12 = vor.u32 %v1248_v63, %v1247_v8  ;;  %v1252_v21 = vrot.slane %v1247_v8, 4  ;;  %v1231_v43 = vshll.u32 %v6865_v9, 16  ;;  %v1668_v14 = vrot.slane %v1667_v11, 4 }
 0x161   : > { %v1424_v31 = vsel %vm7987_vm9, %v1225_v15, %v1423_v7  ;;  %v1672_v22 = vrot.slane %v1670_v58, 5  ;;  %v1680_v25 = vshll.u32 %v8284_v10, 16  ;;  %v1230_v35 = vrot.slane %v1228_v24, 7  ;;  %v655_v7 = vpop.f32.mrf.mxu0  ;;  %v1550_v9 = vld [vmem:[#allocation2 + $0x54] sm:$0xf] }
 0x162   : > { %1425 = vst [vmem:[#allocation2 + $0x9c] sm:$0xf] %v1424_v31  ;;  %v1251_v33 = vsel %vm8023_vm10, %v1243_v6, %v1250_v12  ;;  %v1435_v17 = vsel %vm7869_vm3, %v1252_v21, %v1434_v57  ;;  %v1733_v37 = vshrl.u32 %v1548_v36, 16  ;;  %v1736_v44 = vshll.u32 %v1548_v36, 16 }
 0x163   : > { %1433 = vst.msk [vmem:[#allocation2 + $0xac] sm:$0xf] %vm1336_vm7, %v1251_v33  ;;  %1436 = vst [vmem:[#allocation2 + $0xb0] sm:$0x1] %v1435_v17  ;;  %v1673_v42 = vsel %vm8191_vm14, %v1668_v14, %v1672_v22  ;;  %v1677_v27 = vor.u32 %v1676_v39, %v1672_v22  ;;  %v1682_v29 = vrot.slane %v1680_v25, 5  ;;  %v1233_v47 = vor.u32 %v1231_v43, %v1230_v35 }
 0x164   : > { %v1235_v52 = vrot.slane %v1230_v35, 4  ;;  %v8308_v53 = vrot.slane %v1733_v37, 4  ;;  %v1746_v62 = vshrl.u32 %v8294_v20, 16  ;;  %v8311_v13 = vrot.slane %v1736_v44, 5  ;;  %v8332_v39 = vld [vmem:[#allocation2 + $0x58] sm:$0xf] }
 0x165   : > { %v1678_v45 = vrot.slane %v1677_v27, 4  ;;  %v6534_v4 = vcombine.low %v1548_v36, %v8294_v20  ;;  %v661_v63 = vadd.f32 %v8245_v2, %v7082_v51  ;;  %v1234_v56 = vsel %vm8023_vm10, %v1226_v59, %v1233_v47 }
 0x166   : > { %v1428_v26 = vsel %vm7869_vm3, %v1235_v52, %v1427_v41  ;;  %v1691_v6 = vor.u32 %v8240_v0, %v8238_v54  ;;  %v1694_v40 = vshll.u32 %v8227_v34, 16  ;;  %1426 = vst.msk [vmem:[#allocation2 + $0xa0] sm:$0xf] %vm1336_vm7, %v1234_v56  ;;  %v1700_v1 = vrot.slane %v1698_v28, 4 }
 0x167   : > { %1429 = vst [vmem:[#allocation2 + $0xa4] sm:$0x1] %v1428_v26  ;;  %v1683_v57 = vsel %vm8191_vm14, %v1678_v45, %v1682_v29  ;;  %7138 = vmatprep.mubr.msk.bf16.mxu0 %vm2021_vm11, %v6534_v4  ;;  %v697_v51 = vmul.f32 0.1, %v661_v63  ;;  %v1704_v8 = vshll.u32 %v8306_v61, 16  ;;  %v653_v58 = vadd.f32 %v8245_v2, %v652_v55 }
 0x168   : > { %v6499_v11 = vcombine.low %v1673_v42, %v1683_v57  ;;  %v1692_v54 = vrot.slane %v1691_v6, 4  ;;  %v1696_v0 = vrot.slane %v1694_v40, 5  ;;  %v664_v15 = vadd.f32 %v8245_v2, %v7083_v38  ;;  %v1444_v45 = vld [vmem:[#allocation2 + $0xc0] sm:$0xf] }
 0x169   : > { %v729_v36 = vmax.f32 %v661_v63, %v697_v51  ;;  %v1706_v3 = vrot.slane %v1704_v8, 5  ;;  %v656_v59 = vadd.f32 %v8245_v2, %v655_v7  ;;  %v695_v12 = vmul.f32 0.1, %v653_v58  ;;  %v8350_v51 = vld [vmem:[#allocation2 + $0x44] sm:$0x1] }
 0x16a   : > { %7097 = vmatmul.mubr.msk.bf16.gmra.mxu1 %vm2021_vm11, %v6499_v11  ;;  %v1697_v34 = vsel %vm8191_vm14, %v1692_v54, %v1696_v0  ;;  %v1701_v28 = vor.u32 %v1700_v1, %v1696_v0  ;;  %v1757_v21 = vshrl.u32 %v1550_v9, 16  ;;  %v698_v43 = vmul.f32 0.1, %v664_v15  ;;  %v1437_v8 = vld [vmem:[#allocation2 + $0xb4] sm:$0xf] }
 0x16b   : > { %v6870_v24 = vpack.c.bf16 %v729_v36, %v729_v36  ;;  %v696_v31 = vmul.f32 0.1, %v656_v59  ;;  %v1760_v55 = vshll.u32 %v1550_v9, 16  ;;  %v727_v22 = vmax.f32 %v653_v58, %v695_v12 }
 0x16c   : > { %v1702_v14 = vrot.slane %v1701_v28, 4  ;;  %v8337_v25 = vrot.slane %v1757_v21, 4  ;;  %v1770_v2 = vshrl.u32 %v8332_v39, 16  ;;  %v730_v35 = vmax.f32 %v664_v15, %v698_v43  ;;  %v1552_v28 = vld [vmem:[#allocation2 + $0x60] sm:$0xf] }
 0x16d   : > { %v1271_v33 = vshrl.u32 %v6870_v24, 16  ;;  %v1274_v17 = vshll.u32 %v6870_v24, 16  ;;  %v728_v37 = vmax.f32 %v656_v59, %v696_v31  ;;  %v6868_v41 = vpack.c.bf16 %v727_v22, %v727_v22  ;;  %v1441_v24 = vld [vmem:[#allocation2 + $0xbc] sm:$0x1] }
 0x16e   : > { %v1707_v38 = vsel %vm8191_vm14, %v1702_v14, %v1706_v3  ;;  %v8342_v42 = vrot.slane %v1760_v55, 5  ;;  %v6535_v27 = vcombine.low %v1550_v9, %v8332_v39  ;;  %v6871_v47 = vpack.c.bf16 %v730_v35, %v730_v35  ;;  %v8359_v55 = vld [vmem:[#allocation2 + $0x64] sm:$0xf] }
 0x16f   : > { %v1273_v29 = vrot.slane %v1271_v33, 7  ;;  %v6500_v44 = vcombine.low %v1697_v34, %v1707_v38  ;;  %v6869_v52 = vpack.c.bf16 %v728_v37, %v728_v37  ;;  %v1254_v4 = vshrl.u32 %v6868_v41, 16 }
 0x170   : > { %v1257_v63 = vshll.u32 %v6868_v41, 16  ;;  %7139 = vmatmul.mubr.msk.bf16.gmra.mxu0 %vm2021_vm11, %v6535_v27  ;;  %v1715_v56 = vor.u32 %v8277_v49, %v8275_v48  ;;  %v1718_v26 = vshll.u32 %v8270_v46, 16  ;;  %v1279_v7 = vshrl.u32 %v6871_v47, 16  ;;  %v1448_v48 = vld [vmem:[#allocation2 + $0xc8] sm:$0x1] }
 0x171   : > { %v1276_v6 = vor.u32 %v1274_v17, %v1273_v29  ;;  %v1277_v40 = vrot.slane %v1273_v29, 4  ;;  %7100 = vmatprep.mubr.msk.bf16.mxu1 %vm2021_vm11, %v6500_v44  ;;  %v1282_v57 = vshll.u32 %v6871_v47, 16  ;;  %v1256_v1 = vrot.slane %v1254_v4, 7  ;;  %v8373_v44 = vld [vmem:[#allocation2 + $0x50] sm:$0x1] }
 0x172   : > { %v1262_v9 = vshrl.u32 %v6869_v52, 16  ;;  %v1265_v11 = vshll.u32 %v6869_v52, 16  ;;  %v1716_v54 = vrot.slane %v1715_v56, 4  ;;  %v1281_v58 = vrot.slane %v1279_v7, 7  ;;  %v1554_v47 = vld [vmem:[#allocation2 + $0x6c] sm:$0xf] }
 0x173   : > { %v1445_v0 = vsel %vm7987_vm9, %v1276_v6, %v1444_v45  ;;  %v1720_v49 = vrot.slane %v1718_v26, 5  ;;  %v1724_v36 = vrot.slane %v1722_v5, 4  ;;  %v1259_v3 = vor.u32 %v1257_v63, %v1256_v1  ;;  %v1556_v7 = vld [vmem:[#allocation2 + $0x78] sm:$0xf] }
 0x174   : > { %1446 = vst [vmem:[#allocation2 + $0xc0] sm:$0xf] %v1445_v0  ;;  %v1260_v15 = vrot.slane %v1256_v1, 4  ;;  %v1264_v59 = vrot.slane %v1262_v9, 7  ;;  %v1728_v34 = vshll.u32 %v8350_v51, 16  ;;  %v1284_v12 = vor.u32 %v1282_v57, %v1281_v58 }
 0x175   : > { %v1286_v21 = vrot.slane %v1281_v58, 4  ;;  %v1721_v43 = vsel %vm8191_vm14, %v1716_v54, %v1720_v49  ;;  %v1725_v31 = vor.u32 %v1724_v36, %v1720_v49  ;;  %v1438_v14 = vsel %vm7987_vm9, %v1259_v3, %v1437_v8  ;;  %v8396_v49 = vld [vmem:[#allocation2 + $0x7c] sm:$0xf] }
 0x176   : > { %v1267_v5 = vor.u32 %v1265_v11, %v1264_v59  ;;  %v1269_v22 = vrot.slane %v1264_v59, 4  ;;  %v1730_v33 = vrot.slane %v1728_v34, 5  ;;  %1439 = vst [vmem:[#allocation2 + $0xb4] sm:$0xf] %v1438_v14  ;;  %v1285_v17 = vsel %vm8023_vm10, %v1277_v40, %v1284_v12  ;;  %v8386_v40 = vld [vmem:[#allocation2 + $0x5c] sm:$0x1] }
 0x177   : > { %v1449_v35 = vsel %vm7869_vm3, %v1286_v21, %v1448_v48  ;;  %v1726_v37 = vrot.slane %v1725_v31, 4  ;;  %v1781_v38 = vshrl.u32 %v1552_v28, 16  ;;  %1447 = vst.msk [vmem:[#allocation2 + $0xc4] sm:$0xf] %vm1336_vm7, %v1285_v17  ;;  %v1784_v27 = vshll.u32 %v1552_v28, 16 }
 0x178   : > { %1450 = vst [vmem:[#allocation2 + $0xc8] sm:$0x1] %v1449_v35  ;;  %v1268_v41 = vsel %vm8023_vm10, %v1260_v15, %v1267_v5  ;;  %v1442_v16 = vsel %vm7869_vm3, %v1269_v22, %v1441_v24  ;;  %v1794_v29 = vshrl.u32 %v8359_v55, 16  ;;  %v6536_v4 = vcombine.low %v1552_v28, %v8359_v55  ;;  %v1558_v14 = vld [vmem:[#allocation2 + $0x84] sm:$0xf] }
 0x179   : > { %1440 = vst.msk [vmem:[#allocation2 + $0xb8] sm:$0xf] %vm1336_vm7, %v1268_v41  ;;  %1443 = vst [vmem:[#allocation2 + $0xbc] sm:$0x1] %v1442_v16  ;;  %v1731_v52 = vsel %vm8191_vm14, %v1726_v37, %v1730_v33  ;;  %v1783_v45 = vrot.slane %v1781_v38, 4  ;;  %v1739_v60 = vor.u32 %v8311_v13, %v8308_v53  ;;  %v1786_v56 = vrot.slane %v1784_v27, 5 }
 0x17a   : > { %v6501_v63 = vcombine.low %v1721_v43, %v1731_v52  ;;  %v1742_v26 = vshll.u32 %v8294_v20, 16  ;;  %v1748_v6 = vrot.slane %v1746_v62, 4  ;;  %7142 = vmatprep.mubr.msk.bf16.mxu0 %vm2021_vm11, %v6536_v4  ;;  %v1752_v1 = vshll.u32 %v8373_v44, 16  ;;  %v8406_v43 = vld [vmem:[#allocation2 + $0x68] sm:$0x1] }
 0x17b   : > { %v1740_v57 = vrot.slane %v1739_v60, 4  ;;  %v1805_v8 = vshrl.u32 %v1554_v47, 16  ;;  %v1808_v9 = vshll.u32 %v1554_v47, 16  ;;  %v1818_v13 = vshrl.u32 %v8381_v19, 16  ;;  %v8410_v17 = vld [vmem:[#allocation2 + $0x88] sm:$0xf] }
 0x17c   : > { %7101 = vmatmul.mubr.msk.bf16.gmra.mxu1 %vm2021_vm11, %v6501_v63  ;;  %v1744_v53 = vrot.slane %v1742_v26, 5  ;;  %v6537_v11 = vcombine.low %v1554_v47, %v8381_v19  ;;  %v1763_v62 = vor.u32 %v8342_v42, %v8337_v25  ;;  %v1754_v54 = vrot.slane %v1752_v1, 5  ;;  %v1560_v1 = vld [vmem:[#allocation2 + $0x90] sm:$0xf] }
 0x17d   : > { %v1807_v0 = vrot.slane %v1805_v8, 4  ;;  %v1810_v58 = vrot.slane %v1808_v9, 5  ;;  %v1766_v48 = vshll.u32 %v8332_v39, 16  ;;  %v1772_v59 = vrot.slane %v1770_v2, 4 }
 0x17e   : > { %v1745_v36 = vsel %vm8191_vm14, %v1740_v57, %v1744_v53  ;;  %v1749_v3 = vor.u32 %v1748_v6, %v1744_v53  ;;  %7143 = vmatmul.mubr.msk.bf16.gmra.mxu0 %vm2021_vm11, %v6537_v11  ;;  %v1764_v15 = vrot.slane %v1763_v62, 4  ;;  %v1776_v25 = vshll.u32 %v8386_v40, 16  ;;  %v8426_v11 = vld [vmem:[#allocation2 + $0x94] sm:$0xf] }
 0x17f   : > { %v1768_v34 = vrot.slane %v1766_v48, 5  ;;  %v1829_v42 = vshrl.u32 %v1556_v7, 16  ;;  %v1832_v28 = vshll.u32 %v1556_v7, 16  ;;  %v1842_v21 = vshrl.u32 %v8396_v49, 16 }
 0x180   : > { %v1750_v12 = vrot.slane %v1749_v3, 4  ;;  %v6538_v24 = vcombine.low %v1556_v7, %v8396_v49  ;;  %v1787_v31 = vor.u32 %v1786_v56, %v1783_v45  ;;  %v1778_v33 = vrot.slane %v1776_v25, 5  ;;  %v8422_v7 = vld [vmem:[#allocation2 + $0x74] sm:$0x1]  ;;  %v8430_v3 = vld [vmem:[#allocation2 + $0x80] sm:$0x1] }
 0x181   : > { %v1769_v5 = vsel %vm8191_vm14, %v1764_v15, %v1768_v34  ;;  %v1773_v22 = vor.u32 %v1772_v59, %v1768_v34  ;;  %v1831_v2 = vrot.slane %v1829_v42, 4  ;;  %v1834_v37 = vrot.slane %v1832_v28, 5 }
 0x182   : > { %v1755_v35 = vsel %vm8191_vm14, %v1750_v12, %v1754_v54  ;;  %7146 = vmatprep.mubr.msk.bf16.mxu0 %vm2021_vm11, %v6538_v24  ;;  %v1788_v38 = vrot.slane %v1787_v31, 4  ;;  %v1790_v41 = vshll.u32 %v8359_v55, 16  ;;  %v1796_v47 = vrot.slane %v1794_v29, 4  ;;  %v1562_v12 = vld [vmem:[#allocation2 + $0x9c] sm:$0xf] }
 0x183   : > { %v6502_v16 = vcombine.low %v1745_v36, %v1755_v35  ;;  %v1774_v27 = vrot.slane %v1773_v22, 4  ;;  %v1800_v52 = vshll.u32 %v8406_v43, 16  ;;  %v1853_v4 = vshrl.u32 %v1558_v14, 16  ;;  %v8436_v24 = vld [vmem:[#allocation2 + $0xa0] sm:$0xf] }
 0x184   : > { %v1792_v45 = vrot.slane %v1790_v41, 5  ;;  %v1856_v60 = vshll.u32 %v1558_v14, 16  ;;  %v1866_v63 = vshrl.u32 %v8410_v17, 16  ;;  %v6539_v6 = vcombine.low %v1558_v14, %v8410_v17 }
 0x185   : > { %7104 = vmatprep.mubr.msk.bf16.mxu1 %vm2021_vm11, %v6502_v16  ;;  %v1779_v56 = vsel %vm8191_vm14, %v1774_v27, %v1778_v33  ;;  %v1802_v26 = vrot.slane %v1800_v52, 5  ;;  %v1811_v57 = vor.u32 %v1810_v58, %v1807_v0  ;;  %v1855_v53 = vrot.slane %v1853_v4, 4  ;;  %v8448_v4 = vld [vmem:[#allocation2 + $0x8c] sm:$0x1] }
 0x186   : > { %v6503_v29 = vcombine.low %v1769_v5, %v1779_v56  ;;  %v1793_v8 = vsel %vm8191_vm14, %v1788_v38, %v1792_v45  ;;  %v1797_v9 = vor.u32 %v1796_v47, %v1792_v45  ;;  %v1858_v62 = vrot.slane %v1856_v60, 5  ;;  %7147 = vmatmul.mubr.msk.bf16.gmra.mxu0 %vm2021_vm11, %v6539_v6 }
 0x187   : > { %v1812_v54 = vrot.slane %v1811_v57, 4  ;;  %v1814_v48 = vshll.u32 %v8381_v19, 16  ;;  %v1820_v36 = vrot.slane %v1818_v13, 4  ;;  %v1824_v58 = vshll.u32 %v8422_v7, 16  ;;  %v1564_v57 = vld [vmem:[#allocation2 + $0xa8] sm:$0xf] }
 0x188   : > { %7105 = vmatmul.mubr.msk.bf16.gmra.mxu1 %vm2021_vm11, %v6503_v29  ;;  %v1798_v0 = vrot.slane %v1797_v9, 4  ;;  %v1877_v15 = vshrl.u32 %v1560_v1, 16  ;;  %v1880_v59 = vshll.u32 %v1560_v1, 16  ;;  %v1890_v25 = vshrl.u32 %v8426_v11, 16  ;;  %v8454_v9 = vld [vmem:[#allocation2 + $0xac] sm:$0xf] }
 0x189   : > { %v1816_v34 = vrot.slane %v1814_v48, 5  ;;  %v6540_v42 = vcombine.low %v1560_v1, %v8426_v11  ;;  %v1835_v28 = vor.u32 %v1834_v37, %v1831_v2  ;;  %v1826_v31 = vrot.slane %v1824_v58, 5  ;;  %v8458_v58 = vld [vmem:[#allocation2 + $0x98] sm:$0x1] }
 0x18a   : > { %v1803_v13 = vsel %vm8191_vm14, %v1798_v0, %v1802_v26  ;;  %v1879_v14 = vrot.slane %v1877_v15, 4  ;;  %v1882_v5 = vrot.slane %v1880_v59, 5  ;;  %v1838_v41 = vshll.u32 %v8396_v49, 16 }
 0x18b   : > { %v6504_v22 = vcombine.low %v1793_v8, %v1803_v13  ;;  %v1817_v33 = vsel %vm8191_vm14, %v1812_v54, %v1816_v34  ;;  %v1821_v35 = vor.u32 %v1820_v36, %v1816_v34  ;;  %7150 = vmatprep.mubr.msk.bf16.mxu0 %vm2021_vm11, %v6540_v42  ;;  %v1836_v38 = vrot.slane %v1835_v28, 4  ;;  %v1566_v34 = vld [vmem:[#allocation2 + $0xb4] sm:$0xf]  ;;  %v8461_v42 = vld [vmem:[#allocation2 + $0xb8] sm:$0xf] }
 0x18c   : > { %v1844_v2 = vrot.slane %v1842_v21, 4  ;;  %v1848_v37 = vshll.u32 %v8430_v3, 16  ;;  %v1901_v16 = vshrl.u32 %v1562_v12, 16  ;;  %v1904_v47 = vshll.u32 %v1562_v12, 16 }
 0x18d   : > { %7108 = vmatprep.mubr.msk.bf16.mxu1 %vm2021_vm11, %v6504_v22  ;;  %v1822_v27 = vrot.slane %v1821_v35, 4  ;;  %v1914_v52 = vshrl.u32 %v8436_v24, 16  ;;  %v6541_v45 = vcombine.low %v1562_v12, %v8436_v24  ;;  %v1840_v60 = vrot.slane %v1838_v41, 5 }
 0x18e   : > { %v1850_v56 = vrot.slane %v1848_v37, 5  ;;  %v1903_v26 = vrot.slane %v1901_v16, 4  ;;  %v1859_v6 = vor.u32 %v1858_v62, %v1855_v53  ;;  %v1906_v1 = vrot.slane %v1904_v47, 5 }
 0x18f   : > { %v1827_v21 = vsel %vm8191_vm14, %v1822_v27, %v1826_v31  ;;  %7151 = vmatmul.mubr.msk.bf16.gmra.mxu0 %vm2021_vm11, %v6541_v45  ;;  %v1862_v29 = vshll.u32 %v8410_v17, 16  ;;  %v1868_v8 = vrot.slane %v1866_v63, 4  ;;  %v1841_v48 = vsel %vm8191_vm14, %v1836_v38, %v1840_v60 }
 0x190   : > { %v6505_v54 = vcombine.low %v1817_v33, %v1827_v21  ;;  %v1845_v36 = vor.u32 %v1844_v2, %v1840_v60  ;;  %v1860_v0 = vrot.slane %v1859_v6, 4  ;;  %v1872_v62 = vshll.u32 %v8448_v4, 16 }
 0x191   : > { %v1864_v53 = vrot.slane %v1862_v29, 5  ;;  %v1925_v15 = vshrl.u32 %v1564_v57, 16  ;;  %v1928_v59 = vshll.u32 %v1564_v57, 16  ;;  %v1938_v28 = vshrl.u32 %v8454_v9, 16  ;;  %v8478_v29 = vld [vmem:[#allocation2 + $0xa4] sm:$0x1] }
 0x192   : > { %7109 = vmatmul.mubr.msk.bf16.gmra.mxu1 %vm2021_vm11, %v6505_v54  ;;  %v1846_v63 = vrot.slane %v1845_v36, 4  ;;  %v6542_v12 = vcombine.low %v1564_v57, %v8454_v9  ;;  %v1883_v13 = vor.u32 %v1882_v5, %v1879_v14  ;;  %v1874_v33 = vrot.slane %v1872_v62, 5  ;;  %v8480_v54 = vld [vmem:[#allocation2 + $0xb0] sm:$0x1] }
 0x193   : > { %v1865_v31 = vsel %vm8191_vm14, %v1860_v0, %v1864_v53  ;;  %v1869_v22 = vor.u32 %v1868_v8, %v1864_v53  ;;  %v1927_v35 = vrot.slane %v1925_v15, 4  ;;  %v1930_v41 = vrot.slane %v1928_v59, 5  ;;  %v7507_v53 = vld [vmem:[#allocation2 + $0xc] sm:$0xff]  }
 0x194   : > { %v1851_v38 = vsel %vm8191_vm14, %v1846_v63, %v1850_v56  ;;  %7154 = vmatprep.mubr.msk.bf16.mxu0 %vm2021_vm11, %v6542_v12  ;;  %v1884_v2 = vrot.slane %v1883_v13, 4  ;;  %v1886_v37 = vshll.u32 %v8426_v11, 16  ;;  %v1892_v47 = vrot.slane %v1890_v25, 4  ;;  %v2527_v13 = vld [vmem:[#allocation2] sm:$0xe] }
 0x195   : > { %v6506_v16 = vcombine.low %v1841_v48, %v1851_v38  ;;  %v1870_v27 = vrot.slane %v1869_v22, 4  ;;  %v1896_v14 = vshll.u32 %v8458_v58, 16  ;;  %v1949_v45 = vshrl.u32 %v1566_v34, 16  ;;  %v7556_v38 = vld [vmem:[%s10786_s4 + $0xc] sm:$0xf] }
 0x196   : > { %v1888_v5 = vrot.slane %v1886_v37, 5  ;;  %v1952_v60 = vshll.u32 %v1566_v34, 16  ;;  %v1962_v6 = vshrl.u32 %v8461_v42, 16  ;;  %v6543_v21 = vcombine.low %v1566_v34, %v8461_v42 }
 0x197   : > { %7112 = vmatprep.mubr.msk.bf16.mxu1 %vm2021_vm11, %v6506_v16  ;;  %v1875_v56 = vsel %vm8191_vm14, %v1870_v27, %v1874_v33  ;;  %v1898_v57 = vrot.slane %v1896_v14, 5  ;;  %v1907_v8 = vor.u32 %v1906_v1, %v1903_v26  ;;  %v1951_v0 = vrot.slane %v1949_v45, 4  ;;  %v8504_v27 = vld [vmem:[#allocation2 + $0xbc] sm:$0x1] }
 0x198   : > { %v6507_v25 = vcombine.low %v1865_v31, %v1875_v56  ;;  %v1889_v48 = vsel %vm8191_vm14, %v1884_v2, %v1888_v5  ;;  %v1893_v36 = vor.u32 %v1892_v47, %v1888_v5  ;;  %v1954_v62 = vrot.slane %v1952_v60, 5  ;;  %7155 = vmatmul.mubr.msk.bf16.gmra.mxu0 %vm2021_vm11, %v6543_v21  ;;  %v8495_v31 = vld [vmem:[%s10786_s4 + $0x14] sm:$0xf]  ;;  %v2528_v21 = vld [vmem:[#allocation2 + $0xc] sm:$0xe] }
 0x199   : > { %v1908_v15 = vrot.slane %v1907_v8, 4  ;;  %v1910_v59 = vshll.u32 %v8436_v24, 16  ;;  %v1916_v26 = vrot.slane %v1914_v52, 4  ;;  %v1920_v34 = vshll.u32 %v8478_v29, 16  ;;  %7194 = vmatprep.mubr.msk.bf16.mxu0 %vm2021_vm11, %v7507_v53 }
 0x19a   : > { %7113 = vmatmul.mubr.msk.bf16.gmra.mxu1 %vm2021_vm11, %v6507_v25  ;;  %v1894_v1 = vrot.slane %v1893_v36, 4  ;;  %v1931_v63 = vor.u32 %v1930_v41, %v1927_v35  ;;  %v1934_v12 = vshll.u32 %v8454_v9, 16  ;;  %v1940_v33 = vrot.slane %v1938_v28, 4  ;;  %v7508_v25 = vld [vmem:[#allocation2 + $0x18] sm:$0xff]  }
 0x19b   : > { %v1912_v22 = vrot.slane %v1910_v59, 5  ;;  %v1944_v52 = vshll.u32 %v8480_v54, 16  ;;  %v3145_v2 = vsel %vm2070_vm6, %v7556_v38, 0  ;;  %v1922_v41 = vrot.slane %v1920_v34, 5  ;;  %v7557_v34 = vld [vmem:[#allocation2 + $0x4] sm:$0xf] }
 0x19c   : > { %v1899_v35 = vsel %vm8191_vm14, %v1894_v1, %v1898_v57  ;;  %v1932_v37 = vrot.slane %v1931_v63, 4  ;;  %v1936_v16 = vrot.slane %v1934_v12, 5  ;;  %7193 = vmatpush3.bf16.msra.mxu0 %v3145_v2  ;;  %v1955_v56 = vor.u32 %v1954_v62, %v1951_v0  ;;  %v7509_v1 = vld [vmem:[#allocation2 + $0x24] sm:$0xff]  }
 0x19d   : > { %v6508_v47 = vcombine.low %v1889_v48, %v1899_v35  ;;  %v1913_v28 = vsel %vm8191_vm14, %v1908_v15, %v1912_v22  ;;  %v1917_v14 = vor.u32 %v1916_v26, %v1912_v22  ;;  %v1946_v5 = vrot.slane %v1944_v52, 5  ;;  %7401 = vmatprep.subr.msk.bf16.mxu0 %vm2070_vm6, %v8495_v31  ;;  %v7558_v12 = vld [vmem:[#allocation2 + $0x8] sm:$0x1]  ;;  %v2529_v52 = vld [vmem:[#allocation2 + $0x18] sm:$0xe] }
 0x19e   : > { %v1937_v45 = vsel %vm8191_vm14, %v1932_v37, %v1936_v16  ;;  %v1941_v60 = vor.u32 %v1940_v33, %v1936_v16  ;;  %v1958_v57 = vshll.u32 %v8461_v42, 16  ;;  %v1964_v48 = vrot.slane %v1962_v6, 4 }
 0x19f   : > { %7116 = vmatprep.mubr.msk.bf16.mxu1 %vm2021_vm11, %v6508_v47  ;;  %v1918_v8 = vrot.slane %v1917_v14, 4  ;;  %v1968_v36 = vshll.u32 %v8504_v27, 16  ;;  %v6560_v53 = vrot.slane %v2527_v13, 9  ;;  %v1956_v59 = vrot.slane %v1955_v56, 4  ;;  %v7559_v47 = vld [vmem:[#allocation2 + $0x10] sm:$0xf] }
 0x1a0   : > { %v1942_v15 = vrot.slane %v1941_v60, 4  ;;  %v1960_v26 = vrot.slane %v1958_v57, 5  ;;  %v2580_v63 = vrot.slane %v7557_v34, 5  ;;  %7195 = vmatmul.mubr.msk.bf16.vlgmr.msra.gmra.mxu0 %vm2021_vm11, %v7508_v25  ;;  %v2583_v22 = vrot.slane %v7558_v12, 5  ;;  %v7560_v56 = vld [vmem:[#allocation2 + $0x1c] sm:$0xf] }
 0x1a1   : > { %v1923_v0 = vsel %vm8191_vm14, %v1918_v8, %v1922_v41  ;;  %v1970_v62 = vrot.slane %v1968_v36, 5  ;;  %v6561_v33 = vrot.slane %v2528_v21, 9  ;;  %7198 = vmatprep.mubr.msk.bf16.mxu0 %vm2021_vm11, %v7509_v1  ;;  %v6562_v60 = vrot.slane %v2529_v52, 9  ;;  %v2530_v21 = vld [vmem:[#allocation2 + $0x24] sm:$0xe]  ;;  %v7510_v1 = vld [vmem:[#allocation2 + $0x30] sm:$0xff]  }
 0x1a2   : > { %v6509_v6 = vcombine.low %v1913_v28, %v1923_v0  ;;  %v1947_v13 = vsel %vm8191_vm14, %v1942_v15, %v1946_v5  ;;  %v1961_v38 = vsel %vm8191_vm14, %v1956_v59, %v1960_v26  ;;  %v1965_v2 = vor.u32 %v1964_v48, %v1960_v26  ;;  %v2531_v36 = vld [vmem:[#allocation2 + $0x30] sm:$0xe]  ;;  %v2532_v12 = vld [vmem:[#allocation2 + $0x3c] sm:$0xe] }
 0x1a3   : > { %v6510_v41 = vcombine.low %v1937_v45, %v1947_v13  ;;  %v2581_v37 = vsel %vm8525_vm2, %v6560_v53, %v2580_v63  ;;  %v2582_v16 = vrot.slane %v2580_v63, 4  ;;  %v2587_v28 = vrot.slane %v7559_v47, 5 }
 0x1a4   : > { %7117 = vmatmul.mubr.msk.bf16.gmra.mxu1 %vm2021_vm11, %v6509_v6  ;;  %v1966_v14 = vrot.slane %v1965_v2, 4  ;;  %v8534_v5 = vsel %vm2070_vm6, %v8267_v23, 0  ;;  %v2594_v57 = vrot.slane %v7560_v56, 5  ;;  %v2597_v48 = vrot.slane %v8234_v30, 5  ;;  %v7561_v30 = vld [vmem:[#allocation2 + $0x28] sm:$0xf] }
 0x1a5   : > { %7120 = vmatprep.mubr.msk.bf16.mxu1 %vm2021_vm11, %v6510_v41  ;;  %v2584_v45 = vsel %vm8525_vm2, %v2582_v16, %v2583_v22  ;;  %v8541_v8 = vsel %vm8525_vm2, %v6561_v33, %v2587_v28  ;;  %v2589_v25 = vrot.slane %v2587_v28, 4  ;;  %v6563_v63 = vrot.slane %v2530_v21, 9  ;;  %v7511_v22 = vld [vmem:[#allocation2 + $0x3c] sm:$0xff]   ;;  %v7562_v2 = vld [vmem:[#allocation2 + $0x34] sm:$0xf] }
 0x1a6   : > { %v1971_v23 = vsel %vm8191_vm14, %v1966_v14, %v1970_v62  ;;  %v6576_v53 = vcombine.low %v2581_v37, %v2584_v45  ;;  %v8548_v15 = vsel %vm8525_vm2, %v6562_v60, %v2594_v57  ;;  %v2596_v59 = vrot.slane %v2594_v57, 4  ;;  %v2534_v28 = vld [vmem:[#allocation2 + $0x54] sm:$0xe] }
 0x1a7   : > { %v6511_v26 = vcombine.low %v1961_v38, %v1971_v23  ;;  %v8554_v34 = vsel %vm8525_vm2, %v2589_v25, %v2590_v18  ;;  %v2601_v0 = vrot.slane %v7561_v30, 5  ;;  %v2604_v52 = vrot.slane %v8284_v10, 5  ;;  %v2535_v23 = vld [vmem:[#allocation2 + $0x60] sm:$0xe] }
 0x1a8   : > { %v6577_v62 = vcombine.low %v8541_v8, %v8554_v34  ;;  %v8560_v33 = vsel %vm8525_vm2, %v2596_v59, %v2597_v48  ;;  %v6564_v6 = vrot.slane %v2531_v36, 9  ;;  %7199 = vmatmul.mubr.msk.bf16.gmra.mxu0 %vm2021_vm11, %v7510_v1  ;;  %v2608_v41 = vrot.slane %v7562_v2, 5  ;;  %v2536_v1 = vld [vmem:[#allocation2 + $0x6c] sm:$0xe] }
 0x1a9   : > { %v6578_v18 = vcombine.low %v8548_v15, %v8560_v33  ;;  %v8568_v13 = vsel %vm8525_vm2, %v6563_v63, %v2601_v0  ;;  %v2603_v38 = vrot.slane %v2601_v0, 4  ;;  %7202 = vmatprep.mubr.msk.bf16.mxu0 %vm2021_vm11, %v7511_v22  ;;  %v2611_v37 = vrot.slane %v8306_v61, 5  ;;  %v7512_v63 = vld [vmem:[#allocation2 + $0x48] sm:$0xff]  }
 0x1aa   : > { %v6565_v16 = vrot.slane %v2532_v12, 9  ;;  %v2615_v10 = vrot.slane %v8270_v46, 5  ;;  %v2618_v47 = vrot.slane %v8350_v51, 5  ;;  %v8580_v60 = vsel %vm8525_vm2, %v6564_v6, %v2608_v41  ;;  %v7513_v12 = vld [vmem:[#allocation2 + $0x54] sm:$0xff]  }
 0x1ab   : > { %v8576_v14 = vsel %vm8525_vm2, %v2603_v38, %v2604_v52  ;;  %v2610_v56 = vrot.slane %v2608_v41, 4  ;;  %v6566_v57 = vrot.slane %v2533_v32, 9  ;;  %v2622_v21 = vrot.slane %v8294_v20, 5  ;;  %v2537_v38 = vld [vmem:[#allocation2 + $0x78] sm:$0xe] }
 0x1ac   : > { %7121 = vmatmul.mubr.msk.bf16.gmra.mxu1 %vm2021_vm11, %v6511_v26  ;;  %v6579_v61 = vcombine.low %v8568_v13, %v8576_v14  ;;  %v8587_v46 = vsel %vm8525_vm2, %v6565_v16, %v2615_v10  ;;  %v2617_v51 = vrot.slane %v2615_v10, 4  ;;  %v2625_v25 = vrot.slane %v8373_v44, 5  ;;  %v2538_v16 = vld [vmem:[#allocation2 + $0x84] sm:$0xe] }
 0x1ad   : > { %7160 = vmatprep.mubr.msk.bf16.mxu1 %vm2021_vm11, %v6576_v53  ;;  %v8593_v45 = vsel %vm8525_vm2, %v2610_v56, %v2611_v37  ;;  %v6567_v48 = vrot.slane %v2534_v28, 9  ;;  %v2629_v36 = vrot.slane %v8332_v39, 5  ;;  %v8605_v20 = vsel %vm8525_vm2, %v6566_v57, %v2622_v21 }
 0x1ae   : > { %v6580_v59 = vcombine.low %v8580_v60, %v8593_v45  ;;  %v8601_v26 = vsel %vm8525_vm2, %v2617_v51, %v2618_v47  ;;  %v2624_v53 = vrot.slane %v2622_v21, 4  ;;  %v2632_v0 = vrot.slane %v8386_v40, 5  ;;  %v8644_v51 = vld [vmem:[%s10786_s4 + $0x18] sm:$0xf] }
 0x1af   : > { %v6581_v44 = vcombine.low %v8587_v46, %v8601_v26  ;;  %v8611_v39 = vsel %vm8525_vm2, %v6567_v48, %v2629_v36  ;;  %v2631_v30 = vrot.slane %v2629_v36, 4  ;;  %v6568_v52 = vrot.slane %v2535_v23, 9  ;;  %v8678_v36 = vld [vmem:[#allocation2 + $0x10] sm:$0xf]  ;;  %v8680_v23 = vld [vmem:[#allocation2 + $0x14] sm:$0x1] }
 0x1b0   : > { %v8616_v22 = vsel %vm8525_vm2, %v2624_v53, %v2625_v25  ;;  %v2636_v6 = vrot.slane %v8359_v55, 5  ;;  %v2639_v32 = vrot.slane %v8406_v43, 5  ;;  %7203 = vmatmul.mubr.msk.bf16.gmra.mxu0 %vm2021_vm11, %v7512_v63  ;;  %v6569_v40 = vrot.slane %v2536_v1, 9  ;;  %v7514_v53 = vld [vmem:[#allocation2 + $0x60] sm:$0xff]  }
 0x1b1   : > { %v6582_v2 = vcombine.low %v8605_v20, %v8616_v22  ;;  %v8625_v41 = vsel %vm8525_vm2, %v2631_v30, %v2632_v0  ;;  %v2643_v37 = vrot.slane %v8381_v19, 5  ;;  %7206 = vmatprep.mubr.msk.bf16.mxu0 %vm2021_vm11, %v7513_v12  ;;  %v2646_v47 = vrot.slane %v8422_v7, 5  ;;  %v4065_v12 = vld [vmem:[#allocation2 + $0xc] sm:$0xe]  ;;  %v7518_v20 = vld [vmem:[#allocation2 + $0x90] sm:$0xff]  }
 0x1b2   : > { %v6583_v55 = vcombine.low %v8611_v39, %v8625_v41  ;;  %v8633_v43 = vsel %vm8525_vm2, %v6568_v52, %v2636_v6  ;;  %v2638_v10 = vrot.slane %v2636_v6, 4  ;;  %v6570_v57 = vrot.slane %v2537_v38, 9  ;;  %v7515_v52 = vld [vmem:[#allocation2 + $0x6c] sm:$0xff]  }
 0x1b3   : > { %v8638_v28 = vsel %vm8525_vm2, %v6569_v40, %v2643_v37  ;;  %v2645_v56 = vrot.slane %v2643_v37, 4  ;;  %v2650_v19 = vrot.slane %v8396_v49, 5  ;;  %v2653_v21 = vrot.slane %v8430_v3, 5  ;;  %v2539_v49 = vld [vmem:[#allocation2 + $0x90] sm:$0xe] }
 0x1b4   : > { %7161 = vmatmul.mubr.msk.bf16.vlgmr.msra.gmra.mxu1 %vm2021_vm11, %v6577_v62  ;;  %v8652_v7 = vsel %vm8525_vm2, %v2638_v10, %v2639_v32  ;;  %v6571_v25 = vrot.slane %v2538_v16, 9  ;;  %v2657_v48 = vrot.slane %v8410_v17, 5  ;;  %v2540_v62 = vld [vmem:[#allocation2 + $0x9c] sm:$0xe]  ;;  %v6572_v63 = vrot.slane %v2539_v49, 9 }
 0x1b5   : > { %7227 = vmatpush3.bf16.msra.mxu1 %v8534_v5  ;;  %7164 = vmatprep.mubr.msk.bf16.mxu1 %vm2021_vm11, %v6578_v18  ;;  %v6584_v8 = vcombine.low %v8633_v43, %v8652_v7  ;;  %v8665_v34 = vsel %vm8525_vm2, %v2645_v56, %v2646_v47  ;;  %v8669_v3 = vsel %vm8525_vm2, %v6570_v57, %v2650_v19  ;;  %v2652_v17 = vrot.slane %v2650_v19, 4  ;;  %v2541_v40 = vld [vmem:[#allocation2 + $0xa8] sm:$0xe]  ;;  %v8705_v10 = vld [vmem:[#allocation2 + $0x1c] sm:$0xf] }
 0x1b6   : > { %v6585_v5 = vcombine.low %v8638_v28, %v8665_v34  ;;  %v8675_v15 = vsel %vm8525_vm2, %v6571_v25, %v2657_v48  ;;  %v2659_v33 = vrot.slane %v2657_v48, 4  ;;  %v2660_v18 = vrot.slane %v8448_v4, 5  ;;  %7402 = vmatprep.subr.msk.bf16.mxu1 %vm2070_vm6, %v8644_v51  ;;  %v8713_v19 = vld [vmem:[#allocation2 + $0x20] sm:$0x1]  ;;  %v4066_v49 = vld [vmem:[#allocation2 + $0x18] sm:$0xe] }
 0x1b7   : > { %v8686_v1 = vsel %vm8525_vm2, %v2652_v17, %v2653_v21  ;;  %v2664_v30 = vrot.slane %v8426_v11, 5  ;;  %v2667_v0 = vrot.slane %v8458_v58, 5  ;;  %v6573_v32 = vrot.slane %v2540_v62, 9  ;;  %v4071_v34 = vld [vmem:[#allocation2 + $0x54] sm:$0xe] }
 0x1b8   : > { %v6586_v4 = vcombine.low %v8669_v3, %v8686_v1  ;;  %v8694_v6 = vsel %vm8525_vm2, %v2659_v33, %v2660_v18  ;;  %v2671_v38 = vrot.slane %v8436_v24, 5  ;;  %7207 = vmatmul.mubr.msk.bf16.gmra.mxu0 %vm2021_vm11, %v7514_v53  ;;  %v2674_v16 = vrot.slane %v8478_v29, 5  ;;  %v2542_v53 = vld [vmem:[#allocation2 + $0xb4] sm:$0xe]  ;;  %v7522_v3 = vld [vmem:[#allocation2 + $0xc0] sm:$0xff]  }
 0x1b9   : > { %v6587_v11 = vcombine.low %v8675_v15, %v8694_v6  ;;  %v8702_v58 = vsel %vm8525_vm2, %v6572_v63, %v2664_v30  ;;  %v2666_v37 = vrot.slane %v2664_v30, 4  ;;  %7210 = vmatprep.mubr.msk.bf16.mxu0 %vm2021_vm11, %v7515_v52  ;;  %v6672_v56 = vrot.slane %v4065_v12, 9  ;;  %v8748_v30 = vld [vmem:[#allocation2 + $0x2c] sm:$0x1]  ;;  %v4067_v52 = vld [vmem:[#allocation2 + $0x24] sm:$0xe] }
 0x1ba   : > { %v8710_v24 = vsel %vm8525_vm2, %v6573_v32, %v2671_v38  ;;  %v2673_v47 = vrot.slane %v2671_v38, 4  ;;  %v4131_v57 = vrot.slane %v8678_v36, 5  ;;  %v4134_v29 = vrot.slane %v8680_v23, 5  ;;  %v7516_v32 = vld [vmem:[#allocation2 + $0x78] sm:$0xff]  }
 0x1bb   : > { %v8717_v21 = vsel %vm8525_vm2, %v2666_v37, %v2667_v0  ;;  %v6574_v25 = vrot.slane %v2541_v40, 9  ;;  %v2678_v48 = vrot.slane %v8454_v9, 5  ;;  %v8735_v9 = vld [vmem:[#allocation2 + $0x28] sm:$0xf]  ;;  %v2681_v63 = vrot.slane %v8480_v54, 5 }
 0x1bc   : > { %7165 = vmatmul.mubr.msk.bf16.gmra.mxu1 %vm2021_vm11, %v6579_v61  ;;  %v6588_v17 = vcombine.low %v8702_v58, %v8717_v21  ;;  %v8729_v62 = vsel %vm8525_vm2, %v2673_v47, %v2674_v16  ;;  %v8733_v33 = vsel %vm8525_vm2, %v6672_v56, %v4131_v57  ;;  %v4133_v18 = vrot.slane %v4131_v57, 4  ;;  %v8753_v0 = vld [vmem:[%s10786_s4 + $0x1c] sm:$0xf]  ;;  %v3340_v16 = vld [vmem:[#allocation2 + $0xc] sm:$0xf]  ;;  %v7517_v47 = vld [vmem:[#allocation2 + $0x84] sm:$0xff]  }
 0x1bd   : > { %7168 = vmatprep.mubr.msk.bf16.mxu1 %vm2021_vm11, %v6580_v59  ;;  %v8745_v14 = vsel %vm8525_vm2, %v6574_v25, %v2678_v48  ;;  %v2680_v61 = vrot.slane %v2678_v48, 4  ;;  %v4339_v45 = vsel %vm2070_vm6, %v8495_v31, 0  ;;  %v6673_v59 = vrot.slane %v4066_v49, 9  ;;  %v7519_v31 = vld [vmem:[#allocation2 + $0x9c] sm:$0xff]  }
 0x1be   : > { %v8757_v60 = vsel %vm8525_vm2, %v4133_v18, %v4134_v29  ;;  %v4138_v12 = vrot.slane %v8705_v10, 5  ;;  %7261 = vmatpush3.bf16.msra.mxu0 %v4339_v45  ;;  %v4141_v40 = vrot.slane %v8713_v19, 5  ;;  %v6575_v37 = vrot.slane %v2542_v53, 9 }
 0x1bf   : > { %v6688_v54 = vcombine.low %v8733_v33, %v8757_v60  ;;  %v8766_v38 = vsel %vm8525_vm2, %v2680_v61, %v2681_v63  ;;  %v2685_v29 = vrot.slane %v8461_v42, 5  ;;  %7403 = vmatprep.subr.msk.bf16.mxu0 %vm2070_vm6, %v8753_v0  ;;  %v2688_v25 = vrot.slane %v8504_v27, 5  ;;  %v3346_v27 = vld [vmem:[#allocation2 + $0x24] sm:$0xf] }
 0x1c0   : > { %v8773_v56 = vsel %vm8525_vm2, %v6673_v59, %v4138_v12  ;;  %v4140_v57 = vrot.slane %v4138_v12, 4  ;;  %7211 = vmatmul.mubr.msk.bf16.gmra.mxu0 %vm2021_vm11, %v7516_v32  ;;  %v6674_v48 = vrot.slane %v4067_v52, 9  ;;  %v4145_v49 = vrot.slane %v8735_v9, 5  ;;  %v8797_v52 = vld [vmem:[#allocation2 + $0x34] sm:$0xf] }
 0x1c1   : > { %v4148_v18 = vrot.slane %v8748_v30, 5  ;;  %7214 = vmatprep.mubr.msk.bf16.mxu0 %vm2021_vm11, %v7517_v47  ;;  %v8789_v42 = vsel %vm8525_vm2, %v6575_v37, %v2685_v29  ;;  %v2687_v61 = vrot.slane %v2685_v29, 4  ;;  %v3389_v63 = vshrl.u32 %v3340_v16, 16  ;;  %v4068_v32 = vld [vmem:[#allocation2 + $0x30] sm:$0xe] }
 0x1c2   : > { %v8785_v53 = vsel %vm8525_vm2, %v4140_v57, %v4141_v40  ;;  %v8795_v45 = vsel %vm8525_vm2, %v6674_v48, %v4145_v49  ;;  %v4147_v59 = vrot.slane %v4145_v49, 4  ;;  %v3392_v12 = vshll.u32 %v3340_v16, 16  ;;  %v8809_v29 = vld [vmem:[#allocation2 + $0x38] sm:$0x1] }
 0x1c3   : > { %v8805_v40 = vsel %vm8525_vm2, %v2687_v61, %v2688_v25  ;;  %v3391_v37 = vrot.slane %v3389_v63, 4  ;;  %v3398_v47 = vshll.u32 %v8678_v36, 16  ;;  %v3402_v57 = vshrl.u32 %v8678_v36, 16  ;;  %v3343_v25 = vld [vmem:[#allocation2 + $0x18] sm:$0xf] }
 0x1c4   : > { %7169 = vmatmul.mubr.msk.bf16.gmra.mxu1 %vm2021_vm11, %v6581_v44  ;;  %v8819_v26 = vsel %vm8525_vm2, %v4147_v59, %v4148_v18  ;;  %v3394_v44 = vrot.slane %v3392_v12, 5  ;;  %v3408_v16 = vshll.u32 %v8680_v23, 16  ;;  %v6675_v61 = vrot.slane %v4068_v32, 9 }
 0x1c5   : > { %7172 = vmatprep.mubr.msk.bf16.mxu1 %vm2021_vm11, %v6582_v2  ;;  %v3400_v48 = vrot.slane %v3398_v47, 5  ;;  %v3404_v49 = vrot.slane %v3402_v57, 4  ;;  %v4152_v63 = vrot.slane %v8797_v52, 5  ;;  %v4155_v46 = vrot.slane %v8809_v29, 5  ;;  %v4069_v57 = vld [vmem:[#allocation2 + $0x3c] sm:$0xe] }
 0x1c6   : > { %v3395_v22 = vor.u32 %v3394_v44, %v3391_v37  ;;  %v3410_v2 = vrot.slane %v3408_v16, 5  ;;  %v3413_v59 = vshrl.u32 %v3343_v25, 16  ;;  %v3416_v12 = vshll.u32 %v3343_v25, 16  ;;  %v8834_v25 = vld [vmem:[#allocation2 + $0x40] sm:$0xf] }
 0x1c7   : > { %v3405_v18 = vor.u32 %v3404_v49, %v3400_v48  ;;  %v3422_v23 = vshll.u32 %v8705_v10, 16  ;;  %v8830_v47 = vsel %vm8525_vm2, %v6675_v61, %v4152_v63  ;;  %v4154_v32 = vrot.slane %v4152_v63, 4 }
 0x1c8   : > { %7215 = vmatmul.mubr.msk.bf16.gmra.mxu0 %vm2021_vm11, %v7518_v20  ;;  %v3396_v13 = vrot.slane %v3395_v22, 4  ;;  %v3426_v37 = vshrl.u32 %v8705_v10, 16  ;;  %v3415_v16 = vrot.slane %v3413_v59, 4  ;;  %v3418_v49 = vrot.slane %v3416_v12, 5  ;;  %v8843_v10 = vld [vmem:[#allocation2 + $0x44] sm:$0x1] }
 0x1c9   : > { %7218 = vmatprep.mubr.msk.bf16.mxu0 %vm2021_vm11, %v7519_v31  ;;  %v3406_v44 = vrot.slane %v3405_v18, 4  ;;  %v3424_v36 = vrot.slane %v3422_v23, 5  ;;  %v8840_v22 = vsel %vm8525_vm2, %v4154_v32, %v4155_v46  ;;  %v3432_v63 = vshll.u32 %v8713_v19, 16  ;;  %v7520_v23 = vld [vmem:[#allocation2 + $0xa8] sm:$0xff]  }
 0x1ca   : > { %v3401_v20 = vsel %vm8191_vm14, %v3396_v13, %v3400_v48  ;;  %v3428_v61 = vrot.slane %v3426_v37, 4  ;;  %v6691_v13 = vcombine.low %v8830_v47, %v8840_v22  ;;  %v3419_v48 = vor.u32 %v3418_v49, %v3415_v16  ;;  %v4070_v37 = vld [vmem:[#allocation2 + $0x48] sm:$0xe] }
 0x1cb   : > { %v3411_v31 = vsel %vm8191_vm14, %v3406_v44, %v3410_v2  ;;  %v6676_v46 = vrot.slane %v4069_v57, 9  ;;  %v3434_v59 = vrot.slane %v3432_v63, 5  ;;  %v4159_v39 = vrot.slane %v8834_v25, 5  ;;  %v7521_v57 = vld [vmem:[#allocation2 + $0xb4] sm:$0xff]  }
 0x1cc   : > { %7173 = vmatmul.mubr.msk.bf16.gmra.mxu1 %vm2021_vm11, %v6583_v55  ;;  %v8857_v19 = vcombine.low %v3401_v20, %v3411_v31  ;;  %v3429_v18 = vor.u32 %v3428_v61, %v3424_v36  ;;  %v3420_v41 = vrot.slane %v3419_v48, 4  ;;  %v4162_v55 = vrot.slane %v8843_v10, 5  ;;  %v8873_v20 = vld [vmem:[#allocation2 + $0x4c] sm:$0xf]  ;;  %v3349_v48 = vld [vmem:[#allocation2 + $0x30] sm:$0xf] }
 0x1cd   : > { %7176 = vmatprep.mubr.msk.bf16.mxu1 %vm2021_vm11, %v6584_v8  ;;  %v8863_v2 = vsel %vm2070_vm6, %v8644_v51, 0  ;;  %v3437_v12 = vshrl.u32 %v3346_v27, 16  ;;  %v8867_v43 = vsel %vm8525_vm2, %v6676_v46, %v4159_v39  ;;  %v4161_v7 = vrot.slane %v4159_v39, 4 }
 0x1ce   : > { %v3430_v32 = vrot.slane %v3429_v18, 4  ;;  %v3440_v8 = vshll.u32 %v3346_v27, 16  ;;  %v3425_v44 = vsel %vm8191_vm14, %v3420_v41, %v3424_v36  ;;  %v3446_v49 = vshll.u32 %v8735_v9, 16  ;;  %v8883_v36 = vld [vmem:[#allocation2 + $0x50] sm:$0x1] }
 0x1cf   : > { %v3439_v16 = vrot.slane %v3437_v12, 4  ;;  %v3450_v51 = vshrl.u32 %v8735_v9, 16  ;;  %v8880_v27 = vsel %vm8525_vm2, %v4161_v7, %v4162_v55  ;;  %v3456_v31 = vshll.u32 %v8748_v30, 16 }
 0x1d0   : > { %7219 = vmatmul.mubr.msk.bf16.gmra.mxu0 %vm2021_vm11, %v7520_v23  ;;  %v3435_v61 = vsel %vm8191_vm14, %v3430_v32, %v3434_v59  ;;  %v3442_v63 = vrot.slane %v3440_v8, 5  ;;  %v6692_v46 = vcombine.low %v8867_v43, %v8880_v27  ;;  %v3448_v18 = vrot.slane %v3446_v49, 5 }
 0x1d1   : > { %7222 = vmatprep.mubr.msk.bf16.mxu0 %vm2021_vm11, %v7521_v57  ;;  %v8886_v9 = vcombine.low %v3425_v44, %v3435_v61  ;;  %v3452_v39 = vrot.slane %v3450_v51, 4  ;;  %v3458_v41 = vrot.slane %v3456_v31, 5  ;;  %v6677_v12 = vrot.slane %v4070_v37, 9  ;;  %v8906_v61 = vld [vmem:[#allocation2 + $0x58] sm:$0xf] }
 0x1d2   : > { %v3443_v59 = vor.u32 %v3442_v63, %v3439_v16  ;;  %v4166_v55 = vrot.slane %v8873_v20, 5  ;;  %v4169_v23 = vrot.slane %v8883_v36, 5  ;;  %v3461_v32 = vshrl.u32 %v3349_v48, 16 }
 0x1d3   : > { %v3453_v30 = vor.u32 %v3452_v39, %v3448_v18  ;;  %v3464_v7 = vshll.u32 %v3349_v48, 16  ;;  %v3470_v28 = vshll.u32 %v8797_v52, 16  ;;  %v3474_v51 = vshrl.u32 %v8797_v52, 16  ;;  %v8915_v48 = vld [vmem:[#allocation2 + $0x5c] sm:$0x1] }
 0x1d4   : > { %7177 = vmatmul.mubr.msk.bf16.gmra.mxu1 %vm2021_vm11, %v6585_v5  ;;  %v3444_v8 = vrot.slane %v3443_v59, 4  ;;  %v8902_v37 = vsel %vm8525_vm2, %v6677_v12, %v4166_v55  ;;  %v4168_v57 = vrot.slane %v4166_v55, 4  ;;  %v3352_v5 = vld [vmem:[#allocation2 + $0x3c] sm:$0xf]  ;;  %v3463_v16 = vrot.slane %v3461_v32, 4 }
 0x1d5   : > { %7180 = vmatprep.mubr.msk.bf16.mxu1 %vm2021_vm11, %v6586_v4  ;;  %v3454_v44 = vrot.slane %v3453_v30, 4  ;;  %v3466_v49 = vrot.slane %v3464_v7, 5  ;;  %v3472_v63 = vrot.slane %v3470_v28, 5  ;;  %v3480_v31 = vshll.u32 %v8809_v29, 16 }
 0x1d6   : > { %v3449_v1 = vsel %vm8191_vm14, %v3444_v8, %v3448_v18  ;;  %v8912_v4 = vsel %vm8525_vm2, %v4168_v57, %v4169_v23  ;;  %v3476_v12 = vrot.slane %v3474_v51, 4  ;;  %v6678_v30 = vrot.slane %v4071_v34, 9  ;;  %v8942_v51 = vld [vmem:[#allocation2 + $0x64] sm:$0xf] }
 0x1d7   : > { %v3459_v39 = vsel %vm8191_vm14, %v3454_v44, %v3458_v41  ;;  %v6693_v52 = vcombine.low %v8902_v37, %v8912_v4  ;;  %v3467_v59 = vor.u32 %v3466_v49, %v3463_v16  ;;  %v3482_v55 = vrot.slane %v3480_v31, 5  ;;  %v4072_v44 = vld [vmem:[#allocation2 + $0x60] sm:$0xe]  ;;  %v3355_v16 = vld [vmem:[#allocation2 + $0x48] sm:$0xf] }
 0x1d8   : > { %7223 = vmatmul.mubr.msk.bf16.gmra.mxu0 %vm2021_vm11, %v7522_v3  ;;  %v8922_v18 = vcombine.low %v3449_v1, %v3459_v39  ;;  %v4173_v23 = vrot.slane %v8906_v61, 5  ;;  %v3477_v41 = vor.u32 %v3476_v12, %v3472_v63  ;;  %v4176_v32 = vrot.slane %v8915_v48, 5  ;;  %v8953_v3 = vld [vmem:[#allocation2 + $0x68] sm:$0x1] }
 0x1d9   : > { %7262 = vmatprep.mubr.msk.bf16.mxu0 %vm2021_vm11, %v6688_v54  ;;  %v3468_v29 = vrot.slane %v3467_v59, 4  ;;  %v3485_v7 = vshrl.u32 %v3352_v5, 16  ;;  %v3488_v28 = vshll.u32 %v3352_v5, 16  ;;  %v3494_v34 = vshll.u32 %v8834_v25, 16 }
 0x1da   : > { %v8932_v8 = vsel %vm8525_vm2, %v6678_v30, %v4173_v23  ;;  %v4175_v57 = vrot.slane %v4173_v23, 4  ;;  %v3478_v60 = vrot.slane %v3477_v41, 4  ;;  %v3498_v49 = vshrl.u32 %v8834_v25, 16 }
 0x1db   : > { %v3473_v33 = vsel %vm8191_vm14, %v3468_v29, %v3472_v63  ;;  %v3487_v54 = vrot.slane %v3485_v7, 4  ;;  %v3490_v15 = vrot.slane %v3488_v28, 5  ;;  %v3496_v6 = vrot.slane %v3494_v34, 5  ;;  %v4073_v7 = vld [vmem:[#allocation2 + $0x6c] sm:$0xe] }
 0x1dc   : > { %7181 = vmatmul.mubr.msk.bf16.gmra.mxu1 %vm2021_vm11, %v6587_v11  ;;  %v8950_v5 = vsel %vm8525_vm2, %v4175_v57, %v4176_v32  ;;  %v3504_v11 = vshll.u32 %v8843_v10, 16  ;;  %v3483_v25 = vsel %vm8191_vm14, %v3478_v60, %v3482_v55  ;;  %v3500_v63 = vrot.slane %v3498_v49, 4 }
 0x1dd   : > { %7184 = vmatprep.mubr.msk.bf16.mxu1 %vm2021_vm11, %v6588_v17  ;;  %v6694_v1 = vcombine.low %v8932_v8, %v8950_v5  ;;  %v6679_v58 = vrot.slane %v4072_v44, 9  ;;  %v8959_v21 = vcombine.low %v3473_v33, %v3483_v25  ;;  %v3491_v17 = vor.u32 %v3490_v15, %v3487_v54  ;;  %v9084_v8 = vld [vmem:[%s10786_s4 + $0x20] sm:$0xf] }
 0x1de   : > { %v3506_v31 = vrot.slane %v3504_v11, 5  ;;  %v4180_v39 = vrot.slane %v8942_v51, 5  ;;  %v3501_v59 = vor.u32 %v3500_v63, %v3496_v6  ;;  %v4183_v12 = vrot.slane %v8953_v3, 5 }
 0x1df   : > { %v3509_v10 = vshrl.u32 %v3355_v16, 16  ;;  %v3512_v30 = vshll.u32 %v3355_v16, 16  ;;  %v10815_v23 = vcombine.low %v8773_v56, %v8785_v53  ;;  %v3492_v55 = vrot.slane %v3491_v17, 4  ;;  %v8977_v53 = vld [vmem:[#allocation2 + $0x70] sm:$0xf] }
 0x1e0   : > { %v8969_v29 = vsel %vm8525_vm2, %v6679_v58, %v4180_v39  ;;  %v4182_v41 = vrot.slane %v4180_v39, 4  ;;  %v3518_v32 = vshll.u32 %v8873_v20, 16  ;;  %v10816_v57 = vcombine.low %v8795_v45, %v8819_v26  ;;  %v8986_v45 = vld [vmem:[#allocation2 + $0x74] sm:$0x1] }
 0x1e1   : > { %7263 = vmatmul.mubr.msk.bf16.vlgmr.msra.gmra.mxu0 %vm2021_vm11, %v10815_v23  ;;  %v3502_v28 = vrot.slane %v3501_v59, 4  ;;  %v3511_v34 = vrot.slane %v3509_v10, 4  ;;  %v3514_v44 = vrot.slane %v3512_v30, 5  ;;  %v3522_v56 = vshrl.u32 %v8873_v20, 16  ;;  %v3358_v26 = vld [vmem:[#allocation2 + $0x54] sm:$0xf] }
 0x1e2   : > { %7266 = vmatprep.mubr.msk.bf16.mxu0 %vm2021_vm11, %v10816_v57  ;;  %v3497_v16 = vsel %vm8191_vm14, %v3492_v55, %v3496_v6  ;;  %v8983_v33 = vsel %vm8525_vm2, %v4182_v41, %v4183_v12  ;;  %v3520_v60 = vrot.slane %v3518_v32, 5  ;;  %v3528_v54 = vshll.u32 %v8883_v36, 16  ;;  %v9004_v59 = vld [vmem:[#allocation2 + $0x7c] sm:$0xf]  ;;  %v4074_v30 = vld [vmem:[#allocation2 + $0x78] sm:$0xe] }
 0x1e3   : > { %v10817_v49 = vcombine.low %v8710_v24, %v8729_v62  ;;  %v3507_v20 = vsel %vm8191_vm14, %v3502_v28, %v3506_v31  ;;  %v6695_v15 = vcombine.low %v8969_v29, %v8983_v33  ;;  %v3515_v6 = vor.u32 %v3514_v44, %v3511_v34  ;;  %v9127_v33 = vld [vmem:[#allocation2 + $0xa0] sm:$0xf] }
 0x1e4   : > { %v3524_v11 = vrot.slane %v3522_v56, 4  ;;  %v10818_v25 = vcombine.low %v8745_v14, %v8766_v38  ;;  %v9000_v36 = vcombine.low %v3497_v16, %v3507_v20  ;;  %v3530_v63 = vrot.slane %v3528_v54, 5  ;;  %v3361_v56 = vld [vmem:[#allocation2 + $0x60] sm:$0xf] }
 0x1e5   : > { %7185 = vmatmul.mubr.msk.bf16.gmra.mxu1 %vm2021_vm11, %v10817_v49  ;;  %v6680_v58 = vrot.slane %v4073_v7, 9  ;;  %v4187_v24 = vrot.slane %v8977_v53, 5  ;;  %v3516_v62 = vrot.slane %v3515_v6, 4  ;;  %v4190_v31 = vrot.slane %v8986_v45, 5  ;;  %v9014_v7 = vld [vmem:[#allocation2 + $0x80] sm:$0x1] }
 0x1e6   : > { %7188 = vmatprep.mubr.msk.bf16.mxu1 %vm2021_vm11, %v10818_v25  ;;  %v3525_v17 = vor.u32 %v3524_v11, %v3520_v60  ;;  %v3533_v39 = vshrl.u32 %v3358_v26, 16  ;;  %v3536_v38 = vshll.u32 %v3358_v26, 16  ;;  %v3542_v10 = vshll.u32 %v8906_v61, 16 }
 0x1e7   : > { %v9008_v12 = vsel %vm8525_vm2, %v6680_v58, %v4187_v24  ;;  %v4189_v14 = vrot.slane %v4187_v24, 4  ;;  %v3521_v23 = vsel %vm8191_vm14, %v3516_v62, %v3520_v60  ;;  %v3546_v32 = vshrl.u32 %v8906_v61, 16  ;;  %v9049_v62 = vld [vmem:[#allocation2 + $0x88] sm:$0xf] }
 0x1e8   : > { %v3526_v55 = vrot.slane %v3525_v17, 4  ;;  %v3535_v41 = vrot.slane %v3533_v39, 4  ;;  %v3538_v28 = vrot.slane %v3536_v38, 5  ;;  %v3544_v34 = vrot.slane %v3542_v10, 5  ;;  %v3364_v38 = vld [vmem:[#allocation2 + $0x6c] sm:$0xf] }
 0x1e9   : > { %7267 = vmatmul.mubr.msk.bf16.gmra.mxu0 %vm2021_vm11, %v6691_v13  ;;  %v9022_v57 = vsel %vm8525_vm2, %v4189_v14, %v4190_v31  ;;  %v3552_v44 = vshll.u32 %v8915_v48, 16  ;;  %v3548_v22 = vrot.slane %v3546_v32, 4  ;;  %v6681_v13 = vrot.slane %v4074_v30, 9  ;;  %v9058_v14 = vld [vmem:[#allocation2 + $0x8c] sm:$0x1] }
 0x1ea   : > { %7270 = vmatprep.mubr.msk.bf16.mxu0 %vm2021_vm11, %v6692_v46  ;;  %v3531_v61 = vsel %vm8191_vm14, %v3526_v55, %v3530_v63  ;;  %v6696_v47 = vcombine.low %v9008_v12, %v9022_v57  ;;  %v3539_v60 = vor.u32 %v3538_v28, %v3535_v41  ;;  %v4194_v48 = vrot.slane %v9004_v59, 5  ;;  %v4075_v63 = vld [vmem:[#allocation2 + $0x84] sm:$0xe]  ;;  %v9136_v12 = vld [vmem:[#allocation2 + $0xa4] sm:$0x1] }
 0x1eb   : > { %v9033_v16 = vcombine.low %v3521_v23, %v3531_v61  ;;  %v3554_v54 = vrot.slane %v3552_v44, 5  ;;  %v10819_v26 = vcombine.low %v8789_v42, %v8805_v40  ;;  %v3549_v43 = vor.u32 %v3548_v22, %v3544_v34  ;;  %v4076_v61 = vld [vmem:[#allocation2 + $0x90] sm:$0xe]  ;;  %v3370_v57 = vld [vmem:[#allocation2 + $0x84] sm:$0xf] }
 0x1ec   : > { %v4197_v27 = vrot.slane %v9014_v7, 5  ;;  %v3557_v46 = vshrl.u32 %v3361_v56, 16  ;;  %v3560_v49 = vshll.u32 %v3361_v56, 16  ;;  %v3540_v20 = vrot.slane %v3539_v60, 4 }
 0x1ed   : > { %7189 = vmatmul.mubr.msk.bf16.gmra.mxu1 %vm2021_vm11, %v10819_v26  ;;  %v9045_v6 = vsel %vm8525_vm2, %v6681_v13, %v4194_v48  ;;  %v4196_v11 = vrot.slane %v4194_v48, 4  ;;  %v3566_v25 = vshll.u32 %v8942_v51, 16  ;;  %v3550_v42 = vrot.slane %v3549_v43, 4  ;;  %v3367_v13 = vld [vmem:[#allocation2 + $0x78] sm:$0xf] }
 0x1ee   : > { %7228 = vmatprep.mubr.msk.bf16.mxu1 %vm2021_vm11, %v8857_v19  ;;  %v3559_v40 = vrot.slane %v3557_v46, 4  ;;  %v3562_v58 = vrot.slane %v3560_v49, 5  ;;  %v3570_v24 = vshrl.u32 %v8942_v51, 16  ;;  %v3545_v17 = vsel %vm8191_vm14, %v3540_v20, %v3544_v34  ;;  %v9091_v48 = vld [vmem:[#allocation2 + $0x94] sm:$0xf] }
 0x1ef   : > { %v9055_v19 = vsel %vm8525_vm2, %v4196_v11, %v4197_v27  ;;  %v3568_v31 = vrot.slane %v3566_v25, 5  ;;  %v3576_v39 = vshll.u32 %v8953_v3, 16  ;;  %v3555_v10 = vsel %vm8191_vm14, %v3550_v42, %v3554_v54  ;;  %v9101_v46 = vld [vmem:[#allocation2 + $0x98] sm:$0x1] }
 0x1f0   : > { %v6697_v51 = vcombine.low %v9045_v6, %v9055_v19  ;;  %v3563_v30 = vor.u32 %v3562_v58, %v3559_v40  ;;  %v3572_v23 = vrot.slane %v3570_v24, 4  ;;  %v9068_v55 = vcombine.low %v3545_v17, %v3555_v10 }
 0x1f1   : > { %7271 = vmatmul.mubr.msk.bf16.gmra.mxu0 %vm2021_vm11, %v6693_v52  ;;  %v3578_v41 = vrot.slane %v3576_v39, 5  ;;  %v6682_v3 = vrot.slane %v4075_v63, 9  ;;  %v4201_v32 = vrot.slane %v9049_v62, 5  ;;  %v4204_v44 = vrot.slane %v9058_v14, 5 }
 0x1f2   : > { %7274 = vmatprep.mubr.msk.bf16.mxu0 %vm2021_vm11, %v6694_v1  ;;  %v3564_v28 = vrot.slane %v3563_v30, 4  ;;  %v3573_v34 = vor.u32 %v3572_v23, %v3568_v31  ;;  %v3581_v56 = vshrl.u32 %v3364_v38, 16  ;;  %v3584_v52 = vshll.u32 %v3364_v38, 16  ;;  %v4077_v38 = vld [vmem:[#allocation2 + $0x9c] sm:$0xe] }
 0x1f3   : > { %v9078_v37 = vsel %vm8525_vm2, %v6682_v3, %v4201_v32  ;;  %v4203_v4 = vrot.slane %v4201_v32, 4  ;;  %v3590_v22 = vshll.u32 %v8977_v53, 16  ;;  %v3594_v54 = vshrl.u32 %v8977_v53, 16 }
 0x1f4   : > { %v3569_v5 = vsel %vm8191_vm14, %v3564_v28, %v3568_v31  ;;  %v3574_v1 = vrot.slane %v3573_v34, 4  ;;  %v3583_v60 = vrot.slane %v3581_v56, 4  ;;  %v3586_v43 = vrot.slane %v3584_v52, 5 }
 0x1f5   : > { %7229 = vmatmul.mubr.msk.bf16.vlgmr.msra.gmra.mxu1 %vm2021_vm11, %v8886_v9  ;;  %v9098_v26 = vsel %vm8525_vm2, %v4203_v4, %v4204_v44  ;;  %v3592_v9 = vrot.slane %v3590_v22, 5  ;;  %v3600_v27 = vshll.u32 %v8986_v45, 16  ;;  %v6683_v20 = vrot.slane %v4076_v61, 9 }
 0x1f6   : > { %7295 = vmatpush3.bf16.msra.mxu1 %v8863_v2  ;;  %7232 = vmatprep.mubr.msk.bf16.mxu1 %vm2021_vm11, %v8922_v18  ;;  %v3579_v53 = vsel %vm8191_vm14, %v3574_v1, %v3578_v41  ;;  %v6698_v49 = vcombine.low %v9078_v37, %v9098_v26  ;;  %v3596_v2 = vrot.slane %v3594_v54, 4  ;;  %v3587_v11 = vor.u32 %v3586_v43, %v3583_v60  ;;  %v4078_v60 = vld [vmem:[#allocation2 + $0xa8] sm:$0xe] }
 0x1f7   : > { %7404 = vmatprep.subr.msk.bf16.mxu1 %vm2070_vm6, %v9084_v8  ;;  %v9109_v18 = vcombine.low %v3569_v5, %v3579_v53  ;;  %v3602_v25 = vrot.slane %v3600_v27, 5  ;;  %v4208_v63 = vrot.slane %v9091_v48, 5  ;;  %v4211_v42 = vrot.slane %v9101_v46, 5  ;;  %v9156_v27 = vld [vmem:[#allocation2 + $0xac] sm:$0xf]  ;;  %v9158_v53 = vpop.f32.mrf.mxu0 }
 0x1f8   : > { %v3597_v45 = vor.u32 %v3596_v2, %v3592_v9  ;;  %v3605_v40 = vshrl.u32 %v3367_v13, 16  ;;  %v3608_v58 = vshll.u32 %v3367_v13, 16  ;;  %v3588_v24 = vrot.slane %v3587_v11, 4 }
 0x1f9   : > { %7275 = vmatmul.mubr.msk.bf16.gmra.mxu0 %vm2021_vm11, %v6695_v15  ;;  %v9119_v17 = vsel %vm8525_vm2, %v6683_v20, %v4208_v63  ;;  %v4210_v31 = vrot.slane %v4208_v63, 4  ;;  %v3614_v39 = vshll.u32 %v9004_v59, 16  ;;  %v3618_v29 = vshrl.u32 %v9004_v59, 16  ;;  %v9167_v63 = vld [vmem:[#allocation2 + $0xb0] sm:$0x1] }
 0x1fa   : > { %7278 = vmatprep.mubr.msk.bf16.mxu0 %vm2021_vm11, %v6696_v47  ;;  %v3598_v10 = vrot.slane %v3597_v45, 4  ;;  %v3607_v30 = vrot.slane %v3605_v40, 4  ;;  %v3610_v23 = vrot.slane %v3608_v58, 5  ;;  %v3593_v15 = vsel %vm8191_vm14, %v3588_v24, %v3592_v9 }
 0x1fb   : > { %v9133_v41 = vsel %vm8525_vm2, %v4210_v31, %v4211_v42  ;;  %v3616_v3 = vrot.slane %v3614_v39, 5  ;;  %v3624_v32 = vshll.u32 %v9014_v7, 16  ;;  %v3620_v34 = vrot.slane %v3618_v29, 4  ;;  %v9178_v39 = vpop.f32.mrf.mxu0  ;;  %v4079_v29 = vld [vmem:[#allocation2 + $0xb4] sm:$0xe] }
 0x1fc   : > { %v3603_v59 = vsel %vm8191_vm14, %v3598_v10, %v3602_v25  ;;  %v6699_v47 = vcombine.low %v9119_v17, %v9133_v41  ;;  %v3611_v28 = vor.u32 %v3610_v23, %v3607_v30  ;;  %v6684_v56 = vrot.slane %v4077_v38, 9 }
 0x1fd   : > { %7233 = vmatmul.mubr.msk.bf16.gmra.mxu1 %vm2021_vm11, %v8959_v21  ;;  %v9146_v44 = vcombine.low %v3593_v15, %v3603_v59  ;;  %v3626_v7 = vrot.slane %v3624_v32, 5  ;;  %v4215_v61 = vrot.slane %v9127_v33, 5  ;;  %v3621_v4 = vor.u32 %v3620_v34, %v3616_v3 }
 0x1fe   : > { %7236 = vmatprep.mubr.msk.bf16.mxu1 %vm2021_vm11, %v9000_v36  ;;  %v3612_v37 = vrot.slane %v3611_v28, 4  ;;  %v4218_v21 = vrot.slane %v9136_v12, 5  ;;  %v3629_v52 = vshrl.u32 %v3370_v57, 16  ;;  %v3632_v5 = vshll.u32 %v3370_v57, 16  ;;  %v3373_v36 = vld [vmem:[#allocation2 + $0x90] sm:$0xf] }
 0x1ff   : > { %v4216_v22 = vsel %vm8525_vm2, %v6684_v56, %v4215_v61  ;;  %v4217_v13 = vrot.slane %v4215_v61, 4  ;;  %v3638_v1 = vshll.u32 %v9049_v62, 16  ;;  %v3622_v26 = vrot.slane %v3621_v4, 4  ;;  %v9188_v57 = vld [vmem:[#allocation2 + $0xb8] sm:$0xf] }
 0x200   : > { %v3617_v54 = vsel %vm8191_vm14, %v3612_v37, %v3616_v3  ;;  %v3631_v43 = vrot.slane %v3629_v52, 4  ;;  %v3642_v9 = vshrl.u32 %v9049_v62, 16  ;;  %v3634_v20 = vrot.slane %v3632_v5, 5  ;;  %v3376_v56 = vld [vmem:[#allocation2 + $0x9c] sm:$0xf] }
 0x201   : > { %7279 = vmatmul.mubr.msk.bf16.gmra.mxu0 %vm2021_vm11, %v6697_v51  ;;  %v4219_v2 = vsel %vm8525_vm2, %v4217_v13, %v4218_v21  ;;  %v3640_v11 = vrot.slane %v3638_v1, 5  ;;  %v3648_v25 = vshll.u32 %v9058_v14, 16  ;;  %v3627_v62 = vsel %vm8191_vm14, %v3622_v26, %v3626_v7  ;;  %v9195_v7 = vld [vmem:[#allocation2 + $0xbc] sm:$0x1]  ;;  %v9200_v21 = vpop.f32.mrf.mxu0 }
 0x202   : > { %7282 = vmatprep.mubr.msk.bf16.mxu0 %vm2021_vm11, %v6698_v49  ;;  %v6700_v45 = vcombine.low %v4216_v22, %v4219_v2  ;;  %v3644_v42 = vrot.slane %v3642_v9, 4  ;;  %v6685_v40 = vrot.slane %v4078_v60, 9  ;;  %v9172_v6 = vcombine.low %v3617_v54, %v3627_v62 }
 0x203   : > { %v3635_v19 = vor.u32 %v3634_v20, %v3631_v43  ;;  %v3650_v51 = vrot.slane %v3648_v25, 5  ;;  %v4222_v58 = vrot.slane %v9156_v27, 5  ;;  %v4225_v24 = vrot.slane %v9167_v63, 5  ;;  %v3379_v43 = vld [vmem:[#allocation2 + $0xa8] sm:$0xf]  ;;  %v9221_v62 = vpop.f32.mrf.mxu0 }
 0x204   : > { %v3645_v14 = vor.u32 %v3644_v42, %v3640_v11  ;;  %v3653_v31 = vshrl.u32 %v3373_v36, 16  ;;  %v3656_v49 = vshll.u32 %v3373_v36, 16  ;;  %v3662_v23 = vshll.u32 %v9091_v48, 16  ;;  %v9219_v25 = vld [vmem:[#allocation2 + $0xc4] sm:$0xf] }
 0x205   : > { %7237 = vmatmul.mubr.msk.bf16.gmra.mxu1 %vm2021_vm11, %v9033_v16  ;;  %v3636_v38 = vrot.slane %v3635_v19, 4  ;;  %v9184_v10 = vsel %vm8525_vm2, %v6685_v40, %v4222_v58  ;;  %v4224_v30 = vrot.slane %v4222_v58, 4  ;;  %v3666_v32 = vshrl.u32 %v9091_v48, 16  ;;  %v9228_v19 = vld [vmem:[#allocation2 + $0xc8] sm:$0x1] }
 0x206   : > { %7240 = vmatprep.mubr.msk.bf16.mxu1 %vm2021_vm11, %v9068_v55  ;;  %v3646_v16 = vrot.slane %v3645_v14, 4  ;;  %v3655_v15 = vrot.slane %v3653_v31, 4  ;;  %v3658_v3 = vrot.slane %v3656_v49, 5  ;;  %v3664_v28 = vrot.slane %v3662_v23, 5 }
 0x207   : > { %v3641_v59 = vsel %vm8191_vm14, %v3636_v38, %v3640_v11  ;;  %v4226_v55 = vsel %vm8525_vm2, %v4224_v30, %v4225_v24  ;;  %v3672_v34 = vshll.u32 %v9101_v46, 16  ;;  %v3668_v4 = vrot.slane %v3666_v32, 4 }
 0x208   : > { %v3651_v61 = vsel %vm8191_vm14, %v3646_v16, %v3650_v51  ;;  %v6701_v37 = vcombine.low %v9184_v10, %v4226_v55  ;;  %v3659_v48 = vor.u32 %v3658_v3, %v3655_v15  ;;  %v6686_v22 = vrot.slane %v4079_v29, 9 }
 0x209   : > { %7283 = vmatmul.mubr.msk.bf16.gmra.mxu0 %vm2021_vm11, %v6699_v47  ;;  %v9206_v52 = vcombine.low %v3641_v59, %v3651_v61  ;;  %v3674_v46 = vrot.slane %v3672_v34, 5  ;;  %v4229_v13 = vrot.slane %v9188_v57, 5  ;;  %v3669_v1 = vor.u32 %v3668_v4, %v3664_v28  ;;  %v4080_v47 = vld [vmem:[#allocation2 + $0xc0] sm:$0xe]  ;;  %v4892_v34 = vld [vmem:[#allocation2 + $0x18] sm:$0xf] }
 0x20a   : > { %7286 = vmatprep.mubr.msk.bf16.mxu0 %vm2021_vm11, %v6700_v45  ;;  %v3660_v5 = vrot.slane %v3659_v48, 4  ;;  %v4232_v60 = vrot.slane %v9195_v7, 5  ;;  %v3677_v36 = vshrl.u32 %v3376_v56, 16  ;;  %v3680_v17 = vshll.u32 %v3376_v56, 16  ;;  %v9249_v4 = vld [vmem:[#allocation2 + $0x1c] sm:$0xf] }
 0x20b   : > { %v4230_v54 = vsel %vm8525_vm2, %v6686_v22, %v4229_v13  ;;  %v4231_v26 = vrot.slane %v4229_v13, 4  ;;  %v3686_v41 = vshll.u32 %v9127_v33, 16  ;;  %v3670_v2 = vrot.slane %v3669_v1, 4  ;;  %v3382_v1 = vld [vmem:[#allocation2 + $0xb4] sm:$0xf] }
 0x20c   : > { %v3665_v9 = vsel %vm8191_vm14, %v3660_v5, %v3664_v28  ;;  %v3679_v20 = vrot.slane %v3677_v36, 4  ;;  %v3690_v11 = vshrl.u32 %v9127_v33, 16  ;;  %v3682_v42 = vrot.slane %v3680_v17, 5  ;;  %v9255_v5 = vld [vmem:[#allocation2 + $0x20] sm:$0x1] }
 0x20d   : > { %7241 = vmatmul.mubr.msk.bf16.gmra.mxu1 %vm2021_vm11, %v9109_v18  ;;  %v4233_v45 = vsel %vm8525_vm2, %v4231_v26, %v4232_v60  ;;  %v3688_v40 = vrot.slane %v3686_v41, 5  ;;  %v3696_v18 = vshll.u32 %v9136_v12, 16  ;;  %v3675_v51 = vsel %vm8191_vm14, %v3670_v2, %v3674_v46  ;;  %v9236_v12 = vpop.f32.mrf.mxu0 }
 0x20e   : > { %7244 = vmatprep.mubr.msk.bf16.mxu1 %vm2021_vm11, %v9146_v44  ;;  %v6702_v33 = vcombine.low %v4230_v54, %v4233_v45  ;;  %v3692_v58 = vrot.slane %v3690_v11, 4  ;;  %v6687_v14 = vrot.slane %v4080_v47, 9  ;;  %v9232_v24 = vcombine.low %v3665_v9, %v3675_v51 }
 0x20f   : > { %v3683_v31 = vor.u32 %v3682_v42, %v3679_v20  ;;  %v3698_v49 = vrot.slane %v3696_v18, 5  ;;  %v4236_v44 = vrot.slane %v9219_v25, 5  ;;  %v4239_v10 = vrot.slane %v9228_v19, 5  ;;  %v9257_v60 = vpop.f32.mrf.mxu0 }
 0x210   : > { %v3693_v38 = vor.u32 %v3692_v58, %v3688_v40  ;;  %v3701_v30 = vshrl.u32 %v3379_v43, 16  ;;  %v3704_v23 = vshll.u32 %v3379_v43, 16  ;;  %v3710_v3 = vshll.u32 %v9156_v27, 16 }
 0x211   : > { %7287 = vmatmul.mubr.msk.bf16.gmra.mxu0 %vm2021_vm11, %v6701_v37  ;;  %v3684_v29 = vrot.slane %v3683_v31, 4  ;;  %v4237_v16 = vsel %vm8525_vm2, %v6687_v14, %v4236_v44  ;;  %v4238_v15 = vrot.slane %v4236_v44, 4  ;;  %v3714_v28 = vshrl.u32 %v9156_v27, 16 }
 0x212   : > { %7290 = vmatprep.mubr.msk.bf16.mxu0 %vm2021_vm11, %v6702_v33  ;;  %v3694_v32 = vrot.slane %v3693_v38, 4  ;;  %v3703_v59 = vrot.slane %v3701_v30, 4  ;;  %v3706_v55 = vrot.slane %v3704_v23, 5  ;;  %v3712_v37 = vrot.slane %v3710_v3, 5  ;;  %v4895_v38 = vld [vmem:[#allocation2 + $0x24] sm:$0xf] }
 0x213   : > { %v3689_v56 = vsel %vm8191_vm14, %v3684_v29, %v3688_v40  ;;  %v4240_v61 = vsel %vm8525_vm2, %v4238_v15, %v4239_v10  ;;  %v3720_v48 = vshll.u32 %v9167_v63, 16  ;;  %v3716_v13 = vrot.slane %v3714_v28, 4  ;;  %v9266_v40 = vpop.f32.mrf.mxu0 }
 0x214   : > { %v3699_v46 = vsel %vm8191_vm14, %v3694_v32, %v3698_v49  ;;  %v6703_v22 = vcombine.low %v4237_v16, %v4240_v61  ;;  %v3707_v27 = vor.u32 %v3706_v55, %v3703_v59  ;;  %v4941_v54 = vshrl.u32 %v4892_v34, 16  ;;  %v9274_v16 = vld [vmem:[#allocation2 + $0x28] sm:$0xf] }
 0x215   : > { %7245 = vmatmul.mubr.msk.bf16.gmra.mxu1 %vm2021_vm11, %v9172_v6  ;;  %v6652_v63 = vcombine.low %v3689_v56, %v3699_v46  ;;  %v3722_v36 = vrot.slane %v3720_v48, 5  ;;  %v4944_v26 = vshll.u32 %v4892_v34, 16  ;;  %v3717_v6 = vor.u32 %v3716_v13, %v3712_v37  ;;  %v9287_v56 = vld [vmem:[#allocation2 + $0x2c] sm:$0x1]  ;;  %v3385_v46 = vld [vmem:[#allocation2 + $0xc0] sm:$0xf] }
 0x216   : > { %7248 = vmatprep.mubr.msk.bf16.mxu1 %vm2021_vm11, %v9206_v52  ;;  %v3708_v17 = vrot.slane %v3707_v27, 4  ;;  %v4950_v41 = vshll.u32 %v9249_v4, 16  ;;  %v4954_v47 = vshrl.u32 %v9249_v4, 16  ;;  %v4943_v43 = vrot.slane %v4941_v54, 4 }
 0x217   : > { %v4946_v9 = vrot.slane %v4944_v26, 5  ;;  %v4960_v2 = vshll.u32 %v9255_v5, 16  ;;  %v3725_v20 = vshrl.u32 %v3382_v1, 16  ;;  %v3718_v45 = vrot.slane %v3717_v6, 4 }
 0x218   : > { %v3713_v11 = vsel %vm8191_vm14, %v3708_v17, %v3712_v37  ;;  %v4952_v52 = vrot.slane %v4950_v41, 5  ;;  %v4956_v42 = vrot.slane %v4954_v47, 4  ;;  %v3728_v58 = vshll.u32 %v3382_v1, 16 }
 0x219   : > { %7291 = vmatmul.mubr.msk.bf16.gmra.mxu0 %vm2021_vm11, %v6703_v22  ;;  %v4947_v18 = vor.u32 %v4946_v9, %v4943_v43  ;;  %v4962_v51 = vrot.slane %v4960_v2, 5  ;;  %v3727_v33 = vrot.slane %v3725_v20, 4  ;;  %v3723_v14 = vsel %vm8191_vm14, %v3718_v45, %v3722_v36  ;;  %v9280_v55 = vpop.f32.mrf.mxu1 }
 0x21a   : > { %v4957_v31 = vor.u32 %v4956_v42, %v4952_v52  ;;  %v3734_v49 = vshll.u32 %v9188_v57, 16  ;;  %v3738_v44 = vshrl.u32 %v9188_v57, 16  ;;  %v6653_v10 = vcombine.low %v3713_v11, %v3723_v14  ;;  %v9282_v57 = vpop.f32.mrf.mxu0 }
 0x21b   : > { %v4948_v30 = vrot.slane %v4947_v18, 4  ;;  %v3730_v23 = vrot.slane %v3728_v58, 5  ;;  %v3744_v29 = vshll.u32 %v9195_v7, 16  ;;  %v5422_v59 = vsel %vm2070_vm6, %v8753_v0, 0  ;;  %v9294_v17 = vpop.f32.mrf.mxu1  ;;  %v9304_v58 = vld [vmem:[#allocation2 + $0x34] sm:$0xf] }
 0x21c   : > { %v4958_v15 = vrot.slane %v4957_v31, 4  ;;  %v3736_v3 = vrot.slane %v3734_v49, 5  ;;  %v3740_v32 = vrot.slane %v3738_v44, 4  ;;  %7329 = vmatpush3.bf16.msra.mxu0 %v5422_v59  ;;  %v4968_v0 = vshll.u32 %v4895_v38, 16 }
 0x21d   : > { %7249 = vmatmul.mubr.msk.bf16.gmra.mxu1 %vm2021_vm11, %v9232_v24  ;;  %v4953_v7 = vsel %vm8191_vm14, %v4948_v30, %v4952_v52  ;;  %v3731_v28 = vor.u32 %v3730_v23, %v3727_v33  ;;  %v3746_v34 = vrot.slane %v3744_v29, 5  ;;  %v4965_v24 = vshrl.u32 %v4895_v38, 16  ;;  %v4898_v52 = vld [vmem:[#allocation2 + $0x30] sm:$0xf]  ;;  %v9309_v38 = vpop.f32.mrf.mxu1 }
 0x21e   : > { %7252 = vmatprep.mubr.msk.bf16.mxu1 %vm2021_vm11, %v6652_v63  ;;  %v4963_v61 = vsel %vm8191_vm14, %v4958_v15, %v4962_v51  ;;  %v3741_v37 = vor.u32 %v3740_v32, %v3736_v3  ;;  %v4974_v48 = vshll.u32 %v9274_v16, 16  ;;  %v4978_v1 = vshrl.u32 %v9274_v16, 16  ;;  %v9296_v6 = vpop.f32.mrf.mxu0  ;;  %v9314_v15 = vld [vmem:[#allocation2 + $0x38] sm:$0x1] }
 0x21f   : > { %v6752_v22 = vcombine.low %v4953_v7, %v4963_v61  ;;  %v3732_v27 = vrot.slane %v3731_v28, 4  ;;  %v4967_v13 = vrot.slane %v4965_v24, 4  ;;  %v4970_v36 = vrot.slane %v4968_v0, 5 }
 0x220   : > { %v3742_v63 = vrot.slane %v3741_v37, 4  ;;  %v4976_v54 = vrot.slane %v4974_v48, 5  ;;  %v4984_v26 = vshll.u32 %v9287_v56, 16  ;;  %v4980_v47 = vrot.slane %v4978_v1, 4  ;;  %v9311_v30 = vpop.f32.mrf.mxu0  ;;  %v9321_v37 = vld [vmem:[#allocation2 + $0x40] sm:$0xf] }
 0x221   : > { %7330 = vmatprep.mubr.msk.bf16.mxu0 %vm2021_vm11, %v6752_v22  ;;  %v3737_v41 = vsel %vm8191_vm14, %v3732_v27, %v3736_v3  ;;  %v3749_v43 = vshrl.u32 %v3385_v46, 16  ;;  %v3752_v9 = vshll.u32 %v3385_v46, 16  ;;  %v4971_v20 = vor.u32 %v4970_v36, %v4967_v13  ;;  %v9324_v27 = vpop.f32.mrf.mxu1 }
 0x222   : > { %v3747_v2 = vsel %vm8191_vm14, %v3742_v63, %v3746_v34  ;;  %v4986_v11 = vrot.slane %v4984_v26, 5  ;;  %v3758_v45 = vshll.u32 %v9219_v25, 16  ;;  %v4981_v18 = vor.u32 %v4980_v47, %v4976_v54  ;;  %v9326_v13 = vpop.f32.mrf.mxu0  ;;  %v9332_v47 = vld [vmem:[#allocation2 + $0x44] sm:$0x1] }
 0x223   : > { %v6654_v42 = vcombine.low %v3737_v41, %v3747_v2  ;;  %v3751_v51 = vrot.slane %v3749_v43, 4  ;;  %v3754_v33 = vrot.slane %v3752_v9, 5  ;;  %v4972_v14 = vrot.slane %v4971_v20, 4 }
 0x224   : > { %v3760_v31 = vrot.slane %v3758_v45, 5  ;;  %v3762_v49 = vshrl.u32 %v9219_v25, 16  ;;  %v3768_v44 = vshll.u32 %v9228_v19, 16  ;;  %v4982_v23 = vrot.slane %v4981_v18, 4  ;;  %v4901_v19 = vld [vmem:[#allocation2 + $0x3c] sm:$0xf] }
 0x225   : > { %7253 = vmatmul.mubr.msk.bf16.gmra.mxu1 %vm2021_vm11, %v6653_v10  ;;  %v3755_v29 = vor.u32 %v3754_v33, %v3751_v51  ;;  %v4989_v3 = vshrl.u32 %v4898_v52, 16  ;;  %v4992_v32 = vshll.u32 %v4898_v52, 16  ;;  %v4977_v10 = vsel %vm8191_vm14, %v4972_v14, %v4976_v54  ;;  %v4904_v52 = vld [vmem:[#allocation2 + $0x48] sm:$0xf]  ;;  %v9338_v14 = vld [vmem:[#allocation2 + $0x4c] sm:$0xf] }
 0x226   : > { %7256 = vmatprep.mubr.msk.bf16.mxu1 %vm2021_vm11, %v6654_v42  ;;  %v3764_v59 = vrot.slane %v3762_v49, 4  ;;  %v3770_v7 = vrot.slane %v3768_v44, 5  ;;  %v4998_v25 = vshll.u32 %v9304_v58, 16  ;;  %v4987_v28 = vsel %vm8191_vm14, %v4982_v23, %v4986_v11  ;;  %v9340_v49 = vpop.f32.mrf.mxu0 }
 0x227   : > { %v3756_v34 = vrot.slane %v3755_v29, 4  ;;  %v4991_v24 = vrot.slane %v4989_v3, 4  ;;  %v4994_v61 = vrot.slane %v4992_v32, 5  ;;  %v6753_v0 = vcombine.low %v4977_v10, %v4987_v28  ;;  %v7523_v10 = vld [vmem:[#allocation2 + $0x18] sm:$0xff]  }
 0x228   : > { %v3765_v48 = vor.u32 %v3764_v59, %v3760_v31  ;;  %v5000_v46 = vrot.slane %v4998_v25, 5  ;;  %v5002_v22 = vshrl.u32 %v9304_v58, 16  ;;  %v5008_v36 = vshll.u32 %v9314_v15, 16 }
 0x229   : > { %v3761_v1 = vsel %vm8191_vm14, %v3756_v34, %v3760_v31  ;;  %v4995_v63 = vor.u32 %v4994_v61, %v4991_v24  ;;  %v5013_v54 = vshrl.u32 %v4901_v19, 16  ;;  %7331 = vmatmul.mubr.msk.bf16.vlgmr.msra.gmra.mxu0 %vm2021_vm11, %v6753_v0  ;;  %v5016_v43 = vshll.u32 %v4901_v19, 16  ;;  %v9350_v34 = vld [vmem:[#allocation2 + $0x50] sm:$0x1] }
 0x22a   : > { %v3766_v26 = vrot.slane %v3765_v48, 4  ;;  %v5004_v41 = vrot.slane %v5002_v22, 4  ;;  %v5022_v9 = vshll.u32 %v9321_v37, 16  ;;  %v5010_v20 = vrot.slane %v5008_v36, 5  ;;  %v7098_v31 = vpop.f32.mrf.mxu1 }
 0x22b   : > { %v4996_v2 = vrot.slane %v4995_v63, 4  ;;  %v5015_v11 = vrot.slane %v5013_v54, 4  ;;  %v5026_v45 = vshrl.u32 %v9321_v37, 16  ;;  %v5018_v51 = vrot.slane %v5016_v43, 5 }
 0x22c   : > { %v3771_v42 = vsel %vm8191_vm14, %v3766_v26, %v3770_v7  ;;  %v5005_v18 = vor.u32 %v5004_v41, %v5000_v46  ;;  %v5024_v33 = vrot.slane %v5022_v9, 5  ;;  %v5032_v3 = vshll.u32 %v9332_v47, 16  ;;  %v4907_v9 = vld [vmem:[#allocation2 + $0x54] sm:$0xf] }
 0x22d   : > { %v6655_v44 = vcombine.low %v3761_v1, %v3771_v42  ;;  %v5001_v23 = vsel %vm8191_vm14, %v4996_v2, %v5000_v46  ;;  %v5028_v29 = vrot.slane %v5026_v45, 4  ;;  %v5019_v59 = vor.u32 %v5018_v51, %v5015_v11  ;;  %v9364_v2 = vld [vmem:[#allocation2 + $0x58] sm:$0xf] }
 0x22e   : > { %v5006_v32 = vrot.slane %v5005_v18, 4  ;;  %v9347_v7 = vadd.f32 %v9158_v53, %v9280_v55  ;;  %v5037_v25 = vshrl.u32 %v4904_v52, 16  ;;  %v5034_v28 = vrot.slane %v5032_v3, 5  ;;  %v9357_v55 = vpop.f32.mrf.mxu1  ;;  %v9379_v18 = vld [vmem:[#allocation2 + $0x5c] sm:$0x1] }
 0x22f   : > { %7257 = vmatmul.mubr.msk.bf16.gmra.mxu1 %vm2021_vm11, %v6655_v44  ;;  %v5029_v19 = vor.u32 %v5028_v29, %v5024_v33  ;;  %v5040_v24 = vshll.u32 %v4904_v52, 16  ;;  %v5046_v61 = vshll.u32 %v9338_v14, 16  ;;  %v5020_v48 = vrot.slane %v5019_v59, 4 }
 0x230   : > { %v5011_v0 = vsel %vm8191_vm14, %v5006_v32, %v5010_v20  ;;  %7296 = vmatprep.mubr.msk.bf16.mxu1 %vm2021_vm11, %v7523_v10  ;;  %v5039_v46 = vrot.slane %v5037_v25, 4  ;;  %v5050_v53 = vshrl.u32 %v9338_v14, 16  ;;  %v9359_v22 = vpop.f32.mrf.mxu0  ;;  %v5056_v43 = vshll.u32 %v9350_v34, 16  ;;  %v7099_v3 = vpop.f32.mrf.mxu1 }
 0x231   : > { %v6754_v1 = vcombine.low %v5001_v23, %v5011_v0  ;;  %v5030_v63 = vrot.slane %v5029_v19, 4  ;;  %v5042_v36 = vrot.slane %v5040_v24, 5  ;;  %v5048_v54 = vrot.slane %v5046_v61, 5  ;;  %v9390_v24 = vld [vmem:[#allocation2 + $0x64] sm:$0xf] }
 0x232   : > { %v5025_v26 = vsel %vm8191_vm14, %v5020_v48, %v5024_v33  ;;  %v5052_v41 = vrot.slane %v5050_v53, 4  ;;  %v9366_v20 = vpop.f32.mrf.mxu0  ;;  %v9373_v52 = vadd.f32 %v9178_v39, %v9294_v17  ;;  %v9377_v42 = vadd.f32 %v9200_v21, %v9309_v38  ;;  %v7524_v33 = vld [vmem:[#allocation2 + $0x24] sm:$0xff]   ;;  %v4910_v17 = vld [vmem:[#allocation2 + $0x60] sm:$0xf]  ;;  %v7525_v38 = vld [vmem:[#allocation2 + $0x30] sm:$0xff]  }
 0x233   : > { %7334 = vmatprep.mubr.msk.bf16.mxu0 %vm2021_vm11, %v6754_v1  ;;  %v5035_v11 = vsel %vm8191_vm14, %v5030_v63, %v5034_v28  ;;  %v5043_v45 = vor.u32 %v5042_v36, %v5039_v46  ;;  %v5058_v23 = vrot.slane %v5056_v43, 5  ;;  %v5891_v29 = vsel %vm2070_vm6, %v9084_v8, 0  ;;  %v9397_v53 = vld [vmem:[#allocation2 + $0x68] sm:$0x1]  ;;  %v2127_v36 = vpop.f32.mrf.mxu1 }
 0x234   : > { %v6755_v51 = vcombine.low %v5025_v26, %v5035_v11  ;;  %v5053_v44 = vor.u32 %v5052_v41, %v5048_v54  ;;  %v5061_v10 = vshrl.u32 %v4907_v9, 16  ;;  %v5064_v59 = vshll.u32 %v4907_v9, 16  ;;  %v9392_v8 = vpop.f32.mrf.mxu0 }
 0x235   : > { %v5044_v32 = vrot.slane %v5043_v45, 4  ;;  %v5070_v39 = vshll.u32 %v9364_v2, 16  ;;  %v5074_v25 = vshrl.u32 %v9364_v2, 16  ;;  %v5080_v19 = vshll.u32 %v9379_v18, 16 }
 0x236   : > { %7335 = vmatmul.mubr.msk.bf16.gmra.mxu0 %vm2021_vm11, %v6755_v51  ;;  %v5054_v21 = vrot.slane %v5053_v44, 4  ;;  %v9388_v28 = vadd.f32 %v9236_v12, %v7098_v31  ;;  %v5063_v0 = vrot.slane %v5061_v10, 4  ;;  %v5066_v48 = vrot.slane %v5064_v59, 5  ;;  %v9405_v44 = vpop.f32.mrf.mxu0  ;;  %v9412_v59 = vld [vmem:[#allocation2 + $0x70] sm:$0xf] }
 0x237   : > { %7297 = vmatmul.mubr.msk.bf16.vlgmr.msra.gmra.mxu1 %vm2021_vm11, %v7524_v33  ;;  %v5049_v61 = vsel %vm8191_vm14, %v5044_v32, %v5048_v54  ;;  %v5072_v46 = vrot.slane %v5070_v39, 5  ;;  %v5076_v12 = vrot.slane %v5074_v25, 4  ;;  %v5082_v31 = vrot.slane %v5080_v19, 5  ;;  %v4913_v33 = vld [vmem:[#allocation2 + $0x6c] sm:$0xf] }
 0x238   : > { %10820 = vst [vmem:[#allocation9_spill] sm:$0xff] %v9388_v28  ;;  %v5059_v1 = vsel %vm8191_vm14, %v5054_v21, %v5058_v23  ;;  %7363 = vmatpush3.bf16.msra.mxu1 %v5891_v29  ;;  %7300 = vmatprep.mubr.msk.bf16.mxu1 %vm2021_vm11, %v7525_v38  ;;  %v5085_v63 = vshrl.u32 %v4910_v17, 16  ;;  %v5067_v41 = vor.u32 %v5066_v48, %v5063_v0  ;;  %v5088_v43 = vshll.u32 %v4910_v17, 16 }
 0x239   : > { %v6756_v26 = vcombine.low %v5049_v61, %v5059_v1  ;;  %v5094_v54 = vshll.u32 %v9390_v24, 16  ;;  %v5077_v9 = vor.u32 %v5076_v12, %v5072_v46  ;;  %v5098_v45 = vshrl.u32 %v9390_v24, 16  ;;  %v7526_v61 = vld [vmem:[#allocation2 + $0x3c] sm:$0xff]   ;;  %v9422_v1 = vld [vmem:[#allocation2 + $0x74] sm:$0x1] }
 0x23a   : > { %v5087_v11 = vrot.slane %v5085_v63, 4  ;;  %v5104_v51 = vshll.u32 %v9397_v53, 16  ;;  %v5068_v23 = vrot.slane %v5067_v41, 4  ;;  %v5090_v29 = vrot.slane %v5088_v43, 5  ;;  %v7527_v63 = vld [vmem:[#allocation2 + $0x48] sm:$0xff]  }
 0x23b   : > { %7338 = vmatprep.mubr.msk.bf16.mxu0 %vm2021_vm11, %v6756_v26  ;;  %v5096_v32 = vrot.slane %v5094_v54, 5  ;;  %v9410_v10 = vadd.f32 %v9257_v60, %v9357_v55  ;;  %v5078_v39 = vrot.slane %v5077_v9, 4  ;;  %v5100_v17 = vrot.slane %v5098_v45, 4 }
 0x23c   : > { %v5106_v21 = vrot.slane %v5104_v51, 5  ;;  %v9415_v38 = vadd.f32 %v9266_v40, %v7099_v3  ;;  %v7102_v25 = vpop.f32.mrf.mxu1  ;;  %v5073_v19 = vsel %vm8191_vm14, %v5068_v23, %v5072_v46  ;;  %v5091_v0 = vor.u32 %v5090_v29, %v5087_v11  ;;  %v4916_v3 = vld [vmem:[#allocation2 + $0x78] sm:$0xf]  ;;  %v9433_v51 = vld [vmem:[#allocation2 + $0x7c] sm:$0xf] }
 0x23d   : > { %10821 = vst [vmem:[#allocation10_spill] sm:$0xff] %v9410_v10  ;;  %v9420_v48 = vadd.f32 %v9282_v57, %v2127_v36  ;;  %v5109_v60 = vshrl.u32 %v4913_v33, 16  ;;  %v5083_v55 = vsel %vm8191_vm14, %v5078_v39, %v5082_v31  ;;  %v5101_v12 = vor.u32 %v5100_v17, %v5096_v32 }
 0x23e   : > { %10822 = vst [vmem:[#allocation11_spill] sm:$0xff] %v9415_v38  ;;  %v5112_v26 = vshll.u32 %v4913_v33, 16  ;;  %v5118_v40 = vshll.u32 %v9412_v59, 16  ;;  %v2140_v41 = vpop.f32.mrf.mxu1  ;;  %v9427_v43 = vpop.f32.mrf.mxu0  ;;  %v6757_v46 = vcombine.low %v5073_v19, %v5083_v55  ;;  %v5092_v57 = vrot.slane %v5091_v0, 4  ;;  %v9443_v19 = vld [vmem:[#allocation2 + $0x80] sm:$0x1] }
 0x23f   : > { %10823 = vst [vmem:[#allocation12_spill] sm:$0xff] %v9420_v48  ;;  %7301 = vmatmul.mubr.msk.bf16.gmra.mxu1 %vm2021_vm11, %v7526_v61  ;;  %v5111_v36 = vrot.slane %v5109_v60, 4  ;;  %v5122_v54 = vshrl.u32 %v9412_v59, 16  ;;  %v5102_v9 = vrot.slane %v5101_v12, 4  ;;  %v5128_v45 = vshll.u32 %v9422_v1, 16 }
 0x240   : > { %7304 = vmatprep.mubr.msk.bf16.mxu1 %vm2021_vm11, %v7527_v63  ;;  %v5114_v31 = vrot.slane %v5112_v26, 5  ;;  %v5120_v11 = vrot.slane %v5118_v40, 5  ;;  %v7103_v33 = vpop.f32.mrf.mxu1  ;;  %v9435_v23 = vpop.f32.mrf.mxu0  ;;  %7339 = vmatmul.mubr.msk.bf16.gmra.mxu0 %vm2021_vm11, %v6757_v46  ;;  %v5097_v29 = vsel %vm8191_vm14, %v5092_v57, %v5096_v32  ;;  %v9441_v17 = vadd.f32 %v9296_v6, %v7102_v25  ;;  %v4919_v48 = vld [vmem:[#allocation2 + $0x84] sm:$0xf] }
 0x241   : > { %v5124_v39 = vrot.slane %v5122_v54, 4  ;;  %v5133_v61 = vshrl.u32 %v4916_v3, 16  ;;  %v5107_v0 = vsel %vm8191_vm14, %v5102_v9, %v5106_v21  ;;  %v5130_v55 = vrot.slane %v5128_v45, 5  ;;  %v9461_v45 = vld [vmem:[#allocation2 + $0x88] sm:$0xf] }
 0x242   : > { %10824 = vst [vmem:[#allocation13_spill] sm:$0xff] %v9441_v17  ;;  %v5115_v60 = vor.u32 %v5114_v31, %v5111_v36  ;;  %v5136_v12 = vshll.u32 %v4916_v3, 16  ;;  %v9447_v63 = vpop.f32.mrf.mxu0  ;;  %v6758_v26 = vcombine.low %v5097_v29, %v5107_v0  ;;  %v5142_v32 = vshll.u32 %v9433_v51, 16  ;;  %v2143_v17 = vpop.f32.mrf.mxu1  ;;  %v7528_v3 = vld [vmem:[#allocation2 + $0x54] sm:$0xff]  }
 0x243   : > { %v5125_v40 = vor.u32 %v5124_v39, %v5120_v11  ;;  %v5135_v46 = vrot.slane %v5133_v61, 4  ;;  %v5146_v6 = vshrl.u32 %v9433_v51, 16  ;;  %v5152_v25 = vshll.u32 %v9443_v19, 16 }
 0x244   : > { %v5116_v57 = vrot.slane %v5115_v60, 4  ;;  %v5138_v54 = vrot.slane %v5136_v12, 5  ;;  %v9452_v38 = vpop.f32.mrf.mxu0  ;;  %7342 = vmatprep.mubr.msk.bf16.mxu0 %vm2021_vm11, %v6758_v26  ;;  %v5144_v36 = vrot.slane %v5142_v32, 5  ;;  %v9456_v9 = vadd.f32 %v9311_v30, %v2140_v41  ;;  %v7529_v60 = vld [vmem:[#allocation2 + $0x60] sm:$0xff]   ;;  %v9465_v12 = vld [vmem:[#allocation2 + $0x8c] sm:$0x1] }
 0x245   : > { %v5126_v21 = vrot.slane %v5125_v40, 4  ;;  %v9459_v31 = vadd.f32 %v9326_v13, %v7103_v33  ;;  %v5148_v61 = vrot.slane %v5146_v6, 4  ;;  %v5154_v0 = vrot.slane %v5152_v25, 5  ;;  %10827 = vst [vmem:[#allocation16_spill] sm:$0xff] %v9465_v12 }
 0x246   : > { %10825 = vst [vmem:[#allocation14_spill] sm:$0xff] %v9456_v9  ;;  %v5121_v29 = vsel %vm8191_vm14, %v5116_v57, %v5120_v11  ;;  %v5139_v39 = vor.u32 %v5138_v54, %v5135_v46  ;;  %v9471_v30 = vadd.f32 %v9340_v49, %v2143_v17  ;;  %v5157_v13 = vshrl.u32 %v4919_v48, 16  ;;  %v9473_v33 = vpop.f32.mrf.mxu0  ;;  %v4922_v54 = vld [vmem:[#allocation2 + $0x90] sm:$0xf]  ;;  %v9479_v17 = vld [vmem:[#allocation2 + $0x94] sm:$0xf] }
 0x247   : > { %10826 = vst [vmem:[#allocation15_spill] sm:$0xff] %v9459_v31  ;;  %v5131_v26 = vsel %vm8191_vm14, %v5126_v21, %v5130_v55  ;;  %7305 = vmatmul.mubr.msk.bf16.gmra.mxu1 %vm2021_vm11, %v7528_v3  ;;  %v5160_v41 = vshll.u32 %v4919_v48, 16  ;;  %v5149_v46 = vor.u32 %v5148_v61, %v5144_v36  ;;  %v5166_v32 = vshll.u32 %v9461_v45, 16 }
 0x248   : > { %10828 = vst [vmem:[#allocation17_spill] sm:$0xff] %v9471_v30  ;;  %v6759_v40 = vcombine.low %v5121_v29, %v5131_v26  ;;  %v5140_v11 = vrot.slane %v5139_v39, 4  ;;  %7308 = vmatprep.mubr.msk.bf16.mxu1 %vm2021_vm11, %v7529_v60  ;;  %v7106_v57 = vpop.f32.mrf.mxu1  ;;  %v5159_v6 = vrot.slane %v5157_v13, 4  ;;  %v5170_v25 = vshrl.u32 %v9461_v45, 16  ;;  %v9481_v48 = vpop.f32.mrf.mxu0 }
 0x249   : > { %v5162_v55 = vrot.slane %v5160_v41, 5  ;;  %v5176_v49 = vshll.u32 %v9465_v12, 16  ;;  %v5150_v3 = vrot.slane %v5149_v46, 4  ;;  %v5168_v29 = vrot.slane %v5166_v32, 5  ;;  %v9489_v41 = vld [vmem:[#allocation2 + $0x98] sm:$0x1] }
 0x24a   : > { %7343 = vmatmul.mubr.msk.bf16.gmra.mxu0 %vm2021_vm11, %v6759_v40  ;;  %v5145_v21 = vsel %vm8191_vm14, %v5140_v11, %v5144_v36  ;;  %v9487_v39 = vadd.f32 %v9359_v22, %v7106_v57  ;;  %v2156_v61 = vpop.f32.mrf.mxu1  ;;  %v5172_v26 = vrot.slane %v5170_v25, 4  ;;  %10830 = vst [vmem:[#allocation19_spill] sm:$0xff] %v9489_v41  ;;  %v5181_v30 = vshrl.u32 %v4922_v54, 16  ;;  %v9491_v31 = vpop.f32.mrf.mxu0  ;;  %v7531_v25 = vld [vmem:[#allocation2 + $0x78] sm:$0xff]  }
 0x24b   : > { %v5163_v60 = vor.u32 %v5162_v55, %v5159_v6  ;;  %v5178_v13 = vrot.slane %v5176_v49, 5  ;;  %v5155_v40 = vsel %vm8191_vm14, %v5150_v3, %v5154_v0  ;;  %v5184_v9 = vshll.u32 %v4922_v54, 16  ;;  %v7530_v6 = vld [vmem:[#allocation2 + $0x6c] sm:$0xff]   ;;  %v4925_v49 = vld [vmem:[#allocation2 + $0x9c] sm:$0xf] }
 0x24c   : > { %10829 = vst [vmem:[#allocation18_spill] sm:$0xff] %v9487_v39  ;;  %v5190_v36 = vshll.u32 %v9479_v17, 16  ;;  %v5194_v11 = vshrl.u32 %v9479_v17, 16  ;;  %v7107_v46 = vpop.f32.mrf.mxu1  ;;  %v6760_v22 = vcombine.low %v5145_v21, %v5155_v40  ;;  %v5173_v57 = vor.u32 %v5172_v26, %v5168_v29  ;;  %v9497_v39 = vpop.f32.mrf.mxu0  ;;  %v9500_v3 = vld [vmem:[#allocation2 + $0xa0] sm:$0xf] }
 0x24d   : > { %v5164_v32 = vrot.slane %v5163_v60, 4  ;;  %v5183_v55 = vrot.slane %v5181_v30, 4  ;;  %v5186_v10 = vrot.slane %v5184_v9, 5  ;;  %v5200_v0 = vshll.u32 %v9489_v41, 16  ;;  %10831 = vst [vmem:[#allocation20_spill] sm:$0xff] %v9500_v3 }
 0x24e   : > { %v5192_v12 = vrot.slane %v5190_v36, 5  ;;  %v5196_v28 = vrot.slane %v5194_v11, 4  ;;  %v2159_v54 = vpop.f32.mrf.mxu1  ;;  %7346 = vmatprep.mubr.msk.bf16.mxu0 %vm2021_vm11, %v6760_v22  ;;  %v5174_v60 = vrot.slane %v5173_v57, 4  ;;  %v9507_v30 = vadd.f32 %v9366_v20, %v2156_v61 }
 0x24f   : > { %v5169_v21 = vsel %vm8191_vm14, %v5164_v32, %v5168_v29  ;;  %7309 = vmatmul.mubr.msk.bf16.gmra.mxu1 %vm2021_vm11, %v7530_v6  ;;  %v9510_v9 = vadd.f32 %v9392_v8, %v7107_v46  ;;  %v9512_v26 = vpop.f32.mrf.mxu0  ;;  %v5187_v40 = vor.u32 %v5186_v10, %v5183_v55  ;;  %v5202_v11 = vrot.slane %v5200_v0, 5  ;;  %v9518_v29 = vld [vmem:[#allocation2 + $0xa4] sm:$0x1] }
 0x250   : > { %10832 = vst [vmem:[#allocation21_spill] sm:$0xff] %v9507_v30  ;;  %v5197_v36 = vor.u32 %v5196_v28, %v5192_v12  ;;  %7312 = vmatprep.mubr.msk.bf16.mxu1 %vm2021_vm11, %v7531_v25  ;;  %v9516_v22 = vadd.f32 %v9405_v44, %v2159_v54  ;;  %10835 = vst [vmem:[#allocation24_spill] sm:$0xff] %v9518_v29  ;;  %v5179_v32 = vsel %vm8191_vm14, %v5174_v60, %v5178_v13  ;;  %v4928_v25 = vld [vmem:[#allocation2 + $0xa8] sm:$0xf] }
 0x251   : > { %10833 = vst [vmem:[#allocation22_spill] sm:$0xff] %v9510_v9  ;;  %v5205_v20 = vshrl.u32 %v4925_v49, 16  ;;  %v5208_v61 = vshll.u32 %v4925_v49, 16  ;;  %v5214_v8 = vshll.u32 %v9500_v3, 16  ;;  %v9523_v46 = vpop.f32.mrf.mxu0  ;;  %v6761_v57 = vcombine.low %v5169_v21, %v5179_v32  ;;  %v9527_v9 = vld [vmem:[#allocation2 + $0xac] sm:$0xf] }
 0x252   : > { %10834 = vst [vmem:[#allocation23_spill] sm:$0xff] %v9516_v22  ;;  %v5188_v10 = vrot.slane %v5187_v40, 4  ;;  %v5198_v28 = vrot.slane %v5197_v36, 4  ;;  %v5218_v6 = vshrl.u32 %v9500_v3, 16  ;;  %v7110_v55 = vpop.f32.mrf.mxu1  ;;  %v5224_v22 = vshll.u32 %v9518_v29, 16  ;;  %10836 = vst [vmem:[#allocation25_spill] sm:$0xff] %v9527_v9 }
 0x253   : > { %v5207_v44 = vrot.slane %v5205_v20, 4  ;;  %v5210_v0 = vrot.slane %v5208_v61, 5  ;;  %v5216_v54 = vrot.slane %v5214_v8, 5  ;;  %v9529_v13 = vpop.f32.mrf.mxu0  ;;  %7347 = vmatmul.mubr.msk.bf16.gmra.mxu0 %vm2021_vm11, %v6761_v57  ;;  %v9537_v40 = vadd.f32 %v9427_v43, %v7110_v55  ;;  %v9539_v36 = vld [vmem:[#allocation2 + $0xb0] sm:$0x1]  ;;  %v7532_v30 = vld [vmem:[#allocation2 + $0x84] sm:$0xff]  }
 0x254   : > { %v5193_v49 = vsel %vm8191_vm14, %v5188_v10, %v5192_v12  ;;  %v5203_v21 = vsel %vm8191_vm14, %v5198_v28, %v5202_v11  ;;  %v5220_v60 = vrot.slane %v5218_v6, 4  ;;  %10838 = vst [vmem:[#allocation27_spill] sm:$0xff] %v9539_v36  ;;  %v2172_v32 = vpop.f32.mrf.mxu1  ;;  %v5226_v8 = vrot.slane %v5224_v22, 5  ;;  %v7533_v10 = vld [vmem:[#allocation2 + $0x90] sm:$0xff]  }
 0x255   : > { %10837 = vst [vmem:[#allocation26_spill] sm:$0xff] %v9537_v40  ;;  %v6762_v20 = vcombine.low %v5193_v49, %v5203_v21  ;;  %v5211_v61 = vor.u32 %v5210_v0, %v5207_v44  ;;  %v5229_v29 = vshrl.u32 %v4928_v25, 16  ;;  %v9541_v3 = vpop.f32.mrf.mxu0  ;;  %v5232_v41 = vshll.u32 %v4928_v25, 16  ;;  %v4931_v44 = vld [vmem:[#allocation2 + $0xb4] sm:$0xf] }
 0x256   : > { %v5221_v57 = vor.u32 %v5220_v60, %v5216_v54  ;;  %v5238_v12 = vshll.u32 %v9527_v9, 16  ;;  %v5242_v11 = vshrl.u32 %v9527_v9, 16  ;;  %v7111_v28 = vpop.f32.mrf.mxu1  ;;  %v5248_v22 = vshll.u32 %v9539_v36, 16  ;;  %v9552_v40 = vld [vmem:[#allocation2 + $0xb8] sm:$0xf] }
 0x257   : > { %7350 = vmatprep.mubr.msk.bf16.mxu0 %vm2021_vm11, %v6762_v20  ;;  %v5212_v43 = vrot.slane %v5211_v61, 4  ;;  %7313 = vmatmul.mubr.msk.bf16.gmra.mxu1 %vm2021_vm11, %v7532_v30  ;;  %v5231_v6 = vrot.slane %v5229_v29, 4  ;;  %v9549_v55 = vadd.f32 %v9435_v23, %v2172_v32  ;;  %v5234_v25 = vrot.slane %v5232_v41, 5  ;;  %10840 = vst [vmem:[#allocation29_spill] sm:$0xff] %v9552_v40  ;;  %v9562_v32 = vld [vmem:[#allocation2 + $0xbc] sm:$0x1] }
 0x258   : > { %v5222_v0 = vrot.slane %v5221_v57, 4  ;;  %v5240_v49 = vrot.slane %v5238_v12, 5  ;;  %v5244_v21 = vrot.slane %v5242_v11, 4  ;;  %7316 = vmatprep.mubr.msk.bf16.mxu1 %vm2021_vm11, %v7533_v10  ;;  %v2175_v60 = vpop.f32.mrf.mxu1  ;;  %v5250_v30 = vrot.slane %v5248_v22, 5  ;;  %10843 = vst [vmem:[#allocation32_spill] sm:$0xff] %v9562_v32  ;;  %v9564_v41 = vpop.f32.mrf.mxu0 }
 0x259   : > { %10839 = vst [vmem:[#allocation28_spill] sm:$0xff] %v9549_v55  ;;  %v5217_v20 = vsel %vm8191_vm14, %v5212_v43, %v5216_v54  ;;  %v9557_v29 = vadd.f32 %v9447_v63, %v7111_v28  ;;  %v9560_v23 = vadd.f32 %v9452_v38, %v2175_v60  ;;  %v5235_v57 = vor.u32 %v5234_v25, %v5231_v6  ;;  %v4934_v28 = vld [vmem:[#allocation2 + $0xc0] sm:$0xf]  ;;  %v9573_v36 = vld [vmem:[#allocation2 + $0xc4] sm:$0xf] }
 0x25a   : > { %v5227_v61 = vsel %vm8191_vm14, %v5222_v0, %v5226_v8  ;;  %v5245_v12 = vor.u32 %v5244_v21, %v5240_v49  ;;  %v5253_v11 = vshrl.u32 %v4931_v44, 16  ;;  %v7114_v10 = vpop.f32.mrf.mxu1  ;;  %v5256_v54 = vshll.u32 %v4931_v44, 16  ;;  %v9570_v38 = vpop.f32.mrf.mxu0  ;;  %v7534_v21 = vld [vmem:[#allocation2 + $0x9c] sm:$0xff]  }
 0x25b   : > { %10841 = vst [vmem:[#allocation30_spill] sm:$0xff] %v9557_v29  ;;  %10842 = vst [vmem:[#allocation31_spill] sm:$0xff] %v9560_v23  ;;  %v6763_v55 = vcombine.low %v5217_v20, %v5227_v61  ;;  %v5262_v43 = vshll.u32 %v9552_v40, 16  ;;  %v5266_v63 = vshrl.u32 %v9552_v40, 16  ;;  %v5236_v22 = vrot.slane %v5235_v57, 4 }
 0x25c   : > { %v5246_v60 = vrot.slane %v5245_v12, 4  ;;  %v5255_v23 = vrot.slane %v5253_v11, 4  ;;  %v5272_v29 = vshll.u32 %v9562_v32, 16  ;;  %v2188_v8 = vpop.f32.mrf.mxu1  ;;  %v5258_v6 = vrot.slane %v5256_v54, 5  ;;  %v9579_v20 = vld [vmem:[#allocation2 + $0xc8] sm:$0x1]  ;;  %v9581_v61 = vpop.f32.mrf.mxu0 }
 0x25d   : > { %7351 = vmatmul.mubr.msk.bf16.gmra.mxu0 %vm2021_vm11, %v6763_v55  ;;  %v5264_v0 = vrot.slane %v5262_v43, 5  ;;  %v5268_v44 = vrot.slane %v5266_v63, 4  ;;  %v9577_v25 = vadd.f32 %v9473_v33, %v7114_v10  ;;  %10845 = vst [vmem:[#allocation34_spill] sm:$0xff] %v9579_v20  ;;  %v5241_v57 = vsel %vm8191_vm14, %v5236_v22, %v5240_v49  ;;  %v7535_v55 = vld [vmem:[#allocation2 + $0xa8] sm:$0xff]  }
 0x25e   : > { %v5251_v12 = vsel %vm8191_vm14, %v5246_v60, %v5250_v30  ;;  %v5274_v11 = vrot.slane %v5272_v29, 5  ;;  %v5277_v32 = vshrl.u32 %v4934_v28, 16  ;;  %v7115_v54 = vpop.f32.mrf.mxu1  ;;  %v5259_v63 = vor.u32 %v5258_v6, %v5255_v23  ;;  %v9588_v10 = vpop.f32.mrf.mxu0  ;;  %v4937_v29 = vld [vmem:[#allocation2 + $0xcc] sm:$0xf] }
 0x25f   : > { %10844 = vst [vmem:[#allocation33_spill] sm:$0xff] %v9577_v25  ;;  %v6764_v43 = vcombine.low %v5241_v57, %v5251_v12  ;;  %v5269_v40 = vor.u32 %v5268_v44, %v5264_v0  ;;  %7317 = vmatmul.mubr.msk.bf16.gmra.mxu1 %vm2021_vm11, %v7534_v21  ;;  %v5280_v33 = vshll.u32 %v4934_v28, 16  ;;  %v5286_v9 = vshll.u32 %v9573_v36, 16  ;;  %v9598_v44 = vld [vmem:[#allocation2 + $0xd0] sm:$0xf] }
 0x260   : > { %v5279_v25 = vrot.slane %v5277_v32, 4  ;;  %v5290_v49 = vshrl.u32 %v9573_v36, 16  ;;  %v5296_v22 = vshll.u32 %v9579_v20, 16  ;;  %7320 = vmatprep.mubr.msk.bf16.mxu1 %vm2021_vm11, %v7535_v55  ;;  %v2191_v30 = vpop.f32.mrf.mxu1  ;;  %v5260_v23 = vrot.slane %v5259_v63, 4  ;;  %v9600_v32 = vpop.f32.mrf.mxu0  ;;  %v9605_v55 = vld [vmem:[#allocation2 + $0xd4] sm:$0x1] }
 0x261   : > { %7354 = vmatprep.mubr.msk.bf16.mxu0 %vm2021_vm11, %v6764_v43  ;;  %v5270_v60 = vrot.slane %v5269_v40, 4  ;;  %v5282_v6 = vrot.slane %v5280_v33, 5  ;;  %v9596_v28 = vadd.f32 %v9481_v48, %v2188_v8  ;;  %v5288_v21 = vrot.slane %v5286_v9, 5 }
 0x262   : > { %v5292_v57 = vrot.slane %v5290_v49, 4  ;;  %v5298_v12 = vrot.slane %v5296_v22, 5  ;;  %v9603_v20 = vadd.f32 %v9491_v31, %v7115_v54  ;;  %v5265_v43 = vsel %vm8191_vm14, %v5260_v23, %v5264_v0  ;;  %v9614_v63 = vpop.f32.mrf.mxu0  ;;  %v7536_v23 = vld [vmem:[#allocation2 + $0xb4] sm:$0xff]  }
 0x263   : > { %10846 = vst [vmem:[#allocation35_spill] sm:$0xff] %v9596_v28  ;;  %v5275_v40 = vsel %vm8191_vm14, %v5270_v60, %v5274_v11  ;;  %v5283_v48 = vor.u32 %v5282_v6, %v5279_v25  ;;  %v9612_v8 = vadd.f32 %v9497_v39, %v2191_v30  ;;  %v5301_v49 = vshrl.u32 %v4937_v29, 16 }
 0x264   : > { %10847 = vst [vmem:[#allocation36_spill] sm:$0xff] %v9603_v20  ;;  %v6765_v9 = vcombine.low %v5265_v43, %v5275_v40  ;;  %v5293_v33 = vor.u32 %v5292_v57, %v5288_v21  ;;  %v5304_v22 = vshll.u32 %v4937_v29, 16  ;;  %v7118_v31 = vpop.f32.mrf.mxu1  ;;  %v5310_v20 = vshll.u32 %v9598_v44, 16  ;;  %v9619_v11 = vpop.f32.mrf.mxu0  ;;  %v7537_v29 = vld [vmem:[#allocation2 + $0xc0] sm:$0xff]  }
 0x265   : > { %10848 = vst [vmem:[#allocation37_spill] sm:$0xff] %v9612_v8  ;;  %v5284_v54 = vrot.slane %v5283_v48, 4  ;;  %v5314_v28 = vshrl.u32 %v9598_v44, 16  ;;  %v5320_v0 = vshll.u32 %v9605_v55, 16  ;;  %v5303_v25 = vrot.slane %v5301_v49, 4 }
 0x266   : > { %7355 = vmatmul.mubr.msk.bf16.gmra.mxu0 %vm2021_vm11, %v6765_v9  ;;  %v5294_v39 = vrot.slane %v5293_v33, 4  ;;  %v5306_v30 = vrot.slane %v5304_v22, 5  ;;  %v9623_v60 = vadd.f32 %v9512_v26, %v7118_v31  ;;  %v2204_v6 = vpop.f32.mrf.mxu1  ;;  %v5312_v43 = vrot.slane %v5310_v20, 5  ;;  %v5617_v48 = vld [vmem:[#allocation2 + $0x18] sm:$0xe]  ;;  %v9628_v8 = vpop.f32.mrf.mxu0 }
 0x267   : > { %v5289_v57 = vsel %vm8191_vm14, %v5284_v54, %v5288_v21  ;;  %v5316_v40 = vrot.slane %v5314_v28, 4  ;;  %7321 = vmatmul.mubr.msk.bf16.gmra.mxu1 %vm2021_vm11, %v7536_v23  ;;  %v5322_v49 = vrot.slane %v5320_v0, 5  ;;  %v9634_v26 = vadd.f32 %v9523_v46, %v2204_v6  ;;  %v5618_v31 = vld [vmem:[#allocation2 + $0x24] sm:$0xe] }
 0x268   : > { %10849 = vst [vmem:[#allocation38_spill] sm:$0xff] %v9623_v60  ;;  %v5299_v9 = vsel %vm8191_vm14, %v5294_v39, %v5298_v12  ;;  %v5307_v33 = vor.u32 %v5306_v30, %v5303_v25  ;;  %7324 = vmatprep.mubr.msk.bf16.mxu1 %vm2021_vm11, %v7537_v29  ;;  %v7119_v22 = vpop.f32.mrf.mxu1  ;;  %v5683_v54 = vrot.slane %v9249_v4, 5  ;;  %v9640_v23 = vpop.f32.mrf.mxu0  ;;  %v6784_v39 = vrot.slane %v5617_v48, 9  ;;  %v5619_v48 = vld [vmem:[#allocation2 + $0x30] sm:$0xe] }
 0x269   : > { %v6766_v21 = vcombine.low %v5289_v57, %v5299_v9  ;;  %v5317_v20 = vor.u32 %v5316_v40, %v5312_v43  ;;  %v9637_v28 = vadd.f32 %v9529_v13, %v7119_v22  ;;  %v5686_v0 = vrot.slane %v9255_v5, 5 }
 0x26a   : > { %v5308_v60 = vrot.slane %v5307_v33, 4  ;;  %v2207_v12 = vpop.f32.mrf.mxu1  ;;  %v5690_v25 = vrot.slane %v9274_v16, 5  ;;  %v5685_v29 = vrot.slane %v5683_v54, 4  ;;  %v6785_v13 = vrot.slane %v5618_v31, 9  ;;  %v9648_v6 = vpop.f32.mrf.mxu0  ;;  %v7538_v33 = vld [vmem:[#allocation2 + $0xcc] sm:$0xff]  }
 0x26b   : > { %10850 = vst [vmem:[#allocation39_spill] sm:$0xff] %v9637_v28  ;;  %7358 = vmatprep.mubr.msk.bf16.mxu0 %vm2021_vm11, %v6766_v21  ;;  %v5318_v46 = vrot.slane %v5317_v20, 4  ;;  %v9646_v30 = vadd.f32 %v9541_v3, %v2207_v12  ;;  %v5684_v40 = vsel %vm8525_vm2, %v6784_v39, %v5683_v54  ;;  %v5693_v16 = vrot.slane %v9287_v56, 5  ;;  %v5620_v31 = vld [vmem:[#allocation2 + $0x3c] sm:$0xe] }
 0x26c   : > { %v5313_v4 = vsel %vm8191_vm14, %v5308_v60, %v5312_v43  ;;  %v7122_v57 = vpop.f32.mrf.mxu1  ;;  %v5692_v5 = vrot.slane %v5690_v25, 4  ;;  %v5687_v22 = vsel %vm8525_vm2, %v5685_v29, %v5686_v0  ;;  %v5691_v60 = vsel %vm8525_vm2, %v6785_v13, %v5690_v25  ;;  %v9664_v43 = vpop.f32.mrf.mxu0  ;;  %v5621_v25 = vld [vmem:[#allocation2 + $0x48] sm:$0xe]  ;;  %v5622_v13 = vld [vmem:[#allocation2 + $0x54] sm:$0xe] }
 0x26d   : > { %10851 = vst [vmem:[#allocation40_spill] sm:$0xff] %v9646_v30  ;;  %v5323_v9 = vsel %vm8191_vm14, %v5318_v46, %v5322_v49  ;;  %v9658_v3 = vadd.f32 %v9564_v41, %v7122_v57  ;;  %v6800_v20 = vcombine.low %v5684_v40, %v5687_v22  ;;  %v5697_v49 = vrot.slane %v9304_v58, 5 }
 0x26e   : > { %v6767_v21 = vcombine.low %v5313_v4, %v5323_v9  ;;  %v2220_v56 = vpop.f32.mrf.mxu1  ;;  %v5694_v50 = vsel %vm8525_vm2, %v5692_v5, %v5693_v16  ;;  %v9671_v41 = vadd.f32 %v9221_v62, %v9324_v27  ;;  %v6786_v39 = vrot.slane %v5619_v48, 9  ;;  %v9677_v0 = vpop.f32.mrf.mxu0 }
 0x26f   : > { %10852 = vst [vmem:[#allocation41_spill] sm:$0xff] %v9658_v3  ;;  %7325 = vmatmul.mubr.msk.bf16.gmra.mxu1 %vm2021_vm11, %v7538_v33  ;;  %v9675_v54 = vadd.f32 %v9570_v38, %v2220_v56  ;;  %v6801_v12 = vcombine.low %v5691_v60, %v5694_v50  ;;  %v5699_v58 = vrot.slane %v5697_v49, 4  ;;  %v5700_v29 = vrot.slane %v9314_v15, 5 }
 0x270   : > { %7359 = vmatmul.mubr.msk.bf16.gmra.mxu0 %vm2021_vm11, %v6767_v21  ;;  %7364 = vmatprep.mubr.msk.bf16.mxu1 %vm2021_vm11, %v6800_v20  ;;  %v7123_v46 = vpop.f32.mrf.mxu1  ;;  %v6787_v62 = vrot.slane %v5620_v31, 9  ;;  %v5704_v27 = vrot.slane %v9321_v37, 5  ;;  %v5698_v4 = vsel %vm8525_vm2, %v6786_v39, %v5697_v49  ;;  %v9688_v57 = vpop.f32.mrf.mxu0  ;;  %v5707_v40 = vrot.slane %v9332_v47, 5 }
 0x271   : > { %10853 = vst [vmem:[#allocation42_spill] sm:$0xff] %v9675_v54  ;;  %v9684_v38 = vadd.f32 %v9581_v61, %v7123_v46  ;;  %v5711_v5 = vrot.slane %v9338_v14, 5  ;;  %v5701_v15 = vsel %vm8525_vm2, %v5699_v58, %v5700_v29  ;;  %v6788_v9 = vrot.slane %v5621_v25, 9  ;;  %v5623_v14 = vld [vmem:[#allocation2 + $0x60] sm:$0xe] }
 0x272   : > { %v2223_v16 = vpop.f32.mrf.mxu1  ;;  %v5706_v48 = vrot.slane %v5704_v27, 4  ;;  %v5714_v37 = vrot.slane %v9350_v34, 5  ;;  %v9700_v33 = vsel %vm8525_vm2, %v6787_v62, %v5704_v27  ;;  %v9702_v22 = vpop.f32.mrf.mxu0  ;;  %v6789_v60 = vrot.slane %v5622_v13, 9  ;;  %v5624_v46 = vld [vmem:[#allocation2 + $0x6c] sm:$0xe] }
 0x273   : > { %10854 = vst [vmem:[#allocation43_spill] sm:$0xff] %v9684_v38  ;;  %v9696_v61 = vadd.f32 %v9588_v10, %v2223_v16  ;;  %v5713_v47 = vrot.slane %v5711_v5, 4  ;;  %v6802_v21 = vcombine.low %v5698_v4, %v5701_v15  ;;  %v9708_v34 = vsel %vm8525_vm2, %v6788_v9, %v5711_v5  ;;  %v10865_v38 = vld [vmem:[#allocation27_spill] sm:$0xff] }
 0x274   : > { %v7162_v31 = vpop.f32.mrf.mxu1  ;;  %v5708_v20 = vsel %vm8525_vm2, %v5706_v48, %v5707_v40  ;;  %v5718_v10 = vrot.slane %v9364_v2, 5  ;;  %v9718_v49 = vpop.f32.mrf.mxu0  ;;  %v5721_v39 = vrot.slane %v9379_v18, 5  ;;  %v5725_v25 = vrot.slane %v9390_v24, 5  ;;  %v5625_v40 = vld [vmem:[#allocation2 + $0x78] sm:$0xe] }
 0x275   : > { %10855 = vst [vmem:[#allocation44_spill] sm:$0xff] %v9696_v61  ;;  %v9712_v56 = vadd.f32 %v7162_v31, %v9347_v7  ;;  %v9716_v50 = vsel %vm8525_vm2, %v5713_v47, %v5714_v37  ;;  %v6803_v29 = vcombine.low %v9700_v33, %v5708_v20  ;;  %v6790_v7 = vrot.slane %v5623_v14, 9  ;;  %v5626_v47 = vld [vmem:[#allocation2 + $0x84] sm:$0xe] }
 0x276   : > { %v2824_v58 = vpop.f32.mrf.mxu1  ;;  %v6804_v2 = vcombine.low %v9708_v34, %v9716_v50  ;;  %v5720_v62 = vrot.slane %v5718_v10, 4  ;;  %v9729_v13 = vpop.f32.mrf.mxu0  ;;  %v9733_v18 = vsel %vm8525_vm2, %v6789_v60, %v5718_v10  ;;  %v5727_v24 = vrot.slane %v5725_v25, 4  ;;  %v5627_v50 = vld [vmem:[#allocation2 + $0x90] sm:$0xe] }
 0x277   : > { %7365 = vmatmul.mubr.msk.bf16.vlgmr.msra.gmra.mxu1 %vm2021_vm11, %v6801_v12  ;;  %v9727_v27 = vadd.f32 %v2824_v58, %v9373_v52  ;;  %v5728_v4 = vrot.slane %v9397_v53, 5  ;;  %v9743_v52 = vsel %vm8525_vm2, %v6790_v7, %v5725_v25  ;;  %v6791_v12 = vrot.slane %v5624_v46, 9  ;;  %v10856_v58 = vld [vmem:[#allocation9_spill] sm:$0xff] }
 0x278   : > { %7368 = vmatprep.mubr.msk.bf16.mxu1 %vm2021_vm11, %v6802_v21  ;;  %v7163_v5 = vpop.f32.mrf.mxu1  ;;  %v9739_v16 = vsel %vm8525_vm2, %v5720_v62, %v5721_v39  ;;  %v5732_v15 = vrot.slane %v9412_v59, 5  ;;  %v9749_v9 = vpop.f32.mrf.mxu0  ;;  %v5739_v33 = vrot.slane %v9433_v51, 5  ;;  %v6792_v31 = vrot.slane %v5625_v40, 9  ;;  %v5628_v40 = vld [vmem:[#allocation2 + $0x9c] sm:$0xe] }
 0x279   : > { %v9747_v48 = vadd.f32 %v7163_v5, %v9377_v42  ;;  %v9755_v37 = vsel %vm8525_vm2, %v5727_v24, %v5728_v4  ;;  %v5735_v42 = vrot.slane %v9422_v1, 5  ;;  %v5742_v51 = vrot.slane %v9443_v19, 5 }
 0x27a   : > { %v2827_v60 = vpop.f32.mrf.mxu1  ;;  %v5734_v59 = vrot.slane %v5732_v15, 4  ;;  %v9764_v20 = vpop.f32.mrf.mxu0  ;;  %v9768_v34 = vsel %vm8525_vm2, %v6791_v12, %v5732_v15  ;;  %v5741_v10 = vrot.slane %v5739_v33, 4  ;;  %v9777_v1 = vsel %vm8525_vm2, %v6792_v31, %v5739_v33  ;;  %v10857_v15 = vld [vmem:[#allocation16_spill] sm:$0xff] }
 0x27b   : > { %v9762_v21 = vadd.f32 %v2827_v60, %v9671_v41  ;;  %v6793_v41 = vrot.slane %v5626_v47, 9  ;;  %v5746_v46 = vrot.slane %v9461_v45, 5  ;;  %v5753_v4 = vrot.slane %v9479_v17, 5  ;;  %v10858_v60 = vld [vmem:[#allocation10_spill] sm:$0xff] }
 0x27c   : > { %v7166_v39 = vpop.f32.mrf.mxu1  ;;  %v9773_v25 = vsel %vm8525_vm2, %v5734_v59, %v5735_v42  ;;  %v9783_v7 = vpop.f32.mrf.mxu0  ;;  %v9789_v24 = vsel %vm8525_vm2, %v5741_v10, %v5742_v51  ;;  %v5749_v33 = vrot.slane %v10857_v15, 5  ;;  %v6794_v47 = vrot.slane %v5627_v50, 9  ;;  %v10859_v10 = vld [vmem:[#allocation19_spill] sm:$0xff]  ;;  %v10860_v15 = vld [vmem:[#allocation20_spill] sm:$0xff] }
 0x27d   : > { %v9781_v62 = vadd.f32 %v7166_v39, %v10856_v58  ;;  %v5748_v45 = vrot.slane %v5746_v46, 4  ;;  %v9803_v31 = vsel %vm8525_vm2, %v6793_v41, %v5746_v46  ;;  %v5755_v17 = vrot.slane %v5753_v4, 4  ;;  %v5629_v39 = vld [vmem:[#allocation2 + $0xa8] sm:$0xe] }
 0x27e   : > { %v2840_v5 = vpop.f32.mrf.mxu1  ;;  %v9799_v42 = vpop.f32.mrf.mxu0  ;;  %v5756_v51 = vrot.slane %v10859_v10, 5  ;;  %v10861_v41 = vld [vmem:[#allocation11_spill] sm:$0xff]  ;;  %v6796_v14 = vrot.slane %v5629_v39, 9  ;;  %v5770_v54 = vrot.slane %v10865_v38, 5 }
 0x27f   : > { %7369 = vmatmul.mubr.msk.bf16.gmra.mxu1 %vm2021_vm11, %v6803_v29  ;;  %v9797_v59 = vadd.f32 %v2840_v5, %v10858_v60  ;;  %v9809_v50 = vsel %vm8525_vm2, %v5748_v45, %v5749_v33  ;;  %v9813_v29 = vsel %vm8525_vm2, %v6794_v47, %v5753_v4  ;;  %v6795_v5 = vrot.slane %v5628_v40, 9  ;;  %v10862_v45 = vld [vmem:[#allocation25_spill] sm:$0xff]  ;;  %v10863_v47 = vld [vmem:[#allocation24_spill] sm:$0xff] }
 0x280   : > { %7372 = vmatprep.mubr.msk.bf16.mxu1 %vm2021_vm11, %v6804_v2  ;;  %v7167_v58 = vpop.f32.mrf.mxu1  ;;  %v5760_v60 = vrot.slane %v10860_v15, 5  ;;  %v9817_v12 = vpop.f32.mrf.mxu0  ;;  %v9823_v2 = vsel %vm8525_vm2, %v5755_v17, %v5756_v51  ;;  %v5767_v33 = vrot.slane %v10862_v45, 5  ;;  %v5763_v15 = vrot.slane %v10863_v47, 5  ;;  %v10866_v47 = vld [vmem:[#allocation29_spill] sm:$0xff] }
 0x281   : > { %v2958_v46 = vadd.f32 %v7167_v58, %v10861_v41  ;;  %v5630_v58 = vld [vmem:[#allocation2 + $0xb4] sm:$0xe]  ;;  %v10867_v4 = vld [vmem:[#allocation13_spill] sm:$0xff] }
 0x282   : > { %v2843_v19 = vpop.f32.mrf.mxu1  ;;  %v5762_v40 = vrot.slane %v5760_v60, 4  ;;  %v10864_v41 = vld [vmem:[#allocation12_spill] sm:$0xff]  ;;  %v9830_v61 = vpop.f32.mrf.mxu0  ;;  %v5769_v10 = vrot.slane %v5767_v33, 4  ;;  %v9835_v51 = vsel %vm8525_vm2, %v6795_v5, %v5760_v60  ;;  %v9843_v39 = vsel %vm8525_vm2, %v6796_v14, %v5767_v33 }
 0x283   : > { %v2956_v53 = vadd.f32 %v2843_v19, %v10864_v41  ;;  %v5774_v19 = vrot.slane %v10866_v47, 5  ;;  %v5632_v41 = vld [vmem:[#allocation2 + $0xcc] sm:$0xe]  ;;  %v6797_v60 = vrot.slane %v5630_v58, 9  ;;  %v10871_v58 = vcombine.low %v9743_v52, %v9755_v37 }
 0x284   : > { %v7170_v17 = vpop.f32.mrf.mxu1  ;;  %v9839_v45 = vsel %vm8525_vm2, %v5762_v40, %v5763_v15  ;;  %v9847_v30 = vpop.f32.mrf.mxu0  ;;  %v9853_v5 = vsel %vm8525_vm2, %v5769_v10, %v5770_v54  ;;  %v10868_v15 = vld [vmem:[#allocation32_spill] sm:$0xff]  ;;  %v6799_v10 = vrot.slane %v5632_v41, 9  ;;  %v9890_v37 = vadd.f32 %v9614_v63, %v9727_v27 }
 0x285   : > { %v2961_v3 = vadd.f32 %v7170_v17, %v10867_v4  ;;  %v6812_v14 = vcombine.low %v9843_v39, %v9853_v5  ;;  %v5776_v33 = vrot.slane %v5774_v19, 4  ;;  %v5777_v47 = vrot.slane %v10868_v15, 5  ;;  %v10870_v17 = vld [vmem:[#allocation14_spill] sm:$0xff] }
 0x286   : > { %v2856_v40 = vpop.f32.mrf.mxu1  ;;  %v10869_v4 = vcombine.low %v9733_v18, %v9739_v16  ;;  %v9863_v38 = vpop.f32.mrf.mxu0  ;;  %v9867_v54 = vsel %vm8525_vm2, %v6797_v60, %v5774_v19  ;;  %v5788_v16 = vrot.slane %v9598_v44, 5  ;;  %v10872_v19 = vld [vmem:[#allocation15_spill] sm:$0xff]  ;;  %v9909_v63 = vadd.f32 %v9640_v23, %v9781_v62  ;;  %v10874_v23 = vld [vmem:[#allocation18_spill] sm:$0xff] }
 0x287   : > { %v2959_v28 = vadd.f32 %v2856_v40, %v10870_v17  ;;  %v9875_v18 = vsel %vm8525_vm2, %v5776_v33, %v5777_v47  ;;  %v5791_v40 = vrot.slane %v9605_v55, 5  ;;  %v9913_v27 = vadd.f32 %v9648_v6, %v9797_v59 }
 0x288   : > { %7373 = vmatmul.mubr.msk.bf16.gmra.mxu1 %vm2021_vm11, %v10869_v4  ;;  %v7171_v15 = vpop.f32.mrf.mxu1  ;;  %v9881_v4 = vadd.f32 %v9600_v32, %v9712_v56  ;;  %v9884_v60 = vpop.f32.mrf.mxu0  ;;  %v6813_v52 = vcombine.low %v9867_v54, %v9875_v18  ;;  %v9894_v44 = vsel %vm8525_vm2, %v6799_v10, %v5788_v16  ;;  %v5790_v55 = vrot.slane %v5788_v16, 4  ;;  %v10873_v56 = vld [vmem:[#allocation17_spill] sm:$0xff] }
 0x289   : > { %7376 = vmatprep.mubr.msk.bf16.mxu1 %vm2021_vm11, %v10871_v58  ;;  %v2962_v41 = vadd.f32 %v7171_v15, %v10872_v19  ;;  %v9898_v32 = vadd.f32 %v9619_v11, %v9747_v48  ;;  %v9905_v58 = vadd.f32 %v9628_v8, %v9762_v21  ;;  %v9920_v48 = vadd.f32 %v9664_v43, %v2958_v46 }
 0x28a   : > { %v2859_v33 = vpop.f32.mrf.mxu1  ;;  %v9901_v17 = vpop.f32.mrf.mxu0  ;;  %v9917_v11 = vsel %vm8525_vm2, %v5790_v55, %v5791_v40  ;;  %v9923_v15 = vadd.f32 %v9677_v0, %v2956_v53  ;;  %v9926_v8 = vadd.f32 %v9688_v57, %v2961_v3  ;;  %v9932_v59 = vadd.f32 %v9702_v22, %v2959_v28  ;;  %v10876_v0 = vld [vmem:[#allocation21_spill] sm:$0xff] }
 0x28b   : > { %v2960_v47 = vadd.f32 %v2859_v33, %v10873_v56  ;;  %v6815_v6 = vcombine.low %v9894_v44, %v9917_v11  ;;  %v9935_v16 = vadd.f32 %v9718_v49, %v2962_v41  ;;  %v10875_v3 = vcombine.low %v9768_v34, %v9773_v25  ;;  %v10878_v49 = vld [vmem:[#allocation22_spill] sm:$0xff]  ;;  %v10879_v25 = vld [vmem:[#allocation23_spill] sm:$0xff] }
 0x28c   : > { %v7174_v10 = vpop.f32.mrf.mxu1  ;;  %v7217_v62 = vpop.f32.mrf.mxu0  ;;  %v10877_v28 = vcombine.low %v9777_v1, %v9789_v24 }
 0x28d   : > { %v2965_v21 = vadd.f32 %v7174_v10, %v10874_v23  ;;  %v9938_v46 = vadd.f32 %v9729_v13, %v2960_v47  ;;  %v10880_v47 = vld [vmem:[#allocation26_spill] sm:$0xff] }
 0x28e   : > { %v2872_v43 = vpop.f32.mrf.mxu1  ;;  %v3264_v53 = vpop.f32.mrf.mxu0 }
 0x28f   : > { %v2963_v57 = vadd.f32 %v2872_v43, %v10876_v0  ;;  %v9946_v40 = vadd.f32 %v9749_v9, %v2965_v21  ;;  %v10881_v21 = vcombine.low %v9803_v31, %v9809_v50  ;;  %v10885_v50 = vld [vmem:[#allocation31_spill] sm:$0xff] }
 0x290   : > { %7377 = vmatmul.mubr.msk.bf16.gmra.mxu1 %vm2021_vm11, %v10875_v3  ;;  %v7175_v22 = vpop.f32.mrf.mxu1  ;;  %v7220_v19 = vpop.f32.mrf.mxu0 }
 0x291   : > { %7380 = vmatprep.mubr.msk.bf16.mxu1 %vm2021_vm11, %v10877_v28  ;;  %v2966_v13 = vadd.f32 %v7175_v22, %v10878_v49  ;;  %v9954_v41 = vadd.f32 %v9764_v20, %v2963_v57  ;;  %v10882_v20 = vld [vmem:[#allocation28_spill] sm:$0xff] }
 0x292   : > { %v2875_v34 = vpop.f32.mrf.mxu1  ;;  %v3277_v55 = vpop.f32.mrf.mxu0 }
 0x293   : > { %v2964_v33 = vadd.f32 %v2875_v34, %v10879_v25  ;;  %v9958_v56 = vadd.f32 %v9783_v7, %v2966_v13  ;;  %v10883_v7 = vcombine.low %v9813_v29, %v9823_v2  ;;  %v5781_v25 = vrot.slane %v9573_v36, 5  ;;  %v10886_v29 = vld [vmem:[#allocation33_spill] sm:$0xff] }
 0x294   : > { %v7178_v9 = vpop.f32.mrf.mxu1  ;;  %v7221_v1 = vpop.f32.mrf.mxu0 }
 0x295   : > { %v2969_v10 = vadd.f32 %v7178_v9, %v10880_v47  ;;  %v9962_v24 = vadd.f32 %v9799_v42, %v2964_v33  ;;  %v10884_v42 = vld [vmem:[#allocation30_spill] sm:$0xff] }
 0x296   : > { %v2888_v23 = vpop.f32.mrf.mxu1  ;;  %v3280_v3 = vpop.f32.mrf.mxu0 }
 0x297   : > { %v2967_v43 = vadd.f32 %v2888_v23, %v10882_v20  ;;  %v9970_v0 = vadd.f32 %v9817_v12, %v2969_v10  ;;  %v10888_v23 = vld [vmem:[#allocation35_spill] sm:$0xff]  ;;  %v5783_v20 = vrot.slane %v5781_v25, 4 }
 0x298   : > { %7381 = vmatmul.mubr.msk.bf16.gmra.mxu1 %vm2021_vm11, %v10881_v21  ;;  %v7179_v57 = vpop.f32.mrf.mxu1  ;;  %v7224_v22 = vpop.f32.mrf.mxu0 }
 0x299   : > { %7384 = vmatprep.mubr.msk.bf16.mxu1 %vm2021_vm11, %v10883_v7  ;;  %v2970_v28 = vadd.f32 %v7179_v57, %v10884_v42  ;;  %v9978_v49 = vadd.f32 %v9830_v61, %v2967_v43  ;;  %v10887_v61 = vcombine.low %v9835_v51, %v9839_v45  ;;  %v5631_v43 = vld [vmem:[#allocation2 + $0xc0] sm:$0xe]  ;;  %v10889_v7 = vld [vmem:[#allocation36_spill] sm:$0xff] }
 0x29a   : > { %v2891_v31 = vpop.f32.mrf.mxu1  ;;  %v3293_v34 = vpop.f32.mrf.mxu0  ;;  %v10890_v42 = vld [vmem:[#allocation34_spill] sm:$0xff] }
 0x29b   : > { %v2968_v13 = vadd.f32 %v2891_v31, %v10885_v50  ;;  %v9983_v12 = vadd.f32 %v9847_v30, %v2970_v28  ;;  %v5784_v51 = vrot.slane %v10890_v42, 5  ;;  %v10891_v50 = vld [vmem:[#allocation37_spill] sm:$0xff]  ;;  %v10894_v42 = vld [vmem:[#allocation40_spill] sm:$0xff] }
 0x29c   : > { %v7182_v33 = vpop.f32.mrf.mxu1  ;;  %v7225_v9 = vpop.f32.mrf.mxu0 }
 0x29d   : > { %v2973_v2 = vadd.f32 %v7182_v33, %v10886_v29  ;;  %v9987_v47 = vadd.f32 %v9863_v38, %v2968_v13  ;;  %v6798_v13 = vrot.slane %v5631_v43, 9  ;;  %v5785_v39 = vsel %vm8525_vm2, %v5783_v20, %v5784_v51  ;;  %v10892_v29 = vld [vmem:[#allocation38_spill] sm:$0xff]  ;;  %v10895_v51 = vld [vmem:[#allocation41_spill] sm:$0xff] }
 0x29e   : > { %v2904_v10 = vpop.f32.mrf.mxu1  ;;  %v3296_v36 = vpop.f32.mrf.mxu0 }
 0x29f   : > { %v2971_v21 = vadd.f32 %v2904_v10, %v10888_v23  ;;  %v9995_v30 = vadd.f32 %v9884_v60, %v2973_v2  ;;  %v5782_v10 = vsel %vm8525_vm2, %v6798_v13, %v5781_v25  ;;  %v10893_v25 = vld [vmem:[#allocation39_spill] sm:$0xff] }
 0x2a0   : > { %7385 = vmatmul.mubr.msk.bf16.gmra.mxu1 %vm2021_vm11, %v10887_v61  ;;  %v7183_v38 = vpop.f32.mrf.mxu1  ;;  %v6814_v23 = vcombine.low %v5782_v10, %v5785_v39 }
 0x2a1   : > { %7388 = vmatprep.mubr.msk.bf16.mxu1 %vm2021_vm11, %v6812_v14  ;;  %v2974_v57 = vadd.f32 %v7183_v38, %v10889_v7  ;;  %v10003_v45 = vpop.f32.mrf.mxu0  ;;  %v10006_v28 = vadd.f32 %v9901_v17, %v2971_v21 }
 0x2a2   : > { %v2907_v31 = vpop.f32.mrf.mxu1 }
 0x2a3   : > { %v2972_v60 = vadd.f32 %v2907_v31, %v10891_v50  ;;  %v10011_v5 = vpop.f32.mrf.mxu0  ;;  %v10013_v14 = vadd.f32 %v7217_v62, %v2974_v57 }
 0x2a5   : > { %v7186_v33 = vpop.f32.mrf.mxu1  ;;  %v10018_v61 = vpop.f32.mrf.mxu0  ;;  %v10020_v17 = vadd.f32 %v3264_v53, %v2972_v60 }
 0x2a6   : > { %v2977_v2 = vadd.f32 %v7186_v33, %v10892_v29  ;;  %v10897_v29 = vld [vmem:[#allocation43_spill] sm:$0xff] }
 0x2a7   : > { %v2920_v21 = vpop.f32.mrf.mxu1  ;;  %v10027_v20 = vpop.f32.mrf.mxu0 }
 0x2a8   : > { %7389 = vmatmul.mubr.msk.bf16.gmra.mxu1 %vm2021_vm11, %v6813_v52  ;;  %v2975_v62 = vadd.f32 %v2920_v21, %v9634_v26  ;;  %v10029_v38 = vadd.f32 %v7220_v19, %v2977_v2  ;;  %v10898_v21 = vld [vmem:[#allocation44_spill] sm:$0xff] }
 0x2a9   : > { %7392 = vmatprep.mubr.msk.bf16.mxu1 %vm2021_vm11, %v6814_v23  ;;  %v7187_v35 = vpop.f32.mrf.mxu1  ;;  %v10033_v53 = vpop.f32.mrf.mxu0 }
 0x2aa   : > { %v2978_v43 = vadd.f32 %v7187_v35, %v10893_v25  ;;  %v10035_v7 = vadd.f32 %v3277_v55, %v2975_v62  ;;  %v10896_v55 = vld [vmem:[#allocation42_spill] sm:$0xff] }
 0x2ab   : > { %v2923_v57 = vpop.f32.mrf.mxu1  ;;  %v10038_v18 = vpop.f32.mrf.mxu0 }
 0x2ac   : > { %v2976_v54 = vadd.f32 %v2923_v57, %v10894_v42  ;;  %v10040_v52 = vadd.f32 %v7221_v1, %v2978_v43 }
 0x2ad   : > { %v7190_v26 = vpop.f32.mrf.mxu1  ;;  %v10043_v31 = vpop.f32.mrf.mxu0 }
 0x2ae   : > { %v2981_v19 = vadd.f32 %v7190_v26, %v10895_v51  ;;  %v10045_v50 = vadd.f32 %v3280_v3, %v2976_v54 }
 0x2af   : > { %v2936_v60 = vpop.f32.mrf.mxu1  ;;  %v10052_v39 = vpop.f32.mrf.mxu0 }
 0x2b0   : > { %7393 = vmatmul.mubr.msk.bf16.gmra.mxu1 %vm2021_vm11, %v6815_v6  ;;  %v2979_v13 = vadd.f32 %v2936_v60, %v10896_v55  ;;  %v10054_v33 = vadd.f32 %v7224_v22, %v2981_v19 }
 0x2b1   : > { %v7191_v1 = vpop.f32.mrf.mxu1  ;;  %v10057_v10 = vpop.f32.mrf.mxu0 }
 0x2b2   : > { %v2982_v2 = vadd.f32 %v7191_v1, %v10897_v29  ;;  %v10059_v23 = vadd.f32 %v3293_v34, %v2979_v13 }
 0x2b3   : > { %v2939_v3 = vpop.f32.mrf.mxu1  ;;  %v10062_v35 = vpop.f32.mrf.mxu0 }
 0x2b4   : > { %v2980_v62 = vadd.f32 %v2939_v3, %v10898_v21  ;;  %v10064_v44 = vadd.f32 %v7225_v9, %v2982_v2 }
 0x2b5   : > { %v7230_v11 = vpop.f32.mrf.mxu1  ;;  %v10069_v22 = vpop.f32.mrf.mxu0 }
 0x2b6   : > { %v10067_v6 = vadd.f32 %v7230_v11, %v9881_v4  ;;  %v10071_v25 = vadd.f32 %v3296_v36, %v2980_v62 }
 0x2b7   : > { %v3906_v43 = vpop.f32.mrf.mxu1  ;;  %v10076_v34 = vpop.f32.mrf.mxu0 }
 0x2b8   : > { %v10074_v57 = vadd.f32 %v3906_v43, %v9890_v37 }
 0x2b9   : > { %v7231_v42 = vpop.f32.mrf.mxu1  ;;  %v10081_v9 = vpop.f32.mrf.mxu0 }
 0x2ba   : > { %v10079_v54 = vadd.f32 %v7231_v42, %v9898_v32 }
 0x2bb   : > { %v3909_v26 = vpop.f32.mrf.mxu1  ;;  %v10086_v51 = vpop.f32.mrf.mxu0 }
 0x2bc   : > { %v10084_v4 = vadd.f32 %v3909_v26, %v9905_v58 }
 0x2bd   : > { %v7234_v36 = vpop.f32.mrf.mxu1  ;;  %v10091_v37 = vpop.f32.mrf.mxu0 }
 0x2be   : > { %v10089_v19 = vadd.f32 %v7234_v36, %v9909_v63 }
 0x2bf   : > { %v3922_v60 = vpop.f32.mrf.mxu1  ;;  %v10096_v32 = vpop.f32.mrf.mxu0 }
 0x2c0   : > { %v10094_v55 = vadd.f32 %v3922_v60, %v9913_v27 }
 0x2c1   : > { %v7235_v13 = vpop.f32.mrf.mxu1  ;;  %v10101_v58 = vpop.f32.mrf.mxu0 }
 0x2c2   : > { %v10099_v1 = vadd.f32 %v7235_v13, %v9920_v48 }
 0x2c3   : > { %v3925_v29 = vpop.f32.mrf.mxu1  ;;  %v10106_v63 = vpop.f32.mrf.mxu0 }
 0x2c4   : > { %v10104_v2 = vadd.f32 %v3925_v29, %v9923_v15 }
 0x2c5   : > { %v7238_v3 = vpop.f32.mrf.mxu1  ;;  %v10111_v27 = vpop.f32.mrf.mxu0 }
 0x2c6   : > { %v10109_v21 = vadd.f32 %v7238_v3, %v9926_v8 }
 0x2c7   : > { %v3938_v62 = vpop.f32.mrf.mxu1  ;;  %v10116_v48 = vpop.f32.mrf.mxu0 }
 0x2c8   : > { %v10114_v11 = vadd.f32 %v3938_v62, %v9932_v59 }
 0x2c9   : > { %v7239_v43 = vpop.f32.mrf.mxu1  ;;  %v10121_v15 = vpop.f32.mrf.mxu0 }
 0x2ca   : > { %v10119_v42 = vadd.f32 %v7239_v43, %v9935_v16  ;;  %10899 = vst [vmem:[#allocation9_spill] sm:$0xff] %v10121_v15 }
 0x2cb   : > { %v3941_v26 = vpop.f32.mrf.mxu1  ;;  %v10126_v8 = vpop.f32.mrf.mxu0 }
 0x2cc   : > { %v10124_v36 = vadd.f32 %v3941_v26, %v9938_v46  ;;  %10900 = vst [vmem:[#allocation16_spill] sm:$0xff] %v10126_v8 }
 0x2cd   : > { %v7242_v60 = vpop.f32.mrf.mxu1  ;;  %v10131_v29 = vpop.f32.mrf.mxu0 }
 0x2ce   : > { %v10129_v13 = vadd.f32 %v7242_v60, %v9946_v40  ;;  %10901 = vst [vmem:[#allocation10_spill] sm:$0xff] %v10131_v29 }
 0x2cf   : > { %v3954_v59 = vpop.f32.mrf.mxu1  ;;  %v10139_v15 = vpop.f32.mrf.mxu0 }
 0x2d0   : > { %v10134_v3 = vadd.f32 %v3954_v59, %v9954_v41  ;;  %10902 = vst [vmem:[#allocation19_spill] sm:$0xff] %v10139_v15 }
 0x2d1   : > { %v7243_v16 = vpop.f32.mrf.mxu1  ;;  %v10147_v8 = vpop.f32.mrf.mxu0 }
 0x2d2   : > { %v10137_v62 = vadd.f32 %v7243_v16, %v9958_v56  ;;  %10903 = vst [vmem:[#allocation20_spill] sm:$0xff] %v10147_v8 }
 0x2d3   : > { %v3957_v43 = vpop.f32.mrf.mxu1  ;;  %v10155_v29 = vpop.f32.mrf.mxu0 }
 0x2d4   : > { %v10142_v46 = vadd.f32 %v3957_v43, %v9962_v24  ;;  %10904 = vst [vmem:[#allocation11_spill] sm:$0xff] %v10155_v29 }
 0x2d5   : > { %v7246_v26 = vpop.f32.mrf.mxu1  ;;  %v10163_v15 = vpop.f32.mrf.mxu0 }
 0x2d6   : > { %v10145_v40 = vadd.f32 %v7246_v26, %v9970_v0  ;;  %10906 = vst [vmem:[#allocation24_spill] sm:$0xff] %v10163_v15 }
 0x2d7   : > { %v3970_v60 = vpop.f32.mrf.mxu1 }
 0x2d8   : > { %v10150_v41 = vadd.f32 %v3970_v60, %v9978_v49 }
 0x2d9   : > { %v7247_v59 = vpop.f32.mrf.mxu1 }
 0x2da   : > { %v10153_v56 = vadd.f32 %v7247_v59, %v9983_v12  ;;  %v10171_v59 = vpop.f32.mrf.mxu0 }
 0x2db   : > { %v3973_v16 = vpop.f32.mrf.mxu1  ;;  %10909 = vst [vmem:[#allocation29_spill] sm:$0xff] %v10171_v59 }
 0x2dc   : > { %v10158_v24 = vadd.f32 %v3973_v16, %v9987_v47 }
 0x2dd   : > { %v7250_v43 = vpop.f32.mrf.mxu1 }
 0x2de   : > { %v10161_v0 = vadd.f32 %v7250_v43, %v9995_v30  ;;  %v10179_v43 = vpop.f32.mrf.mxu0 }
 0x2df   : > { %v3986_v26 = vpop.f32.mrf.mxu1  ;;  %10912 = vst [vmem:[#allocation14_spill] sm:$0xff] %v10179_v43 }
 0x2e0   : > { %10905 = vst [vmem:[#allocation25_spill] sm:$0xff] %v10161_v0  ;;  %v10166_v49 = vadd.f32 %v3986_v26, %v10006_v28 }
 0x2e1   : > { %v7251_v60 = vpop.f32.mrf.mxu1 }
 0x2e2   : > { %10907 = vst [vmem:[#allocation12_spill] sm:$0xff] %v10166_v49  ;;  %v10169_v12 = vadd.f32 %v7251_v60, %v10013_v14  ;;  %v10187_v60 = vpop.f32.mrf.mxu0 }
 0x2e3   : > { %v3989_v29 = vpop.f32.mrf.mxu1  ;;  %10915 = vst [vmem:[#allocation18_spill] sm:$0xff] %v10187_v60 }
 0x2e4   : > { %10908 = vst [vmem:[#allocation27_spill] sm:$0xff] %v10169_v12  ;;  %v10174_v47 = vadd.f32 %v3989_v29, %v10020_v17  ;;  %v10192_v29 = vpop.f32.mrf.mxu0 }
 0x2e5   : > { %v7254_v16 = vpop.f32.mrf.mxu1  ;;  %10917 = vst [vmem:[#allocation22_spill] sm:$0xff] %v10192_v29 }
 0x2e6   : > { %10910 = vst [vmem:[#allocation13_spill] sm:$0xff] %v10174_v47  ;;  %v10177_v30 = vadd.f32 %v7254_v16, %v10029_v38  ;;  %v10197_v8 = vpop.f32.mrf.mxu0 }
 0x2e7   : > { %v4002_v15 = vpop.f32.mrf.mxu1  ;;  %10919 = vst [vmem:[#allocation26_spill] sm:$0xff] %v10197_v8 }
 0x2e8   : > { %10911 = vst [vmem:[#allocation32_spill] sm:$0xff] %v10177_v30  ;;  %v10182_v28 = vadd.f32 %v4002_v15, %v10035_v7 }
 0x2e9   : > { %v7255_v26 = vpop.f32.mrf.mxu1  ;;  %v10205_v60 = vpop.f32.mrf.mxu0 }
 0x2ea   : > { %10913 = vst [vmem:[#allocation15_spill] sm:$0xff] %v10182_v28  ;;  %v10185_v14 = vadd.f32 %v7255_v26, %v10040_v52 }
 0x2eb   : > { %v4005_v59 = vpop.f32.mrf.mxu1 }
 0x2ec   : > { %10914 = vst [vmem:[#allocation17_spill] sm:$0xff] %v10185_v14  ;;  %v10190_v17 = vadd.f32 %v4005_v59, %v10045_v50 }
 0x2ee   : > { %10916 = vst [vmem:[#allocation21_spill] sm:$0xff] %v10190_v17 }
 0x2ef   : > { %v7258_v38 = vpop.f32.mrf.mxu1 }
 0x2f0   : > { %v10195_v16 = vadd.f32 %v7258_v38, %v10054_v33  ;;  %v10210_v33 = vpop.f32.mrf.mxu0 }
 0x2f1   : > { %v4018_v43 = vpop.f32.mrf.mxu1 }
 0x2f2   : > { %10918 = vst [vmem:[#allocation23_spill] sm:$0xff] %v10195_v16  ;;  %v10200_v7 = vadd.f32 %v4018_v43, %v10059_v23  ;;  %v10216_v23 = vpop.f32.mrf.mxu0 }
 0x2f3   : > { %v7259_v52 = vpop.f32.mrf.mxu1 }
 0x2f4   : > { %10920 = vst [vmem:[#allocation28_spill] sm:$0xff] %v10200_v7  ;;  %v10203_v15 = vadd.f32 %v7259_v52, %v10064_v44  ;;  %v10222_v52 = vpop.f32.mrf.mxu0 }
 0x2f5   : > { %v4021_v26 = vpop.f32.mrf.mxu1 }
 0x2f6   : > { %10921 = vst [vmem:[#allocation30_spill] sm:$0xff] %v10203_v15  ;;  %v10208_v50 = vadd.f32 %v4021_v26, %v10071_v25  ;;  %v10228_v26 = vpop.f32.mrf.mxu0 }
 0x2f7   : > { %v7298_v59 = vpop.f32.mrf.mxu1 }
 0x2f8   : > { %10922 = vst [vmem:[#allocation31_spill] sm:$0xff] %v10208_v50  ;;  %v10234_v16 = vpop.f32.mrf.mxu0 }
 0x2f9   : > { %v4733_v29 = vpop.f32.mrf.mxu1  ;;  %10925 = vst [vmem:[#allocation36_spill] sm:$0xff] %v10234_v16 }
 0x2fa   : > { %v10240_v28 = vpop.f32.mrf.mxu0 }
 0x2fb   : > { %v10212_v38 = vpop.f32.mrf.mxu1  ;;  %10928 = vst [vmem:[#allocation38_spill] sm:$0xff] %v10240_v28 }
 0x2fc   : > { %v10246_v12 = vpop.f32.mrf.mxu0 }
 0x2fd   : > { %v10214_v8 = vpop.f32.mrf.mxu1  ;;  %10931 = vst [vmem:[#allocation41_spill] sm:$0xff] %v10246_v12 }
 0x2ff   : > { %v10218_v43 = vpop.f32.mrf.mxu1 }
 0x301   : > { %v10220_v44 = vpop.f32.mrf.mxu1 }
 0x303   : > { %v10224_v15 = vpop.f32.mrf.mxu1 }
 0x305   : > { %v10226_v25 = vpop.f32.mrf.mxu1 }
 0x307   : > { %v10230_v50 = vpop.f32.mrf.mxu1 }
 0x308   : > { %10923 = vst [vmem:[#allocation33_spill] sm:$0xff] %v10230_v50  ;;  %v10252_v50 = vpop.f32.mrf.mxu0 }
 0x309   : > { %v10232_v7 = vpop.f32.mrf.mxu1  ;;  %10934 = vst [vmem:[#allocation44_spill] sm:$0xff] %v10252_v50 }
 0x30a   : > { %10924 = vst [vmem:[#allocation35_spill] sm:$0xff] %v10232_v7 }
 0x30b   : > { %v10236_v17 = vpop.f32.mrf.mxu1 }
 0x30c   : > { %10926 = vst [vmem:[#allocation34_spill] sm:$0xff] %v10236_v17  ;;  %v10258_v17 = vpop.f32.mrf.mxu0 }
 0x30d   : > { %v10238_v14 = vpop.f32.mrf.mxu1  ;;  %10937 = vst [vmem:[#allocation47_spill] sm:$0xff] %v10258_v17 }
 0x30e   : > { %10927 = vst [vmem:[#allocation37_spill] sm:$0xff] %v10238_v14 }
 0x30f   : > { %v10242_v30 = vpop.f32.mrf.mxu1 }
 0x310   : > { %10929 = vst [vmem:[#allocation39_spill] sm:$0xff] %v10242_v30 }
 0x311   : > { %v10244_v47 = vpop.f32.mrf.mxu1 }
 0x312   : > { %10930 = vst [vmem:[#allocation40_spill] sm:$0xff] %v10244_v47  ;;  %v10264_v47 = vpop.f32.mrf.mxu0 }
 0x313   : > { %v10248_v49 = vpop.f32.mrf.mxu1  ;;  %10940 = vst [vmem:[#allocation50_spill] sm:$0xff] %v10264_v47 }
 0x314   : > { %10932 = vst [vmem:[#allocation42_spill] sm:$0xff] %v10248_v49 }
 0x315   : > { %v10250_v0 = vpop.f32.mrf.mxu1 }
 0x316   : > { %10933 = vst [vmem:[#allocation43_spill] sm:$0xff] %v10250_v0  ;;  %v10270_v0 = vpop.f32.mrf.mxu0 }
 0x317   : > { %v10254_v7 = vpop.f32.mrf.mxu1 }
 0x318   : > { %10935 = vst [vmem:[#allocation45_spill] sm:$0xff] %v10254_v7 }
 0x319   : > { %v10256_v16 = vpop.f32.mrf.mxu1 }
 0x31a   : > { %10936 = vst [vmem:[#allocation46_spill] sm:$0xff] %v10256_v16  ;;  %v10276_v16 = vpop.f32.mrf.mxu0 }
 0x31b   : > { %v10260_v14 = vpop.f32.mrf.mxu1  ;;  %10945 = vst [vmem:[#allocation55_spill] sm:$0xff] %v10276_v16 }
 0x31c   : > { %10938 = vst [vmem:[#allocation48_spill] sm:$0xff] %v10260_v14 }
 0x31d   : > { %v10262_v28 = vpop.f32.mrf.mxu1 }
 0x31e   : > { %10939 = vst [vmem:[#allocation49_spill] sm:$0xff] %v10262_v28  ;;  %v10282_v28 = vpop.f32.mrf.mxu0 }
 0x31f   : > { %v10266_v30 = vpop.f32.mrf.mxu1  ;;  %10948 = vst [vmem:[#allocation58_spill] sm:$0xff] %v10282_v28 }
 0x320   : > { %10941 = vst [vmem:[#allocation51_spill] sm:$0xff] %v10266_v30  ;;  %v10288_v30 = vpop.f32.mrf.mxu0 }
 0x321   : > { %v10268_v49 = vpop.f32.mrf.mxu1 }
 0x322   : > { %10942 = vst [vmem:[#allocation52_spill] sm:$0xff] %v10268_v49 }
 0x323   : > { %v10272_v50 = vpop.f32.mrf.mxu1 }
 0x324   : > { %10943 = vst [vmem:[#allocation53_spill] sm:$0xff] %v10272_v50  ;;  %v10295_v50 = vld [vmem:[%s7819_s30] sm:$0xff]  }
 0x325   : > { %v10274_v7 = vpop.f32.mrf.mxu1 }
 0x326   : > { %10944 = vst [vmem:[#allocation54_spill] sm:$0xff] %v10274_v7  ;;  %v4504_v7 = vadd.f32 %v10003_v45, %v10067_v6  ;;  %v10307_v45 = vpop.f32.mrf.mxu0  ;;  %v4508_v6 = vadd.f32 %v10033_v53, %v10089_v19 }
 0x327   : > { %v10278_v17 = vpop.f32.mrf.mxu1 }
 0x328   : > { %10946 = vst [vmem:[#allocation56_spill] sm:$0xff] %v10278_v17  ;;  %v6189_v17 = vunpack.c.l.bf16 %v10295_v50  ;;  %v4862_v28 = vadd.f32 %v7298_v59, %v4504_v7  ;;  %v4509_v7 = vadd.f32 %v10043_v31, %v10099_v1  ;;  %v10334_v31 = vadd.f32 %v10069_v22, %v10119_v42  ;;  %v10343_v1 = vld [vmem:[%s7819_s30 + $0x10] sm:$0xff]   ;;  %v10351_v22 = vpop.f32.mrf.mxu0  ;;  %v10376_v59 = vld [vmem:[%s7819_s30 + $0x20] sm:$0xff]  }
 0x329   : > { %v10280_v14 = vpop.f32.mrf.mxu1  ;;  %v10357_v42 = vadd.f32 %v10081_v9, %v10129_v13 }
 0x32a   : > { %10947 = vst [vmem:[#allocation57_spill] sm:$0xff] %v10280_v14  ;;  %v4506_v14 = vadd.f32 %v10038_v18, %v10094_v55  ;;  %v10330_v18 = vadd.f32 %v10062_v35, %v10114_v11  ;;  %v10339_v55 = vld [vmem:[%s7819_s30 + $0x18] sm:$0xff]   ;;  %v10349_v35 = vadd.f32 %v10076_v34, %v10124_v36  ;;  %v10366_v34 = vld [vmem:[%s10787_s5] ss:$0 sm:$0xff]  ;;  %v6194_v36 = vunpack.c.h.bf16 %v10343_v1 }
 0x32b   : > { %v10284_v12 = vpop.f32.mrf.mxu1  ;;  %v6196_v11 = vunpack.c.h.bf16 %v10339_v55 }
 0x32c   : > { %10949 = vst [vmem:[#allocation59_spill] sm:$0xff] %v10284_v12  ;;  %v4505_v12 = vadd.f32 %v10018_v61, %v10079_v54 }
 0x32d   : > { %v10286_v47 = vpop.f32.mrf.mxu1 }
 0x32e   : > { %10950 = vst [vmem:[#allocation60_spill] sm:$0xff] %v10286_v47  ;;  %v4502_v47 = vadd.f32 %v10011_v5, %v10074_v57  ;;  %v10318_v57 = vld [vmem:[%s7819_s30 + $0x8] sm:$0xff]  }
 0x32f   : > { %v10290_v49 = vpop.f32.mrf.mxu1  ;;  %v6191_v61 = vunpack.c.l.bf16 %v10318_v57  ;;  %v6192_v53 = vunpack.c.h.bf16 %v10318_v57  ;;  %v10961_v57 = vunpack.c.h.bf16 %v10295_v50 }
 0x330   : > { %10951 = vst [vmem:[#allocation61_spill] sm:$0xff] %v10290_v49  ;;  %v4503_v49 = vadd.f32 %v10027_v20, %v10084_v4  ;;  %v4860_v54 = vadd.f32 %v4733_v29, %v4502_v47  ;;  %v4507_v20 = vadd.f32 %v10052_v39, %v10104_v2  ;;  %v10325_v4 = vadd.f32 %v10057_v10, %v10109_v21 }
 0x331   : > { %v10299_v16 = vpop.f32.mrf.mxu1  ;;  %v6195_v39 = vunpack.c.l.bf16 %v10339_v55  ;;  %v6193_v10 = vunpack.c.l.bf16 %v10343_v1  ;;  %v4863_v2 = vadd.f32 %v10212_v38, %v4505_v12  ;;  %v5587_v21 = vadd.f32 %v10205_v60, %v4862_v28  ;;  %v10370_v12 = vld [vmem:[%s7819_s30 + $0x28] sm:$0xff]  }
 0x332   : > { %v10361_v47 = vadd.f32 %v10086_v51, %v10134_v3  ;;  %v4861_v60 = vadd.f32 %v10214_v8, %v4503_v49  ;;  %v5585_v13 = vadd.f32 %v10210_v33, %v4860_v54  ;;  %v6197_v51 = vunpack.c.l.bf16 %v10376_v59  ;;  %v10389_v33 = vpop.f32.mrf.mxu0  ;;  %v10404_v8 = vld [vmem:[%s7819_s30 + $0x38] sm:$0xff]  }
 0x333   : > { %v10315_v5 = vpop.f32.mrf.mxu1  ;;  %v10381_v3 = vadd.f32 %v10091_v37, %v10137_v62  ;;  %v10385_v38 = vadd.f32 %v10096_v32, %v10142_v46  ;;  %v10393_v54 = vadd.f32 %v10101_v58, %v10145_v40  ;;  %v5588_v62 = vadd.f32 %v10216_v23, %v4863_v2 }
 0x334   : > { %v4866_v32 = vadd.f32 %v10218_v43, %v4508_v6  ;;  %v4864_v46 = vadd.f32 %v10220_v44, %v4506_v14  ;;  %v6203_v58 = vunpack.c.l.bf16 %v10404_v8  ;;  %v5586_v23 = vadd.f32 %v10222_v52, %v4861_v60  ;;  %v10420_v2 = vpop.f32.mrf.mxu0  ;;  %v10952_v60 = vld [vmem:[#allocation36_spill] sm:$0xff] }
 0x335   : > { %v10336_v19 = vpop.f32.mrf.mxu1  ;;  %v4867_v43 = vadd.f32 %v10224_v15, %v4509_v7  ;;  %v10413_v14 = vadd.f32 %v10111_v27, %v10153_v56  ;;  %v4865_v15 = vadd.f32 %v10226_v25, %v4507_v20  ;;  %v10426_v27 = vadd.f32 %v10116_v48, %v10158_v24  ;;  %v10954_v25 = vld [vmem:[#allocation25_spill] sm:$0xff] }
 0x336   : > { %v5591_v56 = vadd.f32 %v10228_v26, %v4866_v32  ;;  %v10955_v20 = vld [vmem:[#allocation9_spill] sm:$0xff]  ;;  %v10956_v32 = vld [vmem:[#allocation38_spill] sm:$0xff]  ;;  %v10977_v1 = vunpack.c.l.bf16 %v10370_v12 }
 0x337   : > { %v7366_v29 = vpop.f32.mrf.mxu1  ;;  %v10437_v48 = vadd.f32 %v10955_v20, %v10954_v25  ;;  %v5592_v44 = vadd.f32 %v10956_v32, %v4867_v43 }
 0x338   : > { %v6056_v9 = vadd.f32 %v7366_v29, %v5587_v21  ;;  %v10401_v29 = vadd.f32 %v10106_v63, %v10150_v41  ;;  %v10416_v41 = vld [vmem:[%s7819_s30 + $0x30] sm:$0xff]  }
 0x339   : > { %v5927_v28 = vpop.f32.mrf.mxu1 }
 0x33a   : > { %v6095_v21 = vadd.f32 %v10366_v34, %v6056_v9  ;;  %v6054_v37 = vadd.f32 %v5927_v28, %v5585_v13 }
 0x33b   : > { %v7367_v49 = vpop.f32.mrf.mxu1 }
 0x33c   : > { %v6127_v40 = vmul.f32 0.1, %v6095_v21  ;;  %v6093_v28 = vadd.f32 %v10366_v34, %v6054_v37  ;;  %v6057_v9 = vadd.f32 %v7367_v49, %v5588_v62  ;;  %v5589_v62 = vadd.f32 %v10952_v60, %v4864_v46  ;;  %v10440_v46 = vpop.f32.mrf.mxu0  ;;  %v10454_v60 = vld [vmem:[%s7819_s30 + $0x48] sm:$0xff]  }
 0x33d   : > { %v5930_v63 = vpop.f32.mrf.mxu1 }
 0x33e   : > { %v6159_v13 = vmax.f32 %v6095_v21, %v6127_v40  ;;  %v6125_v37 = vmul.f32 0.1, %v6093_v28  ;;  %v6096_v49 = vadd.f32 %v10366_v34, %v6057_v9  ;;  %v6055_v52 = vadd.f32 %v5930_v63, %v5586_v23  ;;  %v10953_v23 = vld [vmem:[#allocation33_spill] sm:$0xff] }
 0x33f   : > { %v7370_v7 = vpop.f32.mrf.mxu1  ;;  %v4870_v63 = vadd.f32 %v10953_v23, %v10325_v4  ;;  %v6207_v23 = vunpack.c.l.bf16 %v10454_v60 }
 0x340   : > { %v6223_v6 = vadd.f32 %v6191_v61, %v6159_v13  ;;  %v6157_v21 = vmax.f32 %v6093_v28, %v6125_v37  ;;  %v6128_v40 = vmul.f32 0.1, %v6096_v49  ;;  %v6094_v9 = vadd.f32 %v10366_v34, %v6055_v52 }
 0x341   : > { %v6060_v24 = vadd.f32 %v7370_v7, %v5591_v56  ;;  %v5943_v26 = vpop.f32.mrf.mxu1  ;;  %v10957_v56 = vld [vmem:[#allocation41_spill] sm:$0xff]  ;;  %v6202_v7 = vunpack.c.h.bf16 %v10416_v41 }
 0x342   : > { %6255 = vst.msk [vmem:[%s10444_s17 + $0x10] sm:$0xff] %vm457_vm0, %v6223_v6  ;;  %v6221_v61 = vadd.f32 %v6189_v17, %v6157_v21  ;;  %v6160_v4 = vmax.f32 %v6096_v49, %v6128_v40  ;;  %v6126_v28 = vmul.f32 0.1, %v6094_v9  ;;  %v6058_v13 = vadd.f32 %v5943_v26, %v5589_v62  ;;  %v10958_v21 = vld [vmem:[#allocation35_spill] sm:$0xff]  ;;  %v10960_v26 = vld [vmem:[#allocation44_spill] sm:$0xff] }
 0x343   : > { %v6099_v37 = vadd.f32 %v10366_v34, %v6060_v24  ;;  %v7371_v52 = vpop.f32.mrf.mxu1  ;;  %v5590_v43 = vadd.f32 %v10957_v56, %v4865_v15  ;;  %v4868_v40 = vadd.f32 %v10958_v21, %v10330_v18  ;;  %v10959_v15 = vld [vmem:[#allocation34_spill] sm:$0xff]  ;;  %v5595_v32 = vadd.f32 %v10960_v26, %v4870_v63  ;;  %v10962_v18 = vld [vmem:[#allocation37_spill] sm:$0xff] }
 0x344   : > { %6253 = vst.msk [vmem:[%s10444_s17] sm:$0xff] %vm457_vm0, %v6221_v61  ;;  %v6224_v17 = vadd.f32 %v6192_v53, %v6160_v4  ;;  %v6158_v6 = vmax.f32 %v6094_v9, %v6126_v28  ;;  %v6097_v49 = vadd.f32 %v10366_v34, %v6058_v13  ;;  %v6061_v62 = vadd.f32 %v7371_v52, %v5592_v44  ;;  %v10467_v61 = vpop.f32.mrf.mxu0  ;;  %v10964_v13 = vld [vmem:[#allocation16_spill] sm:$0xff]  ;;  %v10481_v21 = vld [vmem:[%s7819_s30 + $0x40] sm:$0xff]  }
 0x345   : > { %v4871_v25 = vadd.f32 %v10959_v15, %v10334_v31  ;;  %v6131_v20 = vmul.f32 0.1, %v6099_v37  ;;  %v5946_v24 = vpop.f32.mrf.mxu1  ;;  %v4869_v28 = vadd.f32 %v10962_v18, %v10349_v35  ;;  %v10963_v31 = vld [vmem:[#allocation12_spill] sm:$0xff]  ;;  %v10965_v35 = vld [vmem:[#allocation39_spill] sm:$0xff] }
 0x346   : > { %6256 = vst.msk [vmem:[%s10444_s17 + $0x18] sm:$0xff] %vm457_vm0, %v6224_v17  ;;  %v6222_v53 = vadd.f32 %v10961_v57, %v6158_v6  ;;  %v6129_v44 = vmul.f32 0.1, %v6097_v49  ;;  %v6100_v9 = vadd.f32 %v10366_v34, %v6061_v62  ;;  %v6059_v4 = vadd.f32 %v5946_v24, %v5590_v43  ;;  %v10967_v57 = vld [vmem:[#allocation50_spill] sm:$0xff] }
 0x347   : > { %v10478_v52 = vadd.f32 %v10964_v13, %v10963_v31  ;;  %v6163_v56 = vmax.f32 %v6099_v37, %v6131_v20  ;;  %v6205_v17 = vunpack.c.l.bf16 %v10481_v21  ;;  %v4874_v15 = vadd.f32 %v10965_v35, %v10357_v42  ;;  %v10966_v20 = vld [vmem:[#allocation47_spill] sm:$0xff]  ;;  %v10493_v31 = vpop.f32.mrf.mxu0  ;;  %v10968_v42 = vld [vmem:[#allocation40_spill] sm:$0xff] }
 0x348   : > { %v7374_v63 = vpop.f32.mrf.mxu1  ;;  %6254 = vst.msk [vmem:[%s10444_s17 + $0x8] sm:$0xff] %vm457_vm0, %v6222_v53  ;;  %v6161_v50 = vmax.f32 %v6097_v49, %v6129_v44  ;;  %v6132_v6 = vmul.f32 0.1, %v6100_v9  ;;  %v6098_v43 = vadd.f32 %v10366_v34, %v6059_v4  ;;  %v5593_v24 = vadd.f32 %v10966_v20, %v4868_v40  ;;  %v10969_v13 = vld [vmem:[#allocation27_spill] sm:$0xff] }
 0x349   : > { %v6064_v62 = vadd.f32 %v7374_v63, %v5595_v32  ;;  %v6227_v37 = vadd.f32 %v6195_v39, %v6163_v56  ;;  %v5596_v18 = vadd.f32 %v10967_v57, %v4871_v25  ;;  %v4872_v4 = vadd.f32 %v10968_v42, %v10361_v47  ;;  %v10970_v63 = vld [vmem:[#allocation10_spill] sm:$0xff]  ;;  %v10971_v47 = vld [vmem:[#allocation13_spill] sm:$0xff] }
 0x34a   : > { %v5959_v26 = vpop.f32.mrf.mxu1  ;;  %v6225_v49 = vadd.f32 %v6193_v10, %v6161_v50  ;;  %v6164_v53 = vmax.f32 %v6100_v9, %v6132_v6  ;;  %v6130_v44 = vmul.f32 0.1, %v6098_v43  ;;  %v10502_v39 = vadd.f32 %v10970_v63, %v10969_v13  ;;  %v10976_v13 = vld [vmem:[#allocation58_spill] sm:$0xff] }
 0x34b   : > { %v6103_v32 = vadd.f32 %v10366_v34, %v6064_v62  ;;  %6259 = vst.msk [vmem:[%s10444_s17 + $0x30] sm:$0xff] %vm457_vm0, %v6227_v37  ;;  %v6062_v40 = vadd.f32 %v5959_v26, %v5593_v24  ;;  %v5594_v56 = vadd.f32 %v10270_v0, %v4869_v28  ;;  %v10972_v62 = vld [vmem:[#allocation19_spill] sm:$0xff]  ;;  %v6208_v0 = vunpack.c.h.bf16 %v10454_v60  ;;  %v10518_v28 = vpop.f32.mrf.mxu0 }
 0x34c   : > { %v7375_v25 = vpop.f32.mrf.mxu1  ;;  %6257 = vst.msk [vmem:[%s10444_s17 + $0x20] sm:$0xff] %vm457_vm0, %v6225_v49  ;;  %v6228_v10 = vadd.f32 %v6196_v11, %v6164_v53  ;;  %v6162_v9 = vmax.f32 %v6098_v43, %v6130_v44  ;;  %v10513_v35 = vadd.f32 %v10972_v62, %v10971_v47  ;;  %v10973_v24 = vld [vmem:[#allocation55_spill] sm:$0xff]  ;;  %v5597_v63 = vadd.f32 %v10976_v13, %v4872_v4 }
 0x34d   : > { %v6135_v50 = vmul.f32 0.1, %v6103_v32  ;;  %v6065_v6 = vadd.f32 %v7375_v25, %v5596_v18  ;;  %v6101_v20 = vadd.f32 %v10366_v34, %v6062_v40  ;;  %v5599_v26 = vadd.f32 %v10973_v24, %v4874_v15  ;;  %v10974_v18 = vld [vmem:[#allocation42_spill] sm:$0xff]  ;;  %v10975_v53 = vld [vmem:[#allocation43_spill] sm:$0xff]  ;;  %v10542_v47 = vpop.f32.mrf.mxu0 }
 0x34e   : > { %v5962_v37 = vpop.f32.mrf.mxu1  ;;  %6260 = vst.msk [vmem:[%s10444_s17 + $0x38] sm:$0xff] %vm457_vm0, %v6228_v10  ;;  %v6226_v55 = vadd.f32 %v6194_v36, %v6162_v9  ;;  %v4875_v49 = vadd.f32 %v10974_v18, %v10381_v3  ;;  %v4873_v15 = vadd.f32 %v10975_v53, %v10385_v38  ;;  %v10979_v10 = vld [vmem:[#allocation32_spill] sm:$0xff]  ;;  %v6206_v4 = vunpack.c.h.bf16 %v10481_v21 }
 0x34f   : > { %v6167_v11 = vmax.f32 %v6103_v32, %v6135_v50  ;;  %v6104_v43 = vadd.f32 %v10366_v34, %v6065_v6  ;;  %v6063_v57 = vadd.f32 %v5962_v37, %v5594_v56  ;;  %v6133_v44 = vmul.f32 0.1, %v6101_v20  ;;  %v10978_v56 = vld [vmem:[#allocation45_spill] sm:$0xff]  ;;  %v10980_v9 = vld [vmem:[#allocation20_spill] sm:$0xff] }
 0x350   : > { %v7378_v42 = vpop.f32.mrf.mxu1  ;;  %6258 = vst.msk [vmem:[%s10444_s17 + $0x28] sm:$0xff] %vm457_vm0, %v6226_v55  ;;  %v4878_v3 = vadd.f32 %v10978_v56, %v10393_v54  ;;  %v10539_v50 = vadd.f32 %v10980_v9, %v10979_v10  ;;  %v10981_v54 = vld [vmem:[#allocation46_spill] sm:$0xff]  ;;  %v5598_v18 = vadd.f32 %v10307_v45, %v4873_v15  ;;  %v10982_v53 = vunpack.c.h.bf16 %v10370_v12 }
 0x351   : > { %v6231_v36 = vadd.f32 %v10977_v1, %v6167_v11  ;;  %v6136_v32 = vmul.f32 0.1, %v6104_v43  ;;  %v6102_v40 = vadd.f32 %v10366_v34, %v6063_v57  ;;  %v6068_v25 = vadd.f32 %v7378_v42, %v5599_v26  ;;  %v10984_v1 = vld [vmem:[#allocation15_spill] sm:$0xff] }
 0x352   : > { %v6165_v38 = vmax.f32 %v6101_v20, %v6133_v44  ;;  %v5975_v6 = vpop.f32.mrf.mxu1  ;;  %v4876_v55 = vadd.f32 %v10981_v54, %v10401_v29  ;;  %v5600_v11 = vadd.f32 %v10288_v30, %v4875_v49  ;;  %v5603_v12 = vadd.f32 %v10351_v22, %v4878_v3  ;;  %v10578_v3 = vld [vmem:[%s7819_s30 + $0x50] sm:$0xff]  }
 0x353   : > { %6263 = vst.msk [vmem:[%s10444_s17 + $0x50] sm:$0xff] %vm457_vm0, %v6231_v36  ;;  %v6168_v62 = vmax.f32 %v6104_v43, %v6136_v32  ;;  %v6134_v37 = vmul.f32 0.1, %v6102_v40  ;;  %v6107_v24 = vadd.f32 %v10366_v34, %v6068_v25  ;;  %v6066_v26 = vadd.f32 %v5975_v6, %v5597_v63  ;;  %v10983_v63 = vld [vmem:[#allocation48_spill] sm:$0xff]  ;;  %v10985_v36 = vld [vmem:[#allocation11_spill] sm:$0xff] }
 0x354   : > { %v6229_v20 = vadd.f32 %v6197_v51, %v6165_v38  ;;  %v7379_v57 = vpop.f32.mrf.mxu1  ;;  %v4879_v29 = vadd.f32 %v10983_v63, %v10413_v14  ;;  %v10560_v32 = vadd.f32 %v10985_v36, %v10984_v1  ;;  %v10565_v51 = vpop.f32.mrf.mxu0  ;;  %v10986_v49 = vunpack.c.h.bf16 %v10376_v59  ;;  %v10574_v38 = vld [vmem:[%s7819_s30 + $0x58] sm:$0xff]   ;;  %v10988_v54 = vld [vmem:[#allocation51_spill] sm:$0xff]  ;;  %v10991_v63 = vld [vmem:[#allocation17_spill] sm:$0xff] }
 0x355   : > { %v6232_v44 = vadd.f32 %v10982_v53, %v6168_v62  ;;  %v6166_v43 = vmax.f32 %v6102_v40, %v6134_v37  ;;  %v6139_v42 = vmul.f32 0.1, %v6107_v24  ;;  %v6105_v13 = vadd.f32 %v10366_v34, %v6066_v26 }
 0x356   : > { %6261 = vst.msk [vmem:[%s10444_s17 + $0x40] sm:$0xff] %vm457_vm0, %v6229_v20  ;;  %v6069_v30 = vadd.f32 %v7379_v57, %v5600_v11  ;;  %v5978_v45 = vpop.f32.mrf.mxu1  ;;  %v5601_v9 = vadd.f32 %v10389_v33, %v4876_v55  ;;  %v6211_v22 = vunpack.c.l.bf16 %v10574_v38  ;;  %v6209_v6 = vunpack.c.l.bf16 %v10578_v3  ;;  %v10987_v33 = vld [vmem:[#allocation49_spill] sm:$0xff] }
 0x357   : > { %6264 = vst.msk [vmem:[%s10444_s17 + $0x58] sm:$0xff] %vm457_vm0, %v6232_v44  ;;  %v6230_v15 = vadd.f32 %v10986_v49, %v6166_v43  ;;  %v6171_v14 = vmax.f32 %v6107_v24, %v6139_v42  ;;  %v6137_v40 = vmul.f32 0.1, %v6105_v13  ;;  %v6067_v25 = vadd.f32 %v5978_v45, %v5598_v18  ;;  %v10591_v18 = vpop.f32.mrf.mxu0 }
 0x358   : > { %v6108_v56 = vadd.f32 %v10366_v34, %v6069_v30  ;;  %v7382_v10 = vpop.f32.mrf.mxu1  ;;  %v4877_v26 = vadd.f32 %v10987_v33, %v10426_v27  ;;  %v4882_v55 = vadd.f32 %v10988_v54, %v10437_v48  ;;  %v5604_v57 = vadd.f32 %v10420_v2, %v4879_v29  ;;  %v10990_v27 = vld [vmem:[#allocation52_spill] sm:$0xff]  ;;  %v10996_v33 = vld [vmem:[#allocation21_spill] sm:$0xff] }
 0x359   : > { %6262 = vst.msk [vmem:[%s10444_s17 + $0x48] sm:$0xff] %vm457_vm0, %v6230_v15  ;;  %v6235_v59 = vadd.f32 %v6203_v58, %v6171_v14  ;;  %v6169_v62 = vmax.f32 %v6105_v13, %v6137_v40  ;;  %v6106_v37 = vadd.f32 %v10366_v34, %v6067_v25  ;;  %v6072_v24 = vadd.f32 %v7382_v10, %v5603_v12  ;;  %v10992_v48 = vld [vmem:[#allocation24_spill] sm:$0xff]  ;;  %v10993_v15 = vld [vmem:[#allocation53_spill] sm:$0xff] }
 0x35a   : > { %v6140_v20 = vmul.f32 0.1, %v6108_v56  ;;  %v5991_v11 = vpop.f32.mrf.mxu1  ;;  %v10989_v58 = vunpack.c.l.bf16 %v10416_v41  ;;  %v4880_v13 = vadd.f32 %v10990_v27, %v10478_v52  ;;  %v4529_v1 = vadd.f32 %v10992_v48, %v10991_v63  ;;  %v10997_v54 = vld [vmem:[#allocation29_spill] sm:$0xff]  ;;  %v10998_v63 = vld [vmem:[#allocation56_spill] sm:$0xff] }
 0x35b   : > { %6267 = vst.msk [vmem:[%s10444_s17 + $0x70] sm:$0xff] %vm457_vm0, %v6235_v59  ;;  %v6138_v44 = vmul.f32 0.1, %v6106_v37  ;;  %v6111_v43 = vadd.f32 %v10366_v34, %v6072_v24  ;;  %v6070_v42 = vadd.f32 %v5991_v11, %v5601_v9  ;;  %v6212_v2 = vunpack.c.h.bf16 %v10574_v38  ;;  %v10612_v9 = vpop.f32.mrf.mxu0  ;;  %v10999_v48 = vld [vmem:[#allocation57_spill] sm:$0xff] }
 0x35c   : > { %v6233_v53 = vadd.f32 %v10989_v58, %v6169_v62  ;;  %v6172_v36 = vmax.f32 %v6108_v56, %v6140_v20  ;;  %v7383_v30 = vpop.f32.mrf.mxu1  ;;  %v4883_v14 = vadd.f32 %v10993_v15, %v10502_v39  ;;  %v10994_v52 = vunpack.c.h.bf16 %v10404_v8  ;;  %v10995_v39 = vld [vmem:[#allocation54_spill] sm:$0xff] }
 0x35d   : > { %v6170_v29 = vmax.f32 %v6106_v37, %v6138_v44  ;;  %v6143_v45 = vmul.f32 0.1, %v6111_v43  ;;  %v6109_v12 = vadd.f32 %v10366_v34, %v6070_v42  ;;  %v6073_v49 = vadd.f32 %v7383_v30, %v5604_v57  ;;  %v10632_v44 = vld [vmem:[%s7819_s30 + $0x68] sm:$0xff]  }
 0x35e   : > { %6265 = vst.msk [vmem:[%s10444_s17 + $0x60] sm:$0xff] %vm457_vm0, %v6233_v53  ;;  %v6236_v40 = vadd.f32 %v10994_v52, %v6172_v36  ;;  %v5602_v25 = vadd.f32 %v10440_v46, %v4877_v26  ;;  %v5994_v56 = vpop.f32.mrf.mxu1  ;;  %v5607_v10 = vadd.f32 %v10467_v61, %v4882_v55  ;;  %v4881_v8 = vadd.f32 %v10995_v39, %v10513_v35 }
 0x35f   : > { %v6234_v59 = vadd.f32 %v6202_v7, %v6170_v29  ;;  %v6175_v62 = vmax.f32 %v6111_v43, %v6143_v45  ;;  %v6141_v37 = vmul.f32 0.1, %v6109_v12  ;;  %v6112_v24 = vadd.f32 %v10366_v34, %v6073_v49  ;;  %v5557_v43 = vpop.f32.mrf.mxu0 }
 0x360   : > { %v4527_v20 = vadd.f32 %v10997_v54, %v10996_v33  ;;  %6268 = vst.msk [vmem:[%s10444_s17 + $0x78] sm:$0xff] %vm457_vm0, %v6236_v40  ;;  %v6071_v46 = vadd.f32 %v5994_v56, %v5602_v25  ;;  %v7386_v61 = vpop.f32.mrf.mxu1  ;;  %v5605_v26 = vadd.f32 %v10493_v31, %v4880_v13  ;;  %v5608_v58 = vadd.f32 %v10518_v28, %v4883_v14  ;;  %v11000_v14 = vld [vmem:[#allocation59_spill] sm:$0xff]  ;;  %v11002_v40 = vld [vmem:[#allocation14_spill] sm:$0xff] }
 0x361   : > { %6266 = vst.msk [vmem:[%s10444_s17 + $0x68] sm:$0xff] %vm457_vm0, %v6234_v59  ;;  %v6239_v41 = vadd.f32 %v6207_v23, %v6175_v62  ;;  %v6173_v7 = vmax.f32 %v6109_v12, %v6141_v37  ;;  %v6144_v55 = vmul.f32 0.1, %v6112_v24  ;;  %v6076_v11 = vadd.f32 %v7386_v61, %v5607_v10  ;;  %v10654_v10 = vld [vmem:[%s7819_s30 + $0x60] sm:$0xff]   ;;  %v7360_v59 = vpop.f32.mrf.mxu0 }
 0x362   : > { %v6110_v35 = vadd.f32 %v10366_v34, %v6071_v46  ;;  %v6007_v57 = vpop.f32.mrf.mxu1  ;;  %v6210_v53 = vunpack.c.h.bf16 %v10578_v3  ;;  %v6215_v31 = vunpack.c.l.bf16 %v10632_v44  ;;  %v4886_v28 = vadd.f32 %v10998_v63, %v10539_v50  ;;  %v11001_v50 = vld [vmem:[#allocation23_spill] sm:$0xff] }
 0x363   : > { %6271 = vst.msk [vmem:[%s10444_s17 + $0x90] sm:$0xff] %vm457_vm0, %v6239_v41  ;;  %v6237_v23 = vadd.f32 %v6205_v17, %v6173_v7  ;;  %v6176_v42 = vmax.f32 %v6112_v24, %v6144_v55  ;;  %v6115_v27 = vadd.f32 %v10366_v34, %v6076_v11  ;;  %v6074_v13 = vadd.f32 %v6007_v57, %v5605_v26  ;;  %v11003_v24 = vld [vmem:[#allocation60_spill] sm:$0xff]  ;;  %v11004_v7 = vld [vmem:[#allocation61_spill] sm:$0xff]  ;;  %v11009_v63 = vld [vmem:[#allocation31_spill] sm:$0xff] }
 0x364   : > { %v4884_v36 = vadd.f32 %v10999_v48, %v10560_v32  ;;  %v6142_v30 = vmul.f32 0.1, %v6110_v35  ;;  %v7387_v29 = vpop.f32.mrf.mxu1  ;;  %v5606_v45 = vadd.f32 %v10542_v47, %v4881_v8  ;;  %v4887_v52 = vadd.f32 %v11000_v14, %v4529_v1  ;;  %v11005_v11 = vld [vmem:[#allocation28_spill] sm:$0xff] }
 0x365   : > { %6269 = vst.msk [vmem:[%s10444_s17 + $0x80] sm:$0xff] %vm457_vm0, %v6237_v23  ;;  %v6240_v17 = vadd.f32 %v6208_v0, %v6176_v42  ;;  %v6147_v12 = vmul.f32 0.1, %v6115_v27  ;;  %v6113_v49 = vadd.f32 %v10366_v34, %v6074_v13  ;;  %v6077_v15 = vadd.f32 %v7387_v29, %v5608_v58  ;;  %v11007_v42 = vld [vmem:[#allocation30_spill] sm:$0xff] }
 0x366   : > { %v4532_v25 = vadd.f32 %v11002_v40, %v11001_v50  ;;  %v6174_v32 = vmax.f32 %v6110_v35, %v6142_v30  ;;  %v6010_v56 = vpop.f32.mrf.mxu1  ;;  %v6213_v47 = vunpack.c.l.bf16 %v10654_v10  ;;  %v4885_v1 = vadd.f32 %v11003_v24, %v4527_v20  ;;  %v11006_v20 = vld [vmem:[#allocation18_spill] sm:$0xff] }
 0x367   : > { %6272 = vst.msk [vmem:[%s10444_s17 + $0x98] sm:$0xff] %vm457_vm0, %v6240_v17  ;;  %v6179_v60 = vmax.f32 %v6115_v27, %v6147_v12  ;;  %v6145_v0 = vmul.f32 0.1, %v6113_v49  ;;  %v6116_v62 = vadd.f32 %v10366_v34, %v6077_v15  ;;  %v6075_v37 = vadd.f32 %v6010_v56, %v5606_v45  ;;  %v11008_v27 = vld [vmem:[#allocation22_spill] sm:$0xff] }
 0x368   : > { %v6238_v39 = vadd.f32 %v6206_v4, %v6174_v32  ;;  %v5611_v8 = vadd.f32 %v10565_v51, %v4886_v28  ;;  %v7390_v33 = vpop.f32.mrf.mxu1  ;;  %v5609_v54 = vadd.f32 %v10591_v18, %v4884_v36  ;;  %v4890_v55 = vadd.f32 %v11004_v7, %v4532_v25  ;;  %v5570_v18 = vpop.f32.mrf.mxu0  ;;  %v11010_v28 = vld [vmem:[#allocation26_spill] sm:$0xff] }
 0x369   : > { %v6243_v46 = vadd.f32 %v6211_v22, %v6179_v60  ;;  %v6177_v61 = vmax.f32 %v6113_v49, %v6145_v0  ;;  %v6148_v26 = vmul.f32 0.1, %v6116_v62  ;;  %v6114_v41 = vadd.f32 %v10366_v34, %v6075_v37 }
 0x36a   : > { %v4530_v35 = vadd.f32 %v11006_v20, %v11005_v11  ;;  %6270 = vst.msk [vmem:[%s10444_s17 + $0x88] sm:$0xff] %vm457_vm0, %v6238_v39  ;;  %v6080_v21 = vadd.f32 %v7390_v33, %v5611_v8  ;;  %v6023_v4 = vpop.f32.mrf.mxu1  ;;  %v5612_v51 = vadd.f32 %v10612_v9, %v4887_v52  ;;  %v4533_v13 = vadd.f32 %v11008_v27, %v11007_v42  ;;  %v7361_v50 = vpop.f32.mrf.mxu0 }
 0x36b   : > { %6275 = vst.msk [vmem:[%s10444_s17 + $0xb0] sm:$0xff] %vm457_vm0, %v6243_v46  ;;  %v6241_v22 = vadd.f32 %v6209_v6, %v6177_v61  ;;  %v6180_v57 = vmax.f32 %v6116_v62, %v6148_v26  ;;  %v6146_v58 = vmul.f32 0.1, %v6114_v41  ;;  %v6078_v23 = vadd.f32 %v6023_v4, %v5609_v54  ;;  %v7577_v54 = vld [vmem:[%s7819_s30 + $0x78] sm:$0xff]  }
 0x36c   : > { %v4531_v48 = vadd.f32 %v11010_v28, %v11009_v63  ;;  %v6119_v36 = vadd.f32 %v10366_v34, %v6080_v21  ;;  %v7391_v30 = vpop.f32.mrf.mxu1  ;;  %v5610_v9 = vadd.f32 %v5557_v43, %v4885_v1  ;;  %v4888_v12 = vadd.f32 %v10299_v16, %v4530_v35  ;;  %v5573_v24 = vpop.f32.mrf.mxu0 }
 0x36d   : > { %6273 = vst.msk [vmem:[%s10444_s17 + $0xa0] sm:$0xff] %vm457_vm0, %v6241_v22  ;;  %v6244_v29 = vadd.f32 %v6212_v2, %v6180_v57  ;;  %v6178_v6 = vmax.f32 %v6114_v41, %v6146_v58  ;;  %v6117_v45 = vadd.f32 %v10366_v34, %v6078_v23  ;;  %v6081_v17 = vadd.f32 %v7391_v30, %v5612_v51  ;;  %v7578_v51 = vld [vmem:[%s7819_s30 + $0x70] sm:$0xff]   ;;  %s6876_s30 = sshll.u32 %s7679_s24, 12  ;;  %s6286_s24 = scalar_lea.sflag [#allocation5], %s7815_s15 }
 0x36e   : > { %v4891_v49 = vadd.f32 %v10315_v5, %v4533_v13  ;;  %v6151_v15 = vmul.f32 0.1, %v6119_v36  ;;  %v6026_v14 = vpop.f32.mrf.mxu1  ;;  %v5615_v52 = vadd.f32 %v7360_v59, %v4890_v55  ;;  %v4889_v25 = vadd.f32 %v10336_v19, %v4531_v48  ;;  %s10728_s27 = scalar_lea.hbm %s10788_s6, %s6876_s30 }
 0x36f   : > { %6276 = vst.msk [vmem:[%s10444_s17 + $0xb8] sm:$0xff] %vm457_vm0, %v6244_v29  ;;  %v6242_v43 = vadd.f32 %v6210_v53, %v6178_v6  ;;  %v6149_v38 = vmul.f32 0.1, %v6117_v45  ;;  %v6120_v2 = vadd.f32 %v10366_v34, %v6081_v17  ;;  %v6079_v40 = vadd.f32 %v6026_v14, %v5610_v9 }
 0x370   : > { %v6183_v32 = vmax.f32 %v6119_v36, %v6151_v15  ;;  %v6216_v16 = vunpack.c.h.bf16 %v10632_v44  ;;  %v7394_v56 = vpop.f32.mrf.mxu1  ;;  %v6214_v0 = vunpack.c.h.bf16 %v10654_v10  ;;  %v5613_v19 = vadd.f32 %v5570_v18, %v4888_v12 }
 0x371   : > { %6274 = vst.msk [vmem:[%s10444_s17 + $0xa8] sm:$0xff] %vm457_vm0, %v6242_v43  ;;  %v6181_v5 = vmax.f32 %v6117_v45, %v6149_v38  ;;  %v6152_v59 = vmul.f32 0.1, %v6120_v2  ;;  %v6118_v60 = vadd.f32 %v10366_v34, %v6079_v40  ;;  %v6084_v3 = vadd.f32 %v7394_v56, %v5615_v52 }
 0x372   : > { %v6247_v53 = vadd.f32 %v6215_v31, %v6183_v32  ;;  %v6039_v62 = vpop.f32.mrf.mxu1  ;;  %v5616_v37 = vadd.f32 %v7361_v50, %v4891_v49  ;;  %v6219_v44 = vunpack.c.l.bf16 %v7577_v54  ;;  %v5614_v61 = vadd.f32 %v5573_v24, %v4889_v25 }
 0x373   : > { %v6245_v1 = vadd.f32 %v6213_v47, %v6181_v5  ;;  %v6184_v39 = vmax.f32 %v6120_v2, %v6152_v59  ;;  %v6150_v8 = vmul.f32 0.1, %v6118_v60  ;;  %v6123_v33 = vadd.f32 %v10366_v34, %v6084_v3 }
 0x374   : > { %6279 = vst.msk [vmem:[%s10444_s17 + $0xd0] sm:$0xff] %vm457_vm0, %v6247_v53  ;;  %v6082_v31 = vadd.f32 %v6039_v62, %v5613_v19  ;;  %v7395_v46 = vpop.f32.mrf.mxu1  ;;  %v6217_v18 = vunpack.c.l.bf16 %v7578_v51  ;;  %v6220_v58 = vunpack.c.h.bf16 %v7577_v54  ;;  %v6218_v63 = vunpack.c.h.bf16 %v7578_v51 }
 0x375   : > { %6277 = vst.msk [vmem:[%s10444_s17 + $0xc0] sm:$0xff] %vm457_vm0, %v6245_v1  ;;  %v6248_v26 = vadd.f32 %v6216_v16, %v6184_v39  ;;  %v6182_v41 = vmax.f32 %v6118_v60, %v6150_v8  ;;  %v6155_v10 = vmul.f32 0.1, %v6123_v33  ;;  %v6085_v47 = vadd.f32 %v7395_v46, %v5616_v37 }
 0x376   : > { %v6121_v7 = vadd.f32 %v10366_v34, %v6082_v31  ;;  %v6042_v55 = vpop.f32.mrf.mxu1 }
 0x377   : > { %6280 = vst.msk [vmem:[%s10444_s17 + $0xd8] sm:$0xff] %vm457_vm0, %v6248_v26  ;;  %v6246_v11 = vadd.f32 %v6214_v0, %v6182_v41  ;;  %v6187_v20 = vmax.f32 %v6123_v33, %v6155_v10  ;;  %v6124_v35 = vadd.f32 %v10366_v34, %v6085_v47  ;;  %v6083_v21 = vadd.f32 %v6042_v55, %v5614_v61 }
 0x378   : > { %v6153_v4 = vmul.f32 0.1, %v6121_v7 }
 0x379   : > { %6278 = vst.msk [vmem:[%s10444_s17 + $0xc8] sm:$0xff] %vm457_vm0, %v6246_v11  ;;  %v6251_v22 = vadd.f32 %v6219_v44, %v6187_v20  ;;  %v6156_v57 = vmul.f32 0.1, %v6124_v35  ;;  %v6122_v23 = vadd.f32 %v10366_v34, %v6083_v21 }
 0x37a   : > { %v6185_v42 = vmax.f32 %v6121_v7, %v6153_v4 }
 0x37b   : > { %6283 = vst.msk [vmem:[%s10444_s17 + $0xf0] sm:$0xff] %vm457_vm0, %v6251_v22  ;;  %v6188_v27 = vmax.f32 %v6124_v35, %v6156_v57  ;;  %v6154_v13 = vmul.f32 0.1, %v6122_v23 }
 0x37c   : > { %v6249_v28 = vadd.f32 %v6217_v18, %v6185_v42 }
 0x37d   : > { %v6252_v48 = vadd.f32 %v6220_v58, %v6188_v27  ;;  %v6186_v36 = vmax.f32 %v6122_v23, %v6154_v13 }
 0x37e   : > { %6281 = vst.msk [vmem:[%s10444_s17 + $0xe0] sm:$0xff] %vm457_vm0, %v6249_v28 }
 0x37f   : > { %6284 = vst.msk [vmem:[%s10444_s17 + $0xf8] sm:$0xff] %vm457_vm0, %v6252_v48  ;;  %v6250_v34 = vadd.f32 %v6218_v63, %v6186_v36 }
 0x381   : > { %6282 = vst.msk [vmem:[%s10444_s17 + $0xe8] sm:$0xff] %vm457_vm0, %v6250_v34 }
 0x382   : > { %7620 = shalt.err (!%p7617_p7)
}
 0x383   : > { %s7621_s9 = scalar_lea.hbm %s10728_s27, 4096  ;;  %s7625_s17 = scalar_lea.hbm %s10788_s6, 8192 }
 0x384   : > { %p7622_p10 = scmp.ne.s32.totalorder %s10728_s27, %s7621_s9  ;;  %p7626_p2 = scmp.lt.s32.totalorder %s10728_s27, %s10788_s6 }
 0x385   : > { %p7627_p12 = scmp.lt.s32.totalorder %s7625_s17, %s7621_s9 }
 0x386   : > { %p7623_p4 = pnand %p7622_p10, %p7782_p9 }
 0x387   : > { %p7628_p8 = por %p7627_p12, %p7626_p2 }
 0x388   : > { %p7624_p13 = pneg %p7623_p4 }
 0x38a   : > { %p7629_p0 = pnand %p7628_p8, %p7624_p13 }
 0x38c   : > { %7632 = shalt.err (!%p7629_p0)
}
 0x38d   : > { %s7694_s20 = smov 128   ;;  %s7695_s28 = smov 8  }
 0x38e   : > { %7407 = dma.vmem_to_hbm [thread:$0]  (%p7782_p9), %s10730_s19, 4096, %s10728_s27, %s6286_s24, %s7694_s20, %s7694_s20, %s7695_s28  }
 0x38f PF: > { %s6317_s8 = sand.u32 1, %s7667_s21   ;;  %p11011_p1 = scmp.ge.s32.totalorder %s7687_s26, 2 }
 0x390   : > { %s6318_s16 = scalar_lea.sflag [#allocation5], %s6317_s8 }
 0x391   : > { %p7414_p3 = pnand %p11011_p1, %p7789_p11 }
 0x393   : > { %p7415_p5 = pneg %p7414_p3 }
 0x395   : > { %7662 = dma.done.wait (%p7415_p5), %s6318_s16, 4096  }
 0x396   : > { %7664 = vsyncadd (%p7415_p5), %s6318_s16, 4294963200  ;;  %s22_s26 = sadd.s32 1, %s7687_s26   ;;  %s11012_s21 = smov %s7671_s22 }
 0x397   : > { %p19_p6 = scmp.ge.s32.totalorder %s22_s26, 4   ;;  %s11013_s22 = smov %s7675_s23 }
 0x398   : > { %s11014_s23 = smov %s7787_s11  ;;  %s11015_s24 = smov %s7683_s25 }
 0x399   : > { %s11016_s25 = smov %s11018_s29  ;;  %21 = sbr.rel (!%p19_p6) target bundleno = 6 (0x6), region = 99 }
 0x39e   :  { %6323 = vsyncpa [#allocation4], 1 }
 0x39f   :  { %6325 = vsyncpa [#allocation4 + $0x1], 1 }
 0x3a0   :  { %6326 = vsyncpa [#allocation5], 1 }
 0x3a1   :  { %6328 = vsyncpa [#allocation5 + $0x1], 1 }

</bundles_post_ra>
